<compile_context>
chip_gen: v6e
topology: v6e:2x2x1
jax: 0.10.0
libtpu: 0.0.40
codegen_flags: <defaults>
</compile_context>

<pallas_src>
import jax
import jax.numpy as jnp
from jax.experimental import pallas as pl
from jax.experimental.pallas import tpu as pltpu

# Fixed SRCNN hyper-parameters (from the PyTorch module).
_KH1 = _KW1 = 9        # conv1 kernel, padding 4
_C1 = 64               # conv1 out channels
_C2 = 32               # conv2 out channels (1x1 conv)
_KH3 = _KW3 = 5        # conv3 kernel, padding 2
_R1 = _KH1 // 2        # 4 (conv1 halo)
_R3 = _KH3 // 2        # 2 (conv3 halo)
_PAD = _R1 + _R3       # 6 (total zero padding applied in the wrapper)
_KWC3 = _KW3 * _C2     # 160 (conv3 contraction size after the kw unfold)


def _ceil_to(n, m):
    return ((n + m - 1) // m) * m


def _vmem_capacity_bytes():
    """Physical VMEM of the current chip; conservative fallback if unknown."""
    try:
        info = pltpu.get_tpu_info()
        cap = getattr(info, "vmem_capacity_bytes", None)
        if cap:
            return int(cap)
    except Exception:
        pass
    return 64 * 1024 * 1024  # v7x-sized fallback (safe on every generation)


def _vmem_budget():
    cap = _vmem_capacity_bytes()
    # Scoped limit requested from the compiler: ~100 MiB on v5e/v6e (128 MiB
    # physical), ~52 MiB on v7x (64 MiB physical, duplicated per TensorCore).
    vmem_limit = int(min(cap * 0.82, 100 * 2**20))
    # Planning budget for tile selection (headroom for compiler temporaries).
    plan_budget = int(vmem_limit * 0.70)
    return plan_budget, vmem_limit


def _vmem_estimate(TH, W, Cin, Cout):
    """Rough per-grid-step VMEM bytes (128-lane padding included)."""
    THE = TH + 2 * _R3
    THP = TH + 2 * _PAD
    W4 = W + 2 * _R3
    KWC1 = _KW1 * Cin
    K1 = _KH1 * KWC1
    inp = 2 * THP * _ceil_to(W4, 16) * _ceil_to(KWC1, 128) * 2     # bf16, dbl-buffered
    f2u = THE * _ceil_to(W, 16) * _ceil_to(_KWC3, 128) * 2         # bf16 scratch
    slab1 = THE * _ceil_to(W, 16) * _ceil_to(K1, 128) * 2          # bf16 value
    h1 = _ceil_to(THE * W, 8) * _ceil_to(_C1, 128) * 4             # f32 value
    h2 = _ceil_to(THE * W, 8) * _ceil_to(_C2, 128) * 4             # f32 value
    outb = 2 * TH * _ceil_to(W, 8) * _ceil_to(Cout, 128) * 4       # f32, dbl-buffered
    weights = 2 * 1024 * 1024                                      # generous constant
    return inp + f2u + slab1 + h1 + h2 + outb + weights


def _pick_row_tile(H, W, Cin, Cout, budget_bytes):
    """Largest divisor of H whose per-step working set fits the VMEM budget,
    preferring >=2 row tiles (pipelining / v7x megacore sharding)."""
    divisors = [d for d in range(1, H + 1) if H % d == 0]
    cands = [d for d in divisors if d >= 8] or [H]
    fitting = [d for d in cands if _vmem_estimate(d, W, Cin, Cout) <= budget_bytes]
    if not fitting:
        return min(cands)
    multi = [d for d in fitting if H // d >= 2]
    return max(multi or fitting)


def _make_fused_srcnn_kernel(TH, W, Cin, Cout):
    THE = TH + 2 * _R3             # rows per tile incl. conv3 halo
    KWC1 = _KW1 * Cin              # 27 for Cin=3
    K1 = _KH1 * KWC1               # 243: full conv1 contraction

    def kernel(x_ref, w1_ref, b1_ref, w2_ref, b2_ref, w3_ref, b3_ref,
               o_ref, f2u_ref):
        # x_ref  : (1, TH+12, W+4, KWC1) bf16   per-tile halo window (kw-unfolded)
        # w1_ref : (K1, 64)  bf16    b1_ref: (1, 64)   f32
        # w2_ref : (64, 32)  bf16    b2_ref: (1, 32)   f32
        # w3_ref : (5, 160, Cout) bf16   b3_ref: (1, Cout) f32
        # o_ref  : (1, TH, W, Cout)
        # f2u_ref: VMEM (THE, W, 160) bf16  width-unfolded conv2 activations
        t = pl.program_id(1)

        # ---- conv1 (9x9, pad 4) + ReLU: ONE K = 9*9*Cin matmul -------------
        slab1 = jnp.concatenate(
            [x_ref[0, kh:kh + THE, _R3:_R3 + W, :] for kh in range(_KH1)],
            axis=-1)                                        # (THE, W, K1) bf16
        h1 = jnp.dot(slab1.reshape(THE * W, K1), w1_ref[...],
                     preferred_element_type=jnp.float32)    # (THE*W, 64) f32
        h1 = jnp.maximum(h1 + b1_ref[...], 0.0)

        # ---- conv2 (1x1) + ReLU: single K = 64 matmul ----------------------
        h2 = jnp.dot(h1.astype(jnp.bfloat16), w2_ref[...],
                     preferred_element_type=jnp.float32)    # (THE*W, 32) f32
        h2 = jnp.maximum(h2 + b2_ref[...], 0.0)
        h2 = h2.reshape(THE, W, _C2).astype(jnp.bfloat16)

        # ---- width-unfold conv2 output into scratch; conv3's zero-padding --
        # columns are written directly as zero slices (no iota masking).
        for kw in range(_KW3):
            lanes = slice(kw * _C2, (kw + 1) * _C2)
            lo = max(0, _R3 - kw)
            hi = min(W, W + _R3 - kw)
            f2u_ref[:, lo:hi, lanes] = h2[:, lo + kw - _R3:hi + kw - _R3, :]
            if lo > 0:
                f2u_ref[:, 0:lo, lanes] = jnp.zeros((THE, lo, _C2), jnp.bfloat16)
            if hi < W:
                f2u_ref[:, hi:W, lanes] = jnp.zeros((THE, W - hi, _C2), jnp.bfloat16)

        # conv3 zero-padding rows exist only on the first / last row tile.
        @pl.when(t == 0)
        def _():
            f2u_ref[0:_R3, :, :] = jnp.zeros((_R3, W, _KWC3), jnp.bfloat16)

        @pl.when(t == pl.num_programs(1) - 1)
        def _():
            f2u_ref[THE - _R3:THE, :, :] = jnp.zeros((_R3, W, _KWC3), jnp.bfloat16)

        # ---- conv3 (5x5, pad 2): KH3 matmuls, K = 5*32 = 160 ---------------
        acc3 = jnp.zeros((TH * W, Cout), jnp.float32)
        for kh in range(_KH3):
            slab3 = f2u_ref[kh:kh + TH, :, :].reshape(TH * W, _KWC3)
            acc3 = acc3 + jnp.dot(slab3, w3_ref[kh, :, :],
                                  preferred_element_type=jnp.float32)
        acc3 = acc3 + b3_ref[...]
        # The final (num_channels-wide) output is the only HBM store.
        o_ref[...] = acc3.reshape(1, TH, W, Cout).astype(o_ref.dtype)

    return kernel


def srcnn_forward_pallas(params, x_nchw):
    """Fused SRCNN forward. x_nchw: (B, C, H, W) f32 -> (B, C, H, W) f32."""
    B, Cin, H, W = x_nchw.shape
    Cout = Cin
    KWC1 = _KW1 * Cin
    K1 = _KH1 * KWC1
    W4 = W + 2 * _R3

    plan_budget, vmem_limit = _vmem_budget()
    TH = _pick_row_tile(H, W, Cin, Cout, plan_budget)
    n_t = H // TH
    THE = TH + 2 * _R3
    THP = TH + 2 * _PAD

    # NCHW -> NHWC, zero-pad by conv1 + conv3 halos (6 each side).
    x = jnp.transpose(x_nchw, (0, 2, 3, 1))
    xp = jnp.pad(x, ((0, 0), (_PAD, _PAD), (_PAD, _PAD), (0, 0)))
    # Unfold conv1's kw taps into the channel axis: (B, H+12, W4, 9*Cin).
    x_unf = jnp.stack([xp[:, :, kw:kw + W4, :] for kw in range(_KW1)], axis=3)
    x_unf = x_unf.reshape(B, H + 2 * _PAD, W4, KWC1).astype(jnp.bfloat16)
    # Per-row-tile halo windows (TH + 12 rows each): per-step input VMEM is
    # O(TH) instead of O(H), and every grid step DMAs only its own window.
    x_tiles = jnp.stack(
        [x_unf[:, t * TH:t * TH + THP] for t in range(n_t)], axis=1
    ).reshape(B * n_t, THP, W4, KWC1)

    # Weights as bf16 matmul operands; biases stay f32.
    w1 = params["w1"].reshape(K1, _C1).astype(jnp.bfloat16)
    w2 = params["w2"].reshape(_C1, _C2).astype(jnp.bfloat16)
    w3 = params["w3"].reshape(_KH3, _KWC3, Cout).astype(jnp.bfloat16)
    b1 = params["b1"].reshape(1, _C1).astype(jnp.float32)
    b2 = params["b2"].reshape(1, _C2).astype(jnp.float32)
    b3 = params["b3"].reshape(1, Cout).astype(jnp.float32)

    kernel = _make_fused_srcnn_kernel(TH, W, Cin, Cout)

    out_nhwc = pl.pallas_call(
        kernel,
        out_shape=jax.ShapeDtypeStruct((B, H, W, Cout), x_nchw.dtype),
        grid=(B, n_t),
        in_specs=[
            pl.BlockSpec((1, THP, W4, KWC1), lambda b, t: (b * n_t + t, 0, 0, 0)),
            pl.BlockSpec((K1, _C1), lambda b, t: (0, 0)),
            pl.BlockSpec((1, _C1), lambda b, t: (0, 0)),
            pl.BlockSpec((_C1, _C2), lambda b, t: (0, 0)),
            pl.BlockSpec((1, _C2), lambda b, t: (0, 0)),
            pl.BlockSpec((_KH3, _KWC3, Cout), lambda b, t: (0, 0, 0)),
            pl.BlockSpec((1, Cout), lambda b, t: (0, 0)),
        ],
        out_specs=pl.BlockSpec((1, TH, W, Cout), lambda b, t: (b, t, 0, 0)),
        scratch_shapes=[pltpu.VMEM((THE, W, _KWC3), jnp.bfloat16)],
        compiler_params=pltpu.CompilerParams(
            dimension_semantics=("parallel", "parallel"),
            vmem_limit_bytes=vmem_limit,
        ),
    )(x_tiles, w1, b1, w2, b2, w3, b3)

    # Back to NCHW (PyTorch convention).
    return jnp.transpose(out_nhwc, (0, 3, 1, 2))


srcnn_forward = jax.jit(srcnn_forward_pallas)


def kaiming_normal_fan_out(key, kh, kw, cin, cout):
    # nn.init.kaiming_normal_(mode='fan_out', nonlinearity='relu'):
    # std = sqrt(2 / fan_out), fan_out = cout * kh * kw.  HWIO layout.
    std = (2.0 / (cout * kh * kw)) ** 0.5
    return std * jax.random.normal(key, (kh, kw, cin, cout), dtype=jnp.float32)


def init_srcnn_params(key, num_channels=3):
    k1, k2, k3 = jax.random.split(key, 3)
    return {
        "w1": kaiming_normal_fan_out(k1, _KH1, _KW1, num_channels, _C1),
        "b1": jnp.zeros((_C1,), jnp.float32),
        "w2": kaiming_normal_fan_out(k2, 1, 1, _C1, _C2),
        "b2": jnp.zeros((_C2,), jnp.float32),
        "w3": kaiming_normal_fan_out(k3, _KH3, _KW3, _C2, num_channels),
        "b3": jnp.zeros((num_channels,), jnp.float32),
    }


def _reference_forward(params, x_nchw):
    """Pure-JAX f32 reference using lax.conv_general_dilated (NHWC/HWIO)."""
    x = jnp.transpose(x_nchw, (0, 2, 3, 1))

    def conv(x, w, b, pad):
        y = jax.lax.conv_general_dilated(
            x, w, window_strides=(1, 1),
            padding=((pad, pad), (pad, pad)),
            dimension_numbers=("NHWC", "HWIO", "NHWC"),
        )
        return y + b

    out = jax.nn.relu(conv(x, params["w1"], params["b1"], _R1))
    out = jax.nn.relu(conv(out, params["w2"], params["b2"], 0))
    out = conv(out, params["w3"], params["b3"], _R3)
    return jnp.transpose(out, (0, 3, 1, 2))


if __name__ == "__main__":
    key = jax.random.PRNGKey(0)
    pkey, xkey = jax.random.split(key)

    num_channels = 3
    params = init_srcnn_params(pkey, num_channels=num_channels)

    # Small NCHW input consistent with the module: batch=2, C=3, H=W=16.
    x = jax.random.normal(xkey, (2, num_channels, 16, 16), dtype=jnp.float32)

    out = jax.block_until_ready(srcnn_forward(params, x))
    ref = jax.block_until_ready(_reference_forward(params, x))

    assert out.shape == (2, num_channels, 16, 16)
    # bf16 matmul operands (f32 accumulation) -> loose-but-meaningful tolerance.
    assert jnp.allclose(out, ref, atol=5e-2, rtol=5e-2), (
        "mismatch vs reference, max abs err = "
        f"{float(jnp.max(jnp.abs(out - ref)))}"
    )

    print("KERNEL_OK")
</pallas_src>

<mosaic_0001>
module attributes {stable_mosaic.version = 11 : i64} {
  func.func @kernel(%arg0: i32, %arg1: i32, %arg2: memref<1x20x20x27xbf16, #tpu.memory_space<vmem>>, %arg3: memref<243x64xbf16, #tpu.memory_space<vmem>>, %arg4: memref<1x64xf32, #tpu.memory_space<vmem>>, %arg5: memref<64x32xbf16, #tpu.memory_space<vmem>>, %arg6: memref<1x32xf32, #tpu.memory_space<vmem>>, %arg7: memref<5x160x3xbf16, #tpu.memory_space<vmem>>, %arg8: memref<1x3xf32, #tpu.memory_space<vmem>>, %arg9: memref<1x8x16x3xf32, #tpu.memory_space<vmem>>, %arg10: memref<12x16x160xbf16, #tpu.memory_space<vmem>>) attributes {dimension_semantics = [#tpu.dimension_semantics<parallel>, #tpu.dimension_semantics<parallel>], iteration_bounds = array<i64: 2, 2>, scalar_prefetch = 0 : i64, scratch_operands = 1 : i64, tpu.core_type = #tpu.core_type<tc>, window_params = [{transform_indices = @transform_0, window_bounds = array<i64: 1, 20, 20, 27>}, {pipeline_mode = #tpu.pipeline_mode<synchronous>, transform_indices = @transform_1, window_bounds = array<i64: 243, 64>}, {pipeline_mode = #tpu.pipeline_mode<synchronous>, transform_indices = @transform_2, window_bounds = array<i64: 1, 64>}, {pipeline_mode = #tpu.pipeline_mode<synchronous>, transform_indices = @transform_3, window_bounds = array<i64: 64, 32>}, {pipeline_mode = #tpu.pipeline_mode<synchronous>, transform_indices = @transform_4, window_bounds = array<i64: 1, 32>}, {pipeline_mode = #tpu.pipeline_mode<synchronous>, transform_indices = @transform_5, window_bounds = array<i64: 5, 160, 3>}, {pipeline_mode = #tpu.pipeline_mode<synchronous>, transform_indices = @transform_6, window_bounds = array<i64: 1, 3>}, {transform_indices = @transform_7, window_bounds = array<i64: 1, 8, 16, 3>}]} {
    %c0 = arith.constant 0 : index
    %c0_0 = arith.constant 0 : index
    %c2 = arith.constant 2 : index
    %c0_1 = arith.constant 0 : index
    %0 = vector.load %arg2[%c0, %c0_0, %c2, %c0_1] : memref<1x20x20x27xbf16, #tpu.memory_space<vmem>>, vector<1x12x16x27xbf16>
    %1 = vector.shape_cast %0 : vector<1x12x16x27xbf16> to vector<12x16x27xbf16>
    %c0_2 = arith.constant 0 : index
    %c1 = arith.constant 1 : index
    %c2_3 = arith.constant 2 : index
    %c0_4 = arith.constant 0 : index
    %2 = vector.load %arg2[%c0_2, %c1, %c2_3, %c0_4] : memref<1x20x20x27xbf16, #tpu.memory_space<vmem>>, vector<1x12x16x27xbf16>
    %3 = vector.shape_cast %2 : vector<1x12x16x27xbf16> to vector<12x16x27xbf16>
    %c0_5 = arith.constant 0 : index
    %c2_6 = arith.constant 2 : index
    %c2_7 = arith.constant 2 : index
    %c0_8 = arith.constant 0 : index
    %4 = vector.load %arg2[%c0_5, %c2_6, %c2_7, %c0_8] : memref<1x20x20x27xbf16, #tpu.memory_space<vmem>>, vector<1x12x16x27xbf16>
    %5 = vector.shape_cast %4 : vector<1x12x16x27xbf16> to vector<12x16x27xbf16>
    %c0_9 = arith.constant 0 : index
    %c3 = arith.constant 3 : index
    %c2_10 = arith.constant 2 : index
    %c0_11 = arith.constant 0 : index
    %6 = vector.load %arg2[%c0_9, %c3, %c2_10, %c0_11] : memref<1x20x20x27xbf16, #tpu.memory_space<vmem>>, vector<1x12x16x27xbf16>
    %7 = vector.shape_cast %6 : vector<1x12x16x27xbf16> to vector<12x16x27xbf16>
    %c0_12 = arith.constant 0 : index
    %c4 = arith.constant 4 : index
    %c2_13 = arith.constant 2 : index
    %c0_14 = arith.constant 0 : index
    %8 = vector.load %arg2[%c0_12, %c4, %c2_13, %c0_14] : memref<1x20x20x27xbf16, #tpu.memory_space<vmem>>, vector<1x12x16x27xbf16>
    %9 = vector.shape_cast %8 : vector<1x12x16x27xbf16> to vector<12x16x27xbf16>
    %c0_15 = arith.constant 0 : index
    %c5 = arith.constant 5 : index
    %c2_16 = arith.constant 2 : index
    %c0_17 = arith.constant 0 : index
    %10 = vector.load %arg2[%c0_15, %c5, %c2_16, %c0_17] : memref<1x20x20x27xbf16, #tpu.memory_space<vmem>>, vector<1x12x16x27xbf16>
    %11 = vector.shape_cast %10 : vector<1x12x16x27xbf16> to vector<12x16x27xbf16>
    %c0_18 = arith.constant 0 : index
    %c6 = arith.constant 6 : index
    %c2_19 = arith.constant 2 : index
    %c0_20 = arith.constant 0 : index
    %12 = vector.load %arg2[%c0_18, %c6, %c2_19, %c0_20] : memref<1x20x20x27xbf16, #tpu.memory_space<vmem>>, vector<1x12x16x27xbf16>
    %13 = vector.shape_cast %12 : vector<1x12x16x27xbf16> to vector<12x16x27xbf16>
    %c0_21 = arith.constant 0 : index
    %c7 = arith.constant 7 : index
    %c2_22 = arith.constant 2 : index
    %c0_23 = arith.constant 0 : index
    %14 = vector.load %arg2[%c0_21, %c7, %c2_22, %c0_23] : memref<1x20x20x27xbf16, #tpu.memory_space<vmem>>, vector<1x12x16x27xbf16>
    %15 = vector.shape_cast %14 : vector<1x12x16x27xbf16> to vector<12x16x27xbf16>
    %c0_24 = arith.constant 0 : index
    %c8 = arith.constant 8 : index
    %c2_25 = arith.constant 2 : index
    %c0_26 = arith.constant 0 : index
    %16 = vector.load %arg2[%c0_24, %c8, %c2_25, %c0_26] : memref<1x20x20x27xbf16, #tpu.memory_space<vmem>>, vector<1x12x16x27xbf16>
    %17 = vector.shape_cast %16 : vector<1x12x16x27xbf16> to vector<12x16x27xbf16>
    %18 = tpu.concatenate %1, %3, %5, %7, %9, %11, %13, %15, %17 in 2 : vector<12x16x27xbf16>, vector<12x16x27xbf16>, vector<12x16x27xbf16>, vector<12x16x27xbf16>, vector<12x16x27xbf16>, vector<12x16x27xbf16>, vector<12x16x27xbf16>, vector<12x16x27xbf16>, vector<12x16x27xbf16> -> vector<12x16x243xbf16>
    %19 = vector.shape_cast %18 : vector<12x16x243xbf16> to vector<192x243xbf16>
    %c0_27 = arith.constant 0 : index
    %c0_28 = arith.constant 0 : index
    %20 = vector.load %arg3[%c0_27, %c0_28] : memref<243x64xbf16, #tpu.memory_space<vmem>>, vector<243x64xbf16>
    %cst = arith.constant dense<0.000000e+00> : vector<192x64xf32>
    %21 = tpu.matmul %19, %20, %cst {dimension_numbers = #tpu.dot_dimension_numbers<[1], [0], [0], [1], [0, 0, 1, 1], [], []>} : vector<192x243xbf16>, vector<243x64xbf16>, vector<192x64xf32> -> vector<192x64xf32>
    %c0_29 = arith.constant 0 : index
    %c0_30 = arith.constant 0 : index
    %22 = vector.load %arg4[%c0_29, %c0_30] : memref<1x64xf32, #tpu.memory_space<vmem>>, vector<1x64xf32>
    %23 = vector.broadcast %22 : vector<1x64xf32> to vector<192x64xf32>
    %24 = arith.addf %21, %23 : vector<192x64xf32>
    %cst_31 = arith.constant 0.000000e+00 : f32
    %25 = vector.broadcast %cst_31 : f32 to vector<192x64xf32>
    %26 = arith.maximumf %24, %25 : vector<192x64xf32>
    %27 = arith.truncf %26 : vector<192x64xf32> to vector<192x64xbf16>
    %c0_32 = arith.constant 0 : index
    %c0_33 = arith.constant 0 : index
    %28 = vector.load %arg5[%c0_32, %c0_33] : memref<64x32xbf16, #tpu.memory_space<vmem>>, vector<64x32xbf16>
    %cst_34 = arith.constant dense<0.000000e+00> : vector<192x32xf32>
    %29 = tpu.matmul %27, %28, %cst_34 {dimension_numbers = #tpu.dot_dimension_numbers<[1], [0], [0], [1], [0, 0, 1, 1], [], []>} : vector<192x64xbf16>, vector<64x32xbf16>, vector<192x32xf32> -> vector<192x32xf32>
    %c0_35 = arith.constant 0 : index
    %c0_36 = arith.constant 0 : index
    %30 = vector.load %arg6[%c0_35, %c0_36] : memref<1x32xf32, #tpu.memory_space<vmem>>, vector<1x32xf32>
    %31 = vector.broadcast %30 : vector<1x32xf32> to vector<192x32xf32>
    %32 = arith.addf %29, %31 : vector<192x32xf32>
    %cst_37 = arith.constant 0.000000e+00 : f32
    %33 = vector.broadcast %cst_37 : f32 to vector<192x32xf32>
    %34 = arith.maximumf %32, %33 : vector<192x32xf32>
    %35 = vector.shape_cast %34 : vector<192x32xf32> to vector<12x16x32xf32>
    %36 = arith.truncf %35 : vector<12x16x32xf32> to vector<12x16x32xbf16>
    %37 = vector.extract_strided_slice %36 {offsets = [0, 0, 0], sizes = [12, 14, 32], strides = [1, 1, 1]} : vector<12x16x32xbf16> to vector<12x14x32xbf16>
    %c0_38 = arith.constant 0 : index
    %c2_39 = arith.constant 2 : index
    %c0_40 = arith.constant 0 : index
    %38 = vector.load %arg10[%c0_38, %c2_39, %c0_40] : memref<12x16x160xbf16, #tpu.memory_space<vmem>>, vector<12x14x32xbf16>
    tpu.vector_store %arg10[%c0_38, %c2_39, %c0_40], %37 {strides = array<i32>} : memref<12x16x160xbf16, #tpu.memory_space<vmem>>, vector<12x14x32xbf16>,
    %cst_41 = arith.constant 0.000000e+00 : bf16
    %39 = vector.broadcast %cst_41 : bf16 to vector<12x2x32xbf16>
    %c0_42 = arith.constant 0 : index
    %c0_43 = arith.constant 0 : index
    %c0_44 = arith.constant 0 : index
    %40 = vector.load %arg10[%c0_42, %c0_43, %c0_44] : memref<12x16x160xbf16, #tpu.memory_space<vmem>>, vector<12x2x32xbf16>
    tpu.vector_store %arg10[%c0_42, %c0_43, %c0_44], %39 {strides = array<i32>} : memref<12x16x160xbf16, #tpu.memory_space<vmem>>, vector<12x2x32xbf16>,
    %41 = vector.extract_strided_slice %36 {offsets = [0, 0, 0], sizes = [12, 15, 32], strides = [1, 1, 1]} : vector<12x16x32xbf16> to vector<12x15x32xbf16>
    %c0_45 = arith.constant 0 : index
    %c1_46 = arith.constant 1 : index
    %c32 = arith.constant 32 : index
    %42 = vector.load %arg10[%c0_45, %c1_46, %c32] : memref<12x16x160xbf16, #tpu.memory_space<vmem>>, vector<12x15x32xbf16>
    tpu.vector_store %arg10[%c0_45, %c1_46, %c32], %41 {strides = array<i32>} : memref<12x16x160xbf16, #tpu.memory_space<vmem>>, vector<12x15x32xbf16>,
    %cst_47 = arith.constant 0.000000e+00 : bf16
    %43 = vector.broadcast %cst_47 : bf16 to vector<12x1x32xbf16>
    %c0_48 = arith.constant 0 : index
    %c0_49 = arith.constant 0 : index
    %c32_50 = arith.constant 32 : index
    %44 = vector.load %arg10[%c0_48, %c0_49, %c32_50] : memref<12x16x160xbf16, #tpu.memory_space<vmem>>, vector<12x1x32xbf16>
    tpu.vector_store %arg10[%c0_48, %c0_49, %c32_50], %43 {strides = array<i32>} : memref<12x16x160xbf16, #tpu.memory_space<vmem>>, vector<12x1x32xbf16>,
    %c0_51 = arith.constant 0 : index
    %c0_52 = arith.constant 0 : index
    %c64 = arith.constant 64 : index
    %45 = vector.load %arg10[%c0_51, %c0_52, %c64] : memref<12x16x160xbf16, #tpu.memory_space<vmem>>, vector<12x16x32xbf16>
    tpu.vector_store %arg10[%c0_51, %c0_52, %c64], %36 {strides = array<i32>} : memref<12x16x160xbf16, #tpu.memory_space<vmem>>, vector<12x16x32xbf16>,
    %46 = vector.extract_strided_slice %36 {offsets = [0, 1, 0], sizes = [12, 15, 32], strides = [1, 1, 1]} : vector<12x16x32xbf16> to vector<12x15x32xbf16>
    %c0_53 = arith.constant 0 : index
    %c0_54 = arith.constant 0 : index
    %c96 = arith.constant 96 : index
    %47 = vector.load %arg10[%c0_53, %c0_54, %c96] : memref<12x16x160xbf16, #tpu.memory_space<vmem>>, vector<12x15x32xbf16>
    tpu.vector_store %arg10[%c0_53, %c0_54, %c96], %46 {strides = array<i32>} : memref<12x16x160xbf16, #tpu.memory_space<vmem>>, vector<12x15x32xbf16>,
    %cst_55 = arith.constant 0.000000e+00 : bf16
    %48 = vector.broadcast %cst_55 : bf16 to vector<12x1x32xbf16>
    %c0_56 = arith.constant 0 : index
    %c15 = arith.constant 15 : index
    %c96_57 = arith.constant 96 : index
    %49 = vector.load %arg10[%c0_56, %c15, %c96_57] : memref<12x16x160xbf16, #tpu.memory_space<vmem>>, vector<12x1x32xbf16>
    tpu.vector_store %arg10[%c0_56, %c15, %c96_57], %48 {strides = array<i32>} : memref<12x16x160xbf16, #tpu.memory_space<vmem>>, vector<12x1x32xbf16>,
    %50 = vector.extract_strided_slice %36 {offsets = [0, 2, 0], sizes = [12, 14, 32], strides = [1, 1, 1]} : vector<12x16x32xbf16> to vector<12x14x32xbf16>
    %c0_58 = arith.constant 0 : index
    %c0_59 = arith.constant 0 : index
    %c128 = arith.constant 128 : index
    %51 = vector.load %arg10[%c0_58, %c0_59, %c128] : memref<12x16x160xbf16, #tpu.memory_space<vmem>>, vector<12x14x32xbf16>
    tpu.vector_store %arg10[%c0_58, %c0_59, %c128], %50 {strides = array<i32>} : memref<12x16x160xbf16, #tpu.memory_space<vmem>>, vector<12x14x32xbf16>,
    %cst_60 = arith.constant 0.000000e+00 : bf16
    %52 = vector.broadcast %cst_60 : bf16 to vector<12x2x32xbf16>
    %c0_61 = arith.constant 0 : index
    %c14 = arith.constant 14 : index
    %c128_62 = arith.constant 128 : index
    %53 = vector.load %arg10[%c0_61, %c14, %c128_62] : memref<12x16x160xbf16, #tpu.memory_space<vmem>>, vector<12x2x32xbf16>
    tpu.vector_store %arg10[%c0_61, %c14, %c128_62], %52 {strides = array<i32>} : memref<12x16x160xbf16, #tpu.memory_space<vmem>>, vector<12x2x32xbf16>,
    %c0_i32 = arith.constant 0 : i32
    %54 = arith.cmpi eq, %arg1, %c0_i32 : i32
    %55 = arith.extui %54 : i1 to i32
    %c0_i32_63 = arith.constant 0 : i32
    %56 = arith.cmpi ne, %55, %c0_i32_63 : i32
    scf.if %56 {
      %cst_107 = arith.constant 0.000000e+00 : bf16
      %96 = vector.broadcast %cst_107 : bf16 to vector<2x16x160xbf16>
      %c0_108 = arith.constant 0 : index
      %c0_109 = arith.constant 0 : index
      %c0_110 = arith.constant 0 : index
      %97 = vector.load %arg10[%c0_108, %c0_109, %c0_110] : memref<12x16x160xbf16, #tpu.memory_space<vmem>>, vector<2x16x160xbf16>
      tpu.vector_store %arg10[%c0_108, %c0_109, %c0_110], %96 {strides = array<i32>} : memref<12x16x160xbf16, #tpu.memory_space<vmem>>, vector<2x16x160xbf16>,
    } else {
    }
    %c1_i32 = arith.constant 1 : i32
    %57 = arith.cmpi eq, %arg1, %c1_i32 : i32
    %58 = arith.extui %57 : i1 to i32
    %c0_i32_64 = arith.constant 0 : i32
    %59 = arith.cmpi ne, %58, %c0_i32_64 : i32
    scf.if %59 {
      %cst_107 = arith.constant 0.000000e+00 : bf16
      %96 = vector.broadcast %cst_107 : bf16 to vector<2x16x160xbf16>
      %c10 = arith.constant 10 : index
      %c0_108 = arith.constant 0 : index
      %c0_109 = arith.constant 0 : index
      %97 = vector.load %arg10[%c10, %c0_108, %c0_109] : memref<12x16x160xbf16, #tpu.memory_space<vmem>>, vector<2x16x160xbf16>
      tpu.vector_store %arg10[%c10, %c0_108, %c0_109], %96 {strides = array<i32>} : memref<12x16x160xbf16, #tpu.memory_space<vmem>>, vector<2x16x160xbf16>,
    } else {
    }
    %cst_65 = arith.constant 0.000000e+00 : f32
    %60 = vector.broadcast %cst_65 : f32 to vector<128x3xf32>
    %c0_66 = arith.constant 0 : index
    %c0_67 = arith.constant 0 : index
    %c0_68 = arith.constant 0 : index
    %61 = vector.load %arg10[%c0_66, %c0_67, %c0_68] : memref<12x16x160xbf16, #tpu.memory_space<vmem>>, vector<8x16x160xbf16>
    %62 = vector.shape_cast %61 : vector<8x16x160xbf16> to vector<128x160xbf16>
    %c0_69 = arith.constant 0 : index
    %c0_70 = arith.constant 0 : index
    %c0_71 = arith.constant 0 : index
    %63 = vector.load %arg7[%c0_69, %c0_70, %c0_71] : memref<5x160x3xbf16, #tpu.memory_space<vmem>>, vector<1x160x3xbf16>
    %64 = vector.shape_cast %63 : vector<1x160x3xbf16> to vector<160x3xbf16>
    %cst_72 = arith.constant dense<0.000000e+00> : vector<128x3xf32>
    %65 = tpu.matmul %62, %64, %cst_72 {dimension_numbers = #tpu.dot_dimension_numbers<[1], [0], [0], [1], [0, 0, 1, 1], [], []>} : vector<128x160xbf16>, vector<160x3xbf16>, vector<128x3xf32> -> vector<128x3xf32>
    %66 = arith.addf %60, %65 : vector<128x3xf32>
    %c1_73 = arith.constant 1 : index
    %c0_74 = arith.constant 0 : index
    %c0_75 = arith.constant 0 : index
    %67 = vector.load %arg10[%c1_73, %c0_74, %c0_75] : memref<12x16x160xbf16, #tpu.memory_space<vmem>>, vector<8x16x160xbf16>
    %68 = vector.shape_cast %67 : vector<8x16x160xbf16> to vector<128x160xbf16>
    %c1_76 = arith.constant 1 : index
    %c0_77 = arith.constant 0 : index
    %c0_78 = arith.constant 0 : index
    %69 = vector.load %arg7[%c1_76, %c0_77, %c0_78] : memref<5x160x3xbf16, #tpu.memory_space<vmem>>, vector<1x160x3xbf16>
    %70 = vector.shape_cast %69 : vector<1x160x3xbf16> to vector<160x3xbf16>
    %cst_79 = arith.constant dense<0.000000e+00> : vector<128x3xf32>
    %71 = tpu.matmul %68, %70, %cst_79 {dimension_numbers = #tpu.dot_dimension_numbers<[1], [0], [0], [1], [0, 0, 1, 1], [], []>} : vector<128x160xbf16>, vector<160x3xbf16>, vector<128x3xf32> -> vector<128x3xf32>
    %72 = arith.addf %66, %71 : vector<128x3xf32>
    %c2_80 = arith.constant 2 : index
    %c0_81 = arith.constant 0 : index
    %c0_82 = arith.constant 0 : index
    %73 = vector.load %arg10[%c2_80, %c0_81, %c0_82] : memref<12x16x160xbf16, #tpu.memory_space<vmem>>, vector<8x16x160xbf16>
    %74 = vector.shape_cast %73 : vector<8x16x160xbf16> to vector<128x160xbf16>
    %c2_83 = arith.constant 2 : index
    %c0_84 = arith.constant 0 : index
    %c0_85 = arith.constant 0 : index
    %75 = vector.load %arg7[%c2_83, %c0_84, %c0_85] : memref<5x160x3xbf16, #tpu.memory_space<vmem>>, vector<1x160x3xbf16>
    %76 = vector.shape_cast %75 : vector<1x160x3xbf16> to vector<160x3xbf16>
    %cst_86 = arith.constant dense<0.000000e+00> : vector<128x3xf32>
    %77 = tpu.matmul %74, %76, %cst_86 {dimension_numbers = #tpu.dot_dimension_numbers<[1], [0], [0], [1], [0, 0, 1, 1], [], []>} : vector<128x160xbf16>, vector<160x3xbf16>, vector<128x3xf32> -> vector<128x3xf32>
    %78 = arith.addf %72, %77 : vector<128x3xf32>
    %c3_87 = arith.constant 3 : index
    %c0_88 = arith.constant 0 : index
    %c0_89 = arith.constant 0 : index
    %79 = vector.load %arg10[%c3_87, %c0_88, %c0_89] : memref<12x16x160xbf16, #tpu.memory_space<vmem>>, vector<8x16x160xbf16>
    %80 = vector.shape_cast %79 : vector<8x16x160xbf16> to vector<128x160xbf16>
    %c3_90 = arith.constant 3 : index
    %c0_91 = arith.constant 0 : index
    %c0_92 = arith.constant 0 : index
    %81 = vector.load %arg7[%c3_90, %c0_91, %c0_92] : memref<5x160x3xbf16, #tpu.memory_space<vmem>>, vector<1x160x3xbf16>
    %82 = vector.shape_cast %81 : vector<1x160x3xbf16> to vector<160x3xbf16>
    %cst_93 = arith.constant dense<0.000000e+00> : vector<128x3xf32>
    %83 = tpu.matmul %80, %82, %cst_93 {dimension_numbers = #tpu.dot_dimension_numbers<[1], [0], [0], [1], [0, 0, 1, 1], [], []>} : vector<128x160xbf16>, vector<160x3xbf16>, vector<128x3xf32> -> vector<128x3xf32>
    %84 = arith.addf %78, %83 : vector<128x3xf32>
    %c4_94 = arith.constant 4 : index
    %c0_95 = arith.constant 0 : index
    %c0_96 = arith.constant 0 : index
    %85 = vector.load %arg10[%c4_94, %c0_95, %c0_96] : memref<12x16x160xbf16, #tpu.memory_space<vmem>>, vector<8x16x160xbf16>
    %86 = vector.shape_cast %85 : vector<8x16x160xbf16> to vector<128x160xbf16>
    %c4_97 = arith.constant 4 : index
    %c0_98 = arith.constant 0 : index
    %c0_99 = arith.constant 0 : index
    %87 = vector.load %arg7[%c4_97, %c0_98, %c0_99] : memref<5x160x3xbf16, #tpu.memory_space<vmem>>, vector<1x160x3xbf16>
    %88 = vector.shape_cast %87 : vector<1x160x3xbf16> to vector<160x3xbf16>
    %cst_100 = arith.constant dense<0.000000e+00> : vector<128x3xf32>
    %89 = tpu.matmul %86, %88, %cst_100 {dimension_numbers = #tpu.dot_dimension_numbers<[1], [0], [0], [1], [0, 0, 1, 1], [], []>} : vector<128x160xbf16>, vector<160x3xbf16>, vector<128x3xf32> -> vector<128x3xf32>
    %90 = arith.addf %84, %89 : vector<128x3xf32>
    %c0_101 = arith.constant 0 : index
    %c0_102 = arith.constant 0 : index
    %91 = vector.load %arg8[%c0_101, %c0_102] : memref<1x3xf32, #tpu.memory_space<vmem>>, vector<1x3xf32>
    %92 = vector.broadcast %91 : vector<1x3xf32> to vector<128x3xf32>
    %93 = arith.addf %90, %92 : vector<128x3xf32>
    %94 = vector.shape_cast %93 : vector<128x3xf32> to vector<1x8x16x3xf32>
    %c0_103 = arith.constant 0 : index
    %c0_104 = arith.constant 0 : index
    %c0_105 = arith.constant 0 : index
    %c0_106 = arith.constant 0 : index
    %95 = vector.load %arg9[%c0_103, %c0_104, %c0_105, %c0_106] : memref<1x8x16x3xf32, #tpu.memory_space<vmem>>, vector<1x8x16x3xf32>
    tpu.vector_store %arg9[%c0_103, %c0_104, %c0_105, %c0_106], %94 {strides = array<i32>} : memref<1x8x16x3xf32, #tpu.memory_space<vmem>>, vector<1x8x16x3xf32>,
    return
  }
  func.func @transform_0(%arg0: i32, %arg1: i32) -> (i32, i32, i32, i32) {
    %c2_i32 = arith.constant 2 : i32
    %0 = arith.muli %arg0, %c2_i32 : i32
    %1 = arith.addi %0, %arg1 : i32
    %c0_i32 = arith.constant 0 : i32
    %c0_i32_0 = arith.constant 0 : i32
    %c0_i32_1 = arith.constant 0 : i32
    %c0_i32_2 = arith.constant 0 : i32
    return %1, %c0_i32, %c0_i32_0, %c0_i32_1 : i32, i32, i32, i32
  }
  func.func @transform_1(%arg0: i32, %arg1: i32) -> (i32, i32) {
    %c0_i32 = arith.constant 0 : i32
    %c0_i32_0 = arith.constant 0 : i32
    %c0_i32_1 = arith.constant 0 : i32
    return %c0_i32, %c0_i32_0 : i32, i32
  }
  func.func @transform_2(%arg0: i32, %arg1: i32) -> (i32, i32) {
    %c0_i32 = arith.constant 0 : i32
    %c0_i32_0 = arith.constant 0 : i32
    %c0_i32_1 = arith.constant 0 : i32
    return %c0_i32, %c0_i32_0 : i32, i32
  }
  func.func @transform_3(%arg0: i32, %arg1: i32) -> (i32, i32) {
    %c0_i32 = arith.constant 0 : i32
    %c0_i32_0 = arith.constant 0 : i32
    %c0_i32_1 = arith.constant 0 : i32
    return %c0_i32, %c0_i32_0 : i32, i32
  }
  func.func @transform_4(%arg0: i32, %arg1: i32) -> (i32, i32) {
    %c0_i32 = arith.constant 0 : i32
    %c0_i32_0 = arith.constant 0 : i32
    %c0_i32_1 = arith.constant 0 : i32
    return %c0_i32, %c0_i32_0 : i32, i32
  }
  func.func @transform_5(%arg0: i32, %arg1: i32) -> (i32, i32, i32) {
    %c0_i32 = arith.constant 0 : i32
    %c0_i32_0 = arith.constant 0 : i32
    %c0_i32_1 = arith.constant 0 : i32
    %c0_i32_2 = arith.constant 0 : i32
    return %c0_i32, %c0_i32_0, %c0_i32_1 : i32, i32, i32
  }
  func.func @transform_6(%arg0: i32, %arg1: i32) -> (i32, i32) {
    %c0_i32 = arith.constant 0 : i32
    %c0_i32_0 = arith.constant 0 : i32
    %c0_i32_1 = arith.constant 0 : i32
    return %c0_i32, %c0_i32_0 : i32, i32
  }
  func.func @transform_7(%arg0: i32, %arg1: i32) -> (i32, i32, i32, i32) {
    %c0_i32 = arith.constant 0 : i32
    %c0_i32_0 = arith.constant 0 : i32
    %c0_i32_1 = arith.constant 0 : i32
    return %arg0, %arg1, %c0_i32, %c0_i32_0 : i32, i32, i32, i32
  }
}

</mosaic_0001>

<bundles_post_ra>
// kernel: srcnn_forward_pallas.1
= control target key start
LH: loop header
LB: loop body
LE: loop exit
PB: predicated region body
PF: predicated region fallthrough
CT: control target
= control target key end

     0   :  { %s7199_s24 = smov 0   ;;  %s7201_s25 = smov 0   ;;  %s9282_s0 = inlined_call_operand.vmem [shape: bf16[4,20,20,27], index: 0, kind: input, shape index: {}]   ;;  %s9283_s1 = inlined_call_operand.vmem [shape: bf16[243,64], index: 1, kind: input, shape index: {}]   ;;  %s9284_s2 = inlined_call_operand.vmem [shape: f32[1,64], index: 2, kind: input, shape index: {}]   ;;  %s9285_s3 = inlined_call_operand.vmem [shape: bf16[64,32], index: 3, kind: input, shape index: {}]   ;;  %s9286_s4 = inlined_call_operand.vmem [shape: f32[1,32], index: 4, kind: input, shape index: {}]   ;;  %s9287_s5 = inlined_call_operand.vmem [shape: bf16[5,160,3], index: 5, kind: input, shape index: {}]   ;;  %s9288_s6 = inlined_call_operand.vmem [shape: f32[1,3], index: 6, kind: input, shape index: {}]   ;;  %s9289_s7 = inlined_call_operand.vmem [shape: f32[2,16,16,3], index: 7, kind: output, shape index: {}]  }
   0x1   :  { %s7203_s26 = smov 0   ;;  %s7205_s27 = smov 0  }
   0x2   :  { %s7207_s28 = smov 0  }
   0x3 LB: > { %s26_s29 = sadd.s32 1, %s7134_s26  ;;  %s29_s30 = sadd.s32 1, %s7138_s27  ;;  %s7142_s28 = sphi %s7207_s28, %s17_s28   ;;  %s7138_s27 = sphi %s7205_s27, %s9310_s27   ;;  %s7134_s26 = sphi %s7203_s26, %s9309_s26   ;;  %s7130_s25 = sphi %s7201_s25, %s9308_s25   ;;  %s7126_s24 = sphi %s7199_s24, %s9307_s24  }
   0x4   : > { %p27_p0 = scmp.ge.s32.totalorder %s26_s29, 2  ;;  %p5716_p1 = scmp.ge.s32.totalorder %s7142_s28, 1 }
   0x5   : > { %p259_p2 = scmp.lt.s32.totalorder %s7142_s28, 5 }
   0x6   : > { %s9312_s29 = smov (%p27_p0, %s26_s29), 0  ;;  %s9314_s30 = smov (!%p27_p0, %s29_s30), %s7138_s27 }
   0x7   : > { %p260_p3 = pnand %p5716_p1, %p259_p2  ;;  %p31_p4 = scmp.ge.s32.totalorder %s9314_s30, 2 }
   0x8   : > { %s5717_s8 = sshll.u32 (!%p260_p3), %s7130_s25, 1  ;;  %s5719_s17 = sshll.u32 (!%p260_p3), %s7126_s24, 3 }
   0x9   : > { %s9316_s30 = smov (%p31_p4, %s9314_s30), 0  ;;  %263 = sbr.rel (%p260_p3) target bundleno = 1520 (0x5f0), region = 48 }
   0xa   : > { %s299_s9 = sadd.s32 (!%p260_p3), %s7126_s24, %s5717_s8  ;;  %p308_p6 = scmp.lt.s32.totalorder (!%p260_p3), %s7130_s25, 1 }
   0xb   : > { %p300_p5 = scmp.lt.s32.totalorder (!%p260_p3), %s299_s9, 3  ;;  %p7255_p7 = scmp.lt.s32.totalorder (!%p260_p3), %s5719_s17, 15 }
   0xc   : > { %s7145_s12 = smov (!%p260_p3), 7   ;;  %s7146_s13 = smov (!%p260_p3), 108  }
   0xd   : > { %s7147_s23 = smov (!%p260_p3), 27   ;;  %s7148_s10 = smov (!%p260_p3), 34  }
   0xe   : > { %vm2616_vm0 = vcmask 1040384   ;;  %v6838_v0 = vld [vmem:[%s9283_s1 + $0x78] ss:$0 sps:$4 sm:$0x33]   ;;  %vm2617_vm1 = vcmask 1041408   ;;  %v7144_v1 = vmov 65535  }
   0xf   : > { %v2618_v2 = vsel %vm2616_vm0, 4294967295, %v7144_v1  ;;  %v6841_v4 = vld [vmem:[%s9283_s1 + $0x38] sm:$0xff]   ;;  %s9318_s9 = smov (!%p300_p5, %s299_s9), 3  ;;  %v6842_v6 = vld [vmem:[%s9283_s1 + $0x70] sm:$0xff]   ;;  %v6848_v8 = vld [vmem:[%s9283_s1 + $0x68] sm:$0xff]   ;;  %s9320_s25 = smov (!%p308_p6, %s7130_s25), 1 }
  0x10   : > { %v2619_v3 = vsel %vm2617_vm1, %v2618_v2, 0  ;;  %s6724_s16 = smul.u32 240, %s9318_s9  ;;  %v6845_v7 = vld [vmem:[%s9283_s1 + $0x30] sm:$0xff]   ;;  %v6851_v10 = vld [vmem:[%s9283_s1 + $0x28] sm:$0xff]   ;;  %s9322_s17 = smov (!%p7255_p7, %s5719_s17), 15  ;;  %v6852_v17 = vld [vmem:[%s9283_s1 + $0x60] sm:$0xff]  }
  0x11   : > { %v2621_v5 = vand.u32 %v6838_v0, %v2619_v3  ;;  %s5721_s14 = sshll.u32 %s9320_s25, 5  ;;  %s5720_s15 = sshll.u32 %s9322_s17, 1  ;;  %v6855_v19 = vld [vmem:[%s9283_s1 + $0x20] sm:$0xff]   ;;  %v6856_v22 = vld [vmem:[%s9283_s1 + $0x58] sm:$0xff]   ;;  %v6860_v27 = vld [vmem:[%s9283_s1 + $0x50] sm:$0xff]   ;;  %vm1899_vm2 = vcmask 220160  }
  0x12   : > { %s7253_s22 = scalar_lea.vmem %s9282_s0, %s6724_s16  ;;  %s314_s16 = sadd.s32 %s5721_s14, %s5720_s15  ;;  %v6859_v24 = vld [vmem:[%s9283_s1 + $0x18] sm:$0xff]   ;;  %v6863_v29 = vld [vmem:[%s9283_s1 + $0x10] sm:$0xff]   ;;  %v6864_v33 = vld [vmem:[%s9283_s1 + $0x48] sm:$0xff]   ;;  %vm1972_vm3 = vcmask 441344   ;;  %vm2021_vm4 = vcmask 662528   ;;  %vm2070_vm5 = vcmask 883712  }
  0x13   : > { %6588 = vmatprep.subr.bf16.mxu0 %v2621_v5  ;;  %v6780_v9 = vld [vmem:[%s7253_s22 + $0x3c] sm:$0xfe]   ;;  %v6781_v11 = vld [vmem:[%s7253_s22 + $0x30] sm:$0xfe]   ;;  %s5722_s18 = sshll.u32 %s314_s16, 3  ;;  %s7149_s15 = smov 54  }
  0x14   : > { %6589 = vmatpush3.bf16.msra.mxu0 %v6841_v4  ;;  %1419 = vrot.lane.b32.xlu1 %v6780_v9, %s7145_s12  ;;  %v6782_v12 = vld [vmem:[%s7253_s22 + $0x44] ss:$0 sps:$4 sm:$0x11]   ;;  %v6783_v13 = vld [vmem:[%s7253_s22 + $0x38] ss:$0 sps:$4 sm:$0x11]   ;;  %s7281_s21 = scalar_lea.vmem %s9289_s7, %s5722_s18 }
  0x15   : > { %6590 = vmatprep.subr.bf16.mxu0 %v6842_v6  ;;  %1275 = vrot.lane.b32.xlu0 %v6781_v11, %s7146_s13  ;;  %v6784_v14 = vld [vmem:[%s7253_s22 + $0x14] ss:$0 sps:$4 sm:$0x11]   ;;  %v6785_v15 = vld [vmem:[%s7253_s22 + $0xc] sm:$0xfe]   ;;  %s7150_s19 = smov 61  }
  0x16   : > { %v6786_v16 = vld [vmem:[%s7253_s22 + $0x50] ss:$0 sps:$4 sm:$0x11]   ;;  %v6787_v18 = vld [vmem:[%s7253_s22 + $0x48] sm:$0xfe]   ;;  %s7151_s9 = smov 81  }
  0x17   : > { %v6788_v20 = vld [vmem:[%s7253_s22 + $0x20] ss:$0 sps:$4 sm:$0x11]   ;;  %v6789_v21 = vld [vmem:[%s7253_s22 + $0x18] sm:$0xfe]   ;;  %s7152_s11 = smov 88  }
  0x18   : > { %6591 = vmatpush3.bf16.msra.mxu0 %v6845_v7  ;;  %1421 = vrot.lane.b32.xlu1 %v6782_v12, %s7145_s12  ;;  %v6790_v23 = vld [vmem:[%s7253_s22 + $0x5c] ss:$0 sps:$4 sm:$0x11]   ;;  %v6791_v25 = vld [vmem:[%s7253_s22 + $0x54] sm:$0xfe]   ;;  %v6867_v35 = vld [vmem:[%s9283_s1 + $0x8] sm:$0xff]  }
  0x19   : > { %6592 = vmatprep.subr.bf16.mxu0 %v6848_v8  ;;  %1277 = vrot.lane.b32.xlu0 %v6783_v13, %s7146_s13  ;;  %v6792_v26 = vld [vmem:[%s7253_s22 + $0x2c] ss:$0 sps:$4 sm:$0x11]   ;;  %v6793_v28 = vld [vmem:[%s7253_s22 + $0x24] sm:$0xfe]   ;;  %vm2119_vm6 = vcmask 56320  }
  0x1a   : > { %v6794_v30 = vld [vmem:[%s7253_s22 + $0x68] ss:$0 sps:$4 sm:$0x11]   ;;  %v6795_v31 = vld [vmem:[%s7253_s22 + $0x60] sm:$0xfe]   ;;  %vm2168_vm7 = vcmask 277504  }
  0x1b   : > { %v6796_v32 = vld [vmem:[%s7253_s22 + $0x44] ss:$0 sps:$4 sm:$0x11]   ;;  %v6797_v34 = vld [vmem:[%s7253_s22 + $0x3c] sm:$0xfe]   ;;  %vm2217_vm8 = vcmask 498688  }
  0x1c   : > { %6593 = vmatpush3.bf16.msra.mxu0 %v6851_v10  ;;  %845 = vrot.lane.b32.xlu1 %v6784_v14, %s7147_s23  ;;  %v6798_v36 = vld [vmem:[%s7253_s22 + $0x50] ss:$0 sps:$4 sm:$0x11]   ;;  %v6799_v37 = vld [vmem:[%s7253_s22 + $0x48] sm:$0xfe]   ;;  %v6868_v38 = vld [vmem:[%s9283_s1 + $0x40] sm:$0xff]  }
  0x1d   : > { %843 = vrot.lane.b32.xlu0 %v6785_v15, %s7147_s23  ;;  %6594 = vmatprep.subr.bf16.mxu0 %v6852_v17  ;;  %v6800_v39 = vld [vmem:[%s7253_s22 + $0x20] ss:$0 sps:$4 sm:$0x11]   ;;  %v6801_v41 = vld [vmem:[%s7253_s22 + $0x18] sm:$0xfe]   ;;  %vm2266_vm9 = vcmask 719872  }
  0x1e   : > { %v6871_v40 = vld [vmem:[%s9283_s1] sm:$0xff]   ;;  %v6802_v42 = vld [vmem:[%s7253_s22 + $0x5c] ss:$0 sps:$4 sm:$0x11]   ;;  %v6803_v43 = vld [vmem:[%s7253_s22 + $0x54] sm:$0xfe]  }
  0x1f   : > { %v6804_v44 = vld [vmem:[%s7253_s22 + $0x2c] ss:$0 sps:$4 sm:$0x11]   ;;  %v6805_v45 = vld [vmem:[%s7253_s22 + $0x24] sm:$0xfe]   ;;  %vm2363_vm10 = vcmask 1046528  }
  0x20   : > { %1565 = vrot.lane.b32.xlu1 %v6786_v16, %s7148_s10  ;;  %6595 = vmatpush3.bf16.msra.mxu0 %v6855_v19  ;;  %v6806_v46 = vld [vmem:[%s7253_s22 + $0x68] ss:$0 sps:$4 sm:$0x11]   ;;  %v6807_v47 = vld [vmem:[%s7253_s22 + $0x60] sm:$0xfe]   ;;  %vm2579_vm11 = vcmask 941056  }
  0x21   : > { %1563 = vrot.lane.b32.xlu0 %v6787_v18, %s7148_s10  ;;  %6596 = vmatprep.subr.bf16.mxu0 %v6856_v22  ;;  %v6808_v48 = vld [vmem:[%s7253_s22 + $0x38] ss:$0 sps:$4 sm:$0x11]   ;;  %v6809_v49 = vld [vmem:[%s7253_s22 + $0x30] sm:$0xfe]   ;;  %vm2827_vm12 = vcmask 523264  }
  0x22   : > { %v6810_v50 = vld [vmem:[%s7253_s22 + $0x74] ss:$0 sps:$4 sm:$0x11]   ;;  %v6811_v51 = vld [vmem:[%s7253_s22 + $0x6c] sm:$0xfe]   ;;  %vm3190_vm13 = vcmask 253952  }
  0x23   : > { %v6812_v52 = vld [vmem:[%s7253_s22 + $0x50] ss:$0 sps:$4 sm:$0x11]   ;;  %v6813_v53 = vld [vmem:[%s7253_s22 + $0x48] sm:$0xfe]   ;;  %vm3166_vm14 = vcmask 257024  }
  0x24   : > { %989 = vrot.lane.b32.xlu1 %v6788_v20, %s7149_s15  ;;  %6597 = vmatpush3.bf16.msra.mxu0 %v6859_v24  ;;  %v6814_v54 = vld [vmem:[%s7253_s22 + $0x5c] ss:$0 sps:$4 sm:$0x11]   ;;  %v6815_v55 = vld [vmem:[%s7253_s22 + $0x54] sm:$0xfe]   ;;  %vm3930_vm15 = vcmask 1042432  }
  0x25   : > { %987 = vrot.lane.b32.xlu0 %v6789_v21, %s7149_s15  ;;  %6598 = vmatprep.subr.bf16.mxu0 %v6860_v27  ;;  %v6816_v56 = vld [vmem:[%s7253_s22 + $0x2c] ss:$0 sps:$4 sm:$0x11]   ;;  %v6817_v57 = vld [vmem:[%s7253_s22 + $0x24] sm:$0xfe]   ;;  %vm3931_vm1 = vcmask 1046532  }
  0x26   : > { %v6818_v58 = vld [vmem:[%s7253_s22 + $0x68] ss:$0 sps:$4 sm:$0x11]   ;;  %v6819_v59 = vld [vmem:[%s7253_s22 + $0x60] sm:$0xfe]   ;;  %p6309_p8 = scmp.ne.s32.totalorder %s7126_s24, 0 }
  0x27   : > { %v6820_v60 = vld [vmem:[%s7253_s22 + $0x38] ss:$0 sps:$4 sm:$0x11]   ;;  %v6821_v61 = vld [vmem:[%s7253_s22 + $0x30] sm:$0xfe]  }
  0x28   : > { %1709 = vrot.lane.b32.xlu1 %v6790_v23, %s7150_s19  ;;  %6599 = vmatpush3.bf16.msra.mxu0 %v6863_v29  ;;  %v6822_v62 = vld [vmem:[%s7253_s22 + $0x74] ss:$0 sps:$4 sm:$0x11]   ;;  %v6823_v63 = vld [vmem:[%s7253_s22 + $0x6c] sm:$0xfe]  }
  0x29   : > { %1707 = vrot.lane.b32.xlu0 %v6791_v25, %s7150_s19  ;;  %6600 = vmatprep.subr.bf16.mxu0 %v6864_v33  ;;  %v6824_v0 = vld [vmem:[%s7253_s22 + $0x44] ss:$0 sps:$4 sm:$0x11]   ;;  %v6825_v1 = vld [vmem:[%s7253_s22 + $0x3c] sm:$0xfe]  }
  0x2a   : > { %v6826_v2 = vld [vmem:[%s7253_s22 + $0x80] ss:$0 sps:$4 sm:$0x11]   ;;  %v6827_v3 = vld [vmem:[%s7253_s22 + $0x78] sm:$0xfe]  }
  0x2b   : > { %v6828_v4 = vld [vmem:[%s7253_s22 + $0x5c] ss:$0 sps:$4 sm:$0x11]   ;;  %v6829_v5 = vld [vmem:[%s7253_s22 + $0x54] sm:$0xfe]  }
  0x2c   : > { %1133 = vrot.lane.b32.xlu1 %v6792_v26, %s7151_s9  ;;  %6601 = vmatpush3.bf16.msra.mxu0 %v6867_v35  ;;  %v6830_v6 = vld [vmem:[%s7253_s22 + $0x68] ss:$0 sps:$4 sm:$0x11]   ;;  %v6831_v7 = vld [vmem:[%s7253_s22 + $0x60] sm:$0xfe]  }
  0x2d   : > { %1131 = vrot.lane.b32.xlu0 %v6793_v28, %s7151_s9  ;;  %6602 = vmatprep.subr.bf16.mxu0 %v6868_v38  ;;  %v6832_v8 = vld [vmem:[%s7253_s22 + $0x38] ss:$0 sps:$4 sm:$0x11]   ;;  %v6833_v9 = vld [vmem:[%s7253_s22 + $0x30] sm:$0xfe]  }
  0x2e   : > { %v6834_v10 = vld [vmem:[%s7253_s22 + $0x74] ss:$0 sps:$4 sm:$0x11]   ;;  %v6835_v11 = vld [vmem:[%s7253_s22 + $0x6c] sm:$0xfe]  }
  0x2f   : > { %v6836_v12 = vld [vmem:[%s7253_s22 + $0x44] ss:$0 sps:$4 sm:$0x11]   ;;  %v6837_v13 = vld [vmem:[%s7253_s22 + $0x3c] sm:$0xfe]  }
  0x30   : > { %1853 = vrot.lane.b32.xlu1 %v6794_v30, %s7152_s11  ;;  %6603 = vmatpush3.bf16.msra.mxu0 %v6871_v40  ;;  %v6839_v14 = vld [vmem:[%s7253_s22 + $0x80] ss:$0 sps:$4 sm:$0x11]   ;;  %v6840_v15 = vld [vmem:[%s7253_s22 + $0x78] sm:$0xfe]  }
  0x31   : > { %1851 = vrot.lane.b32.xlu0 %v6795_v31, %s7152_s11  ;;  %v6843_v18 = vld [vmem:[%s7253_s22 + $0x50] ss:$0 sps:$4 sm:$0x11]   ;;  %v6844_v19 = vld [vmem:[%s7253_s22 + $0x48] sm:$0xfe]  }
  0x32   : > { %v6849_v22 = vld [vmem:[%s7253_s22 + $0x8c] ss:$0 sps:$4 sm:$0x11]   ;;  %v6850_v23 = vld [vmem:[%s7253_s22 + $0x84] sm:$0xfe]  }
  0x33   : > { %v6853_v26 = vld [vmem:[%s7253_s22 + $0x68] ss:$0 sps:$4 sm:$0x11]   ;;  %v6854_v27 = vld [vmem:[%s7253_s22 + $0x60] sm:$0xfe]  }
  0x34   : > { %1281 = vrot.lane.b32.xlu1 %v6796_v32, %s7146_s13  ;;  %v6857_v30 = vld [vmem:[%s7253_s22 + $0x74] ss:$0 sps:$4 sm:$0x11]   ;;  %v6858_v31 = vld [vmem:[%s7253_s22 + $0x6c] sm:$0xfe]  }
  0x35   : > { %1279 = vrot.lane.b32.xlu0 %v6797_v34, %s7146_s13  ;;  %v6846_v33 = vld [vmem:[%s7253_s22 + $0x8] ss:$0 sps:$4 sm:$0x11]   ;;  %v6861_v35 = vld [vmem:[%s7253_s22 + $0x44] ss:$0 sps:$4 sm:$0x11]  }
  0x36   : > { %v6865_v40 = vld [vmem:[%s7253_s22 + $0x80] ss:$0 sps:$4 sm:$0x11]  }
  0x38   : > { %1425 = vrot.lane.b32.xlu1 %v6798_v36, %s7145_s12  ;;  %v6862_v36 = vld [vmem:[%s7253_s22 + $0x3c] sm:$0xfe]  }
  0x39   : > { %1423 = vrot.lane.b32.xlu0 %v6799_v37, %s7145_s12  ;;  %v6847_v37 = vld [vmem:[%s7253_s22] sm:$0xfe]  }
  0x3c   : > { %849 = vrot.lane.b32.xlu1 %v6800_v39, %s7147_s23 }
  0x3d   : > { %847 = vrot.lane.b32.xlu0 %v6801_v41, %s7147_s23 }
  0x40   : > { %1569 = vrot.lane.b32.xlu1 %v6802_v42, %s7148_s10  ;;  %v6866_v42 = vld [vmem:[%s7253_s22 + $0x78] sm:$0xfe]  }
  0x41   : > { %1567 = vrot.lane.b32.xlu0 %v6803_v43, %s7148_s10 }
  0x44   : > { %993 = vrot.lane.b32.xlu1 %v6804_v44, %s7149_s15 }
  0x45   : > { %991 = vrot.lane.b32.xlu0 %v6805_v45, %s7149_s15 }
  0x48   : > { %1713 = vrot.lane.b32.xlu1 %v6806_v46, %s7150_s19 }
  0x49   : > { %1711 = vrot.lane.b32.xlu0 %v6807_v47, %s7150_s19 }
  0x4c   : > { %1137 = vrot.lane.b32.xlu1 %v6808_v48, %s7151_s9 }
  0x4d   : > { %1135 = vrot.lane.b32.xlu0 %v6809_v49, %s7151_s9  ;;  %v6869_v49 = vld [vmem:[%s7253_s22 + $0x50] ss:$0 sps:$4 sm:$0x11]  }
  0x50   : > { %1857 = vrot.lane.b32.xlu1 %v6810_v50, %s7152_s11 }
  0x51   : > { %1855 = vrot.lane.b32.xlu0 %v6811_v51, %s7152_s11 }
  0x54   : > { %1285 = vrot.lane.b32.xlu1 %v6812_v52, %s7146_s13 }
  0x55   : > { %1283 = vrot.lane.b32.xlu0 %v6813_v53, %s7146_s13 }
  0x58   : > { %1429 = vrot.lane.b32.xlu1 %v6814_v54, %s7145_s12 }
  0x59   : > { %1427 = vrot.lane.b32.xlu0 %v6815_v55, %s7145_s12 }
  0x5c   : > { %853 = vrot.lane.b32.xlu1 %v6816_v56, %s7147_s23  ;;  %v6870_v56 = vld [vmem:[%s7253_s22 + $0x48] sm:$0xfe]  }
  0x5d   : > { %851 = vrot.lane.b32.xlu0 %v6817_v57, %s7147_s23 }
  0x60   : > { %1573 = vrot.lane.b32.xlu1 %v6818_v58, %s7148_s10 }
  0x61   : > { %1571 = vrot.lane.b32.xlu0 %v6819_v59, %s7148_s10 }
  0x64   : > { %997 = vrot.lane.b32.xlu1 %v6820_v60, %s7149_s15 }
  0x65   : > { %995 = vrot.lane.b32.xlu0 %v6821_v61, %s7149_s15 }
  0x68   : > { %1717 = vrot.lane.b32.xlu1 %v6822_v62, %s7150_s19 }
  0x69   : > { %1715 = vrot.lane.b32.xlu0 %v6823_v63, %s7150_s19 }
  0x6c   : > { %1141 = vrot.lane.b32.xlu1 %v6824_v0, %s7151_s9  ;;  %v6872_v0 = vld [vmem:[%s7253_s22 + $0x8c] ss:$0 sps:$4 sm:$0x11]  }
  0x6d   : > { %1139 = vrot.lane.b32.xlu0 %v6825_v1, %s7151_s9 }
  0x70   : > { %1861 = vrot.lane.b32.xlu1 %v6826_v2, %s7152_s11 }
  0x71   : > { %1859 = vrot.lane.b32.xlu0 %v6827_v3, %s7152_s11 }
  0x74   : > { %1289 = vrot.lane.b32.xlu1 %v6828_v4, %s7146_s13 }
  0x75   : > { %1287 = vrot.lane.b32.xlu0 %v6829_v5, %s7146_s13  ;;  %v6873_v5 = vld [vmem:[%s7253_s22 + $0x84] sm:$0xfe]  }
  0x78   : > { %1433 = vrot.lane.b32.xlu1 %v6830_v6, %s7145_s12 }
  0x79   : > { %1431 = vrot.lane.b32.xlu0 %v6831_v7, %s7145_s12 }
  0x7c   : > { %857 = vrot.lane.b32.xlu1 %v6832_v8, %s7147_s23 }
  0x7d   : > { %855 = vrot.lane.b32.xlu0 %v6833_v9, %s7147_s23 }
  0x80   : > { %1577 = vrot.lane.b32.xlu1 %v6834_v10, %s7148_s10  ;;  %v6874_v10 = vld [vmem:[%s7253_s22 + $0x5c] ss:$0 sps:$4 sm:$0x11]  }
  0x81   : > { %1575 = vrot.lane.b32.xlu0 %v6835_v11, %s7148_s10  ;;  %v6875_v11 = vld [vmem:[%s7253_s22 + $0x54] sm:$0xfe]  }
  0x84   : > { %1001 = vrot.lane.b32.xlu1 %v6836_v12, %s7149_s15 }
  0x85   : > { %999 = vrot.lane.b32.xlu0 %v6837_v13, %s7149_s15 }
  0x86   : > { %v1420_v16 = vpop.permute.xlu1 %1419 }
  0x87   : > { %v1276_v17 = vpop.permute.xlu0 %1275 }
  0x88   : > { %1721 = vrot.lane.b32.xlu1 %v6839_v14, %s7150_s19  ;;  %v2121_v53 = vsel %vm2119_vm6, %v1276_v17, %v1420_v16  ;;  %v6878_v14 = vld [vmem:[%s7253_s22 + $0x98] ss:$0 sps:$4 sm:$0x11]  }
  0x89   : > { %1719 = vrot.lane.b32.xlu0 %v6840_v15, %s7150_s19  ;;  %v6879_v15 = vld [vmem:[%s7253_s22 + $0x90] sm:$0xfe]  }
  0x8a   : > { %v1422_v20 = vpop.permute.xlu1 %1421 }
  0x8b   : > { %v1278_v21 = vpop.permute.xlu0 %1277 }
  0x8c   : > { %1145 = vrot.lane.b32.xlu1 %v6843_v18, %s7151_s9  ;;  %v2123_v50 = vsel %vm2119_vm6, %v1278_v21, %v1422_v20  ;;  %v6880_v18 = vld [vmem:[%s7253_s22 + $0x74] ss:$0 sps:$4 sm:$0x11]  }
  0x8d   : > { %1143 = vrot.lane.b32.xlu0 %v6844_v19, %s7151_s9  ;;  %v6881_v19 = vld [vmem:[%s7253_s22 + $0x6c] sm:$0xfe]  }
  0x8e   : > { %v846_v24 = vpop.permute.xlu1 %845 }
  0x8f   : > { %v844_v25 = vpop.permute.xlu0 %843  ;;  %v1905_v41 = vsel %vm1899_vm2, %v6846_v33, %v846_v24  ;;  %v6887_v33 = vld [vmem:[%s7253_s22 + $0x84] sm:$0xfe]  }
  0x90   : > { %1865 = vrot.lane.b32.xlu1 %v6849_v22, %s7152_s11  ;;  %v1902_v43 = vsel %vm1899_vm2, %v6847_v37, %v844_v25  ;;  %v6882_v22 = vld [vmem:[%s7253_s22 + $0x80] ss:$0 sps:$4 sm:$0x11]   ;;  %v6876_v25 = vld [vmem:[%s7253_s22 + $0x14] ss:$0 sps:$4 sm:$0x11]  }
  0x91   : > { %1863 = vrot.lane.b32.xlu0 %v6850_v23, %s7152_s11  ;;  %v6883_v23 = vld [vmem:[%s7253_s22 + $0x78] sm:$0xfe]  }
  0x92   : > { %v1566_v28 = vpop.permute.xlu1 %1565 }
  0x93   : > { %v1564_v29 = vpop.permute.xlu0 %1563  ;;  %v2172_v54 = vsel %vm2168_vm7, %v2123_v50, %v1566_v28  ;;  %v6884_v28 = vld [vmem:[%s7253_s22 + $0x50] ss:$0 sps:$4 sm:$0x11]  }
  0x94   : > { %1293 = vrot.lane.b32.xlu1 %v6853_v26, %s7146_s13  ;;  %v2170_v57 = vsel %vm2168_vm7, %v2121_v53, %v1564_v29  ;;  %v6885_v29 = vld [vmem:[%s7253_s22 + $0x48] sm:$0xfe]  }
  0x95   : > { %1291 = vrot.lane.b32.xlu0 %v6854_v27, %s7146_s13  ;;  %v6877_v27 = vld [vmem:[%s7253_s22 + $0xc] sm:$0xfe]  }
  0x96   : > { %v990_v32 = vpop.permute.xlu1 %989 }
  0x97   : > { %v988_v34 = vpop.permute.xlu0 %987  ;;  %v1976_v44 = vsel %vm1972_vm3, %v1905_v41, %v990_v32  ;;  %v6886_v32 = vld [vmem:[%s7253_s22 + $0x8c] ss:$0 sps:$4 sm:$0x11]   ;;  %v6888_v41 = vld [vmem:[%s7253_s22 + $0x5c] ss:$0 sps:$4 sm:$0x11]  }
  0x98   : > { %1437 = vrot.lane.b32.xlu1 %v6857_v30, %s7145_s12  ;;  %v1974_v46 = vsel %vm1972_vm3, %v1902_v43, %v988_v34 }
  0x99   : > { %1435 = vrot.lane.b32.xlu0 %v6858_v31, %s7145_s12 }
  0x9a   : > { %v1710_v38 = vpop.permute.xlu1 %1709 }
  0x9b   : > { %v1708_v39 = vpop.permute.xlu0 %1707  ;;  %v2221_v58 = vsel %vm2217_vm8, %v2172_v54, %v1710_v38 }
  0x9c   : > { %861 = vrot.lane.b32.xlu1 %v6861_v35, %s7147_s23  ;;  %v2219_v60 = vsel %vm2217_vm8, %v2170_v57, %v1708_v39  ;;  %v6891_v57 = vld [vmem:[%s7253_s22 + $0x90] sm:$0xfe]  }
  0x9d   : > { %859 = vrot.lane.b32.xlu0 %v6862_v36, %s7147_s23 }
  0x9e   : > { %v1134_v45 = vpop.permute.xlu1 %1133 }
  0x9f   : > { %v2025_v47 = vsel %vm2021_vm4, %v1976_v44, %v1134_v45  ;;  %v1132_v48 = vpop.permute.xlu0 %1131 }
  0xa0   : > { %v2074_v51 = vsel %vm2070_vm5, %v2025_v47, %v1278_v21  ;;  %v2023_v52 = vsel %vm2021_vm4, %v1974_v46, %v1132_v48  ;;  %1581 = vrot.lane.b32.xlu1 %v6865_v40, %s7148_s10  ;;  %v6889_v48 = vld [vmem:[%s7253_s22 + $0x54] sm:$0xfe]  }
  0xa1   : > { %v2072_v55 = vsel %vm2070_vm5, %v2023_v52, %v1276_v17  ;;  %1579 = vrot.lane.b32.xlu0 %v6866_v42, %s7148_s10  ;;  %v2365_v61 = vrot.slane %v2074_v51, 1 }
  0xa2   : > { %v1854_v59 = vpop.permute.xlu1 %1853  ;;  %v2364_v1 = vrot.slane %v2072_v55, 1 }
  0xa3   : > { %v2270_v62 = vsel %vm2266_vm9, %v2221_v58, %v1854_v59  ;;  %v1852_v63 = vpop.permute.xlu0 %1851 }
  0xa4   : > { %v2368_v2 = vrot.slane %v2270_v62, 1  ;;  %v2268_v3 = vsel %vm2266_vm9, %v2219_v60, %v1852_v63  ;;  %1005 = vrot.lane.b32.xlu1 %v6869_v49, %s7149_s15  ;;  %v2366_v9 = vsel %vm2363_vm10, %v2364_v1, %v2365_v61  ;;  %v6892_v1 = vld [vmem:[%s7253_s22 + $0x68] ss:$0 sps:$4 sm:$0x11]  }
  0xa5   : > { %v2367_v4 = vrot.slane %v2268_v3, 1  ;;  %1003 = vrot.lane.b32.xlu0 %v6870_v56, %s7149_s15  ;;  %v6890_v56 = vld [vmem:[%s7253_s22 + $0x98] ss:$0 sps:$4 sm:$0x11]  }
  0xa6   : > { %v1282_v6 = vpop.permute.xlu1 %1281 }
  0xa7   : > { %v1280_v7 = vpop.permute.xlu0 %1279  ;;  %v2369_v8 = vsel %vm2363_vm10, %v2367_v4, %v2368_v2  ;;  %v6893_v2 = vld [vmem:[%s7253_s22 + $0x60] sm:$0xfe]  }
  0xa8   : > { %6244 = vmatprep.mubr.msk.bf16.mxu0 %vm2579_vm11, %v2369_v8  ;;  %1725 = vrot.lane.b32.xlu1 %v6872_v0, %s7150_s19 }
  0xa9   : > { %1723 = vrot.lane.b32.xlu0 %v6873_v5, %s7150_s19  ;;  %2656 = vmatmul.mubr.bf16.vlgmr.msra.gmra.mxu0 %v2366_v9 }
  0xaa   : > { %v1426_v12 = vpop.permute.xlu1 %1425 }
  0xab   : > { %v1424_v13 = vpop.permute.xlu0 %1423  ;;  %v2127_v42 = vsel %vm2119_vm6, %v1282_v6, %v1426_v12 }
  0xac   : > { %1149 = vrot.lane.b32.xlu1 %v6874_v10, %s7151_s9  ;;  %v2125_v45 = vsel %vm2119_vm6, %v1280_v7, %v1424_v13  ;;  %v6898_v10 = vld [vmem:[%s7253_s22 + $0x80] ss:$0 sps:$4 sm:$0x11]  }
  0xad   : > { %1147 = vrot.lane.b32.xlu0 %v6875_v11, %s7151_s9  ;;  %v6899_v11 = vld [vmem:[%s7253_s22 + $0x78] sm:$0xfe]  }
  0xae   : > { %v850_v16 = vpop.permute.xlu1 %849 }
  0xaf   : > { %v848_v17 = vpop.permute.xlu0 %847  ;;  %v1911_v34 = vsel %vm1899_vm2, %v6876_v25, %v850_v16  ;;  %v6905_v25 = vld [vmem:[%s7253_s22 + $0x90] sm:$0xfe]  }
  0xb0   : > { %1869 = vrot.lane.b32.xlu1 %v6878_v14, %s7152_s11  ;;  %v1908_v35 = vsel %vm1899_vm2, %v6877_v27, %v848_v17  ;;  %v6900_v14 = vld [vmem:[%s7253_s22 + $0x8c] ss:$0 sps:$4 sm:$0x11]   ;;  %v6894_v17 = vld [vmem:[%s7253_s22 + $0x20] ss:$0 sps:$4 sm:$0x11]  }
  0xb1   : > { %1867 = vrot.lane.b32.xlu0 %v6879_v15, %s7152_s11  ;;  %v6901_v15 = vld [vmem:[%s7253_s22 + $0x84] sm:$0xfe]  }
  0xb2   : > { %v1570_v20 = vpop.permute.xlu1 %1569 }
  0xb3   : > { %v1568_v21 = vpop.permute.xlu0 %1567  ;;  %v2176_v46 = vsel %vm2168_vm7, %v2127_v42, %v1570_v20  ;;  %v6903_v20 = vld [vmem:[%s7253_s22 + $0x54] sm:$0xfe]  }
  0xb4   : > { %1297 = vrot.lane.b32.xlu1 %v6880_v18, %s7146_s13  ;;  %v2174_v49 = vsel %vm2168_vm7, %v2125_v45, %v1568_v21  ;;  %v6895_v21 = vld [vmem:[%s7253_s22 + $0x18] sm:$0xfe]  }
  0xb5   : > { %1295 = vrot.lane.b32.xlu0 %v6881_v19, %s7146_s13  ;;  %v6902_v19 = vld [vmem:[%s7253_s22 + $0x5c] ss:$0 sps:$4 sm:$0x11]  }
  0xb6   : > { %v994_v24 = vpop.permute.xlu1 %993 }
  0xb7   : > { %v992_v26 = vpop.permute.xlu0 %991  ;;  %v1980_v36 = vsel %vm1972_vm3, %v1911_v34, %v994_v24  ;;  %v6904_v24 = vld [vmem:[%s7253_s22 + $0x98] ss:$0 sps:$4 sm:$0x11]  }
  0xb8   : > { %1441 = vrot.lane.b32.xlu1 %v6882_v22, %s7145_s12  ;;  %v1978_v38 = vsel %vm1972_vm3, %v1908_v35, %v992_v26 }
  0xb9   : > { %1439 = vrot.lane.b32.xlu0 %v6883_v23, %s7145_s12 }
  0xba   : > { %v1714_v30 = vpop.permute.xlu1 %1713 }
  0xbb   : > { %v1712_v31 = vpop.permute.xlu0 %1711  ;;  %v2225_v50 = vsel %vm2217_vm8, %v2176_v46, %v1714_v30 }
  0xbc   : > { %865 = vrot.lane.b32.xlu1 %v6884_v28, %s7147_s23  ;;  %v2223_v52 = vsel %vm2217_vm8, %v2174_v49, %v1712_v31  ;;  %v6909_v49 = vld [vmem:[%s7253_s22 + $0x9c] sm:$0xfe]  }
  0xbd   : > { %863 = vrot.lane.b32.xlu0 %v6885_v29, %s7147_s23 }
  0xbe   : > { %v1138_v37 = vpop.permute.xlu1 %1137 }
  0xbf   : > { %v2029_v39 = vsel %vm2021_vm4, %v1980_v36, %v1138_v37  ;;  %v1136_v40 = vpop.permute.xlu0 %1135 }
  0xc0   : > { %v2078_v43 = vsel %vm2070_vm5, %v2029_v39, %v1282_v6  ;;  %v2027_v44 = vsel %vm2021_vm4, %v1978_v38, %v1136_v40  ;;  %1585 = vrot.lane.b32.xlu1 %v6886_v32, %s7148_s10  ;;  %v6896_v6 = vld [vmem:[%s7253_s22 + $0xa4] ss:$0 sps:$4 sm:$0x11]  }
  0xc1   : > { %v2076_v47 = vsel %vm2070_vm5, %v2027_v44, %v1280_v7  ;;  %1583 = vrot.lane.b32.xlu0 %v6887_v33, %s7148_s10  ;;  %v2371_v53 = vrot.slane %v2078_v43, 1  ;;  %v6897_v7 = vld [vmem:[%s7253_s22 + $0x9c] sm:$0xfe]   ;;  %v6906_v33 = vld [vmem:[%s7253_s22 + $0x68] ss:$0 sps:$4 sm:$0x11]  }
  0xc2   : > { %v1858_v51 = vpop.permute.xlu1 %1857  ;;  %v2370_v58 = vrot.slane %v2076_v47, 1  ;;  %v6907_v40 = vld [vmem:[%s7253_s22 + $0x60] sm:$0xfe]  }
  0xc3   : > { %v2274_v54 = vsel %vm2266_vm9, %v2225_v50, %v1858_v51  ;;  %v1856_v55 = vpop.permute.xlu0 %1855 }
  0xc4   : > { %v2374_v59 = vrot.slane %v2274_v54, 1  ;;  %v2272_v60 = vsel %vm2266_vm9, %v2223_v52, %v1856_v55  ;;  %1009 = vrot.lane.b32.xlu1 %v6888_v41, %s7149_s15  ;;  %v2372_v3 = vsel %vm2363_vm10, %v2370_v58, %v2371_v53  ;;  %v6910_v58 = vld [vmem:[%s7253_s22 + $0x74] ss:$0 sps:$4 sm:$0x11]  }
  0xc5   : > { %v2373_v61 = vrot.slane %v2272_v60, 1  ;;  %1007 = vrot.lane.b32.xlu0 %v6889_v48, %s7149_s15  ;;  %v6908_v48 = vld [vmem:[%s7253_s22 + $0xa4] ss:$0 sps:$4 sm:$0x11]  }
  0xc6   : > { %v1286_v62 = vpop.permute.xlu1 %1285 }
  0xc7   : > { %v1284_v63 = vpop.permute.xlu0 %1283  ;;  %v2375_v0 = vsel %vm2363_vm10, %v2373_v61, %v2374_v59  ;;  %v6911_v59 = vld [vmem:[%s7253_s22 + $0x6c] sm:$0xfe]  }
  0xc8   : > { %6245 = vmatprep.mubr.msk.bf16.mxu0 %vm2579_vm11, %v2375_v0  ;;  %1729 = vrot.lane.b32.xlu1 %v6890_v56, %s7150_s19 }
  0xc9   : > { %1727 = vrot.lane.b32.xlu0 %v6891_v57, %s7150_s19  ;;  %2664 = vmatmul.mubr.bf16.gmra.mxu0 %v2372_v3  ;;  %v6917_v3 = vld [vmem:[%s7253_s22 + $0x84] sm:$0xfe]  }
  0xca   : > { %v1430_v4 = vpop.permute.xlu1 %1429 }
  0xcb   : > { %v1428_v5 = vpop.permute.xlu0 %1427  ;;  %v2131_v34 = vsel %vm2119_vm6, %v1286_v62, %v1430_v4 }
  0xcc   : > { %1153 = vrot.lane.b32.xlu1 %v6892_v1, %s7151_s9  ;;  %v2129_v37 = vsel %vm2119_vm6, %v1284_v63, %v1428_v5 }
  0xcd   : > { %1151 = vrot.lane.b32.xlu0 %v6893_v2, %s7151_s9  ;;  %v6916_v2 = vld [vmem:[%s7253_s22 + $0x8c] ss:$0 sps:$4 sm:$0x11]  }
  0xce   : > { %v854_v8 = vpop.permute.xlu1 %853 }
  0xcf   : > { %v852_v9 = vpop.permute.xlu0 %851  ;;  %v1917_v26 = vsel %vm1899_vm2, %v6894_v17, %v854_v8 }
  0xd0   : > { %1873 = vrot.lane.b32.xlu1 %v6896_v6, %s7152_s11  ;;  %v1914_v27 = vsel %vm1899_vm2, %v6895_v21, %v852_v9  ;;  %v6918_v6 = vld [vmem:[%s7253_s22 + $0x98] ss:$0 sps:$4 sm:$0x11]  }
  0xd1   : > { %1871 = vrot.lane.b32.xlu0 %v6897_v7, %s7152_s11  ;;  %v6919_v7 = vld [vmem:[%s7253_s22 + $0x90] sm:$0xfe]  }
  0xd2   : > { %v1574_v12 = vpop.permute.xlu1 %1573 }
  0xd3   : > { %v1572_v13 = vpop.permute.xlu0 %1571  ;;  %v2180_v38 = vsel %vm2168_vm7, %v2131_v34, %v1574_v12  ;;  %v6921_v12 = vld [vmem:[%s7253_s22 + $0x60] sm:$0xfe]  }
  0xd4   : > { %1301 = vrot.lane.b32.xlu1 %v6898_v10, %s7146_s13  ;;  %v2178_v41 = vsel %vm2168_vm7, %v2129_v37, %v1572_v13  ;;  %v6920_v10 = vld [vmem:[%s7253_s22 + $0x68] ss:$0 sps:$4 sm:$0x11]  }
  0xd5   : > { %1299 = vrot.lane.b32.xlu0 %v6899_v11, %s7146_s13  ;;  %v6912_v11 = vld [vmem:[%s7253_s22 + $0x2c] ss:$0 sps:$4 sm:$0x11]   ;;  %v6913_v13 = vld [vmem:[%s7253_s22 + $0x24] sm:$0xfe]  }
  0xd6   : > { %v998_v16 = vpop.permute.xlu1 %997 }
  0xd7   : > { %v996_v18 = vpop.permute.xlu0 %995  ;;  %v1984_v28 = vsel %vm1972_vm3, %v1917_v26, %v998_v16  ;;  %v6922_v16 = vld [vmem:[%s7253_s22 + $0xa4] ss:$0 sps:$4 sm:$0x11]  }
  0xd8   : > { %1445 = vrot.lane.b32.xlu1 %v6900_v14, %s7145_s12  ;;  %v1982_v30 = vsel %vm1972_vm3, %v1914_v27, %v996_v18  ;;  %v6923_v18 = vld [vmem:[%s7253_s22 + $0x9c] sm:$0xfe]   ;;  %v6924_v27 = vld [vmem:[%s7253_s22 + $0x74] ss:$0 sps:$4 sm:$0x11]  }
  0xd9   : > { %1443 = vrot.lane.b32.xlu0 %v6901_v15, %s7145_s12 }
  0xda   : > { %v1718_v22 = vpop.permute.xlu1 %1717 }
  0xdb   : > { %v1716_v23 = vpop.permute.xlu0 %1715  ;;  %v2229_v42 = vsel %vm2217_vm8, %v2180_v38, %v1718_v22 }
  0xdc   : > { %869 = vrot.lane.b32.xlu1 %v6902_v19, %s7147_s23  ;;  %v2227_v44 = vsel %vm2217_vm8, %v2178_v41, %v1716_v23 }
  0xdd   : > { %867 = vrot.lane.b32.xlu0 %v6903_v20, %s7147_s23 }
  0xde   : > { %v1142_v29 = vpop.permute.xlu1 %1141 }
  0xdf   : > { %v2033_v31 = vsel %vm2021_vm4, %v1984_v28, %v1142_v29  ;;  %v1140_v32 = vpop.permute.xlu0 %1139 }
  0xe0   : > { %v2082_v35 = vsel %vm2070_vm5, %v2033_v31, %v1286_v62  ;;  %v2031_v36 = vsel %vm2021_vm4, %v1982_v30, %v1140_v32  ;;  %1589 = vrot.lane.b32.xlu1 %v6904_v24, %s7148_s10  ;;  %v6914_v62 = vld [vmem:[%s7253_s22 + $0xb0] ss:$0 sps:$4 sm:$0x11]  }
  0xe1   : > { %v2080_v39 = vsel %vm2070_vm5, %v2031_v36, %v1284_v63  ;;  %1587 = vrot.lane.b32.xlu0 %v6905_v25, %s7148_s10  ;;  %v2377_v45 = vrot.slane %v2082_v35, 1  ;;  %v6915_v63 = vld [vmem:[%s7253_s22 + $0xa8] sm:$0xfe]  }
  0xe2   : > { %v1862_v43 = vpop.permute.xlu1 %1861  ;;  %v2376_v50 = vrot.slane %v2080_v39, 1  ;;  %v6925_v32 = vld [vmem:[%s7253_s22 + $0x6c] sm:$0xfe]  }
  0xe3   : > { %v2278_v46 = vsel %vm2266_vm9, %v2229_v42, %v1862_v43  ;;  %v1860_v47 = vpop.permute.xlu0 %1859  ;;  %v6926_v43 = vld [vmem:[%s7253_s22 + $0xb0] ss:$0 sps:$4 sm:$0x11]  }
  0xe4   : > { %v2380_v51 = vrot.slane %v2278_v46, 1  ;;  %v2276_v52 = vsel %vm2266_vm9, %v2227_v44, %v1860_v47  ;;  %1013 = vrot.lane.b32.xlu1 %v6906_v33, %s7149_s15  ;;  %v2378_v57 = vsel %vm2363_vm10, %v2376_v50, %v2377_v45  ;;  %v6927_v45 = vld [vmem:[%s7253_s22 + $0xa8] sm:$0xfe]   ;;  %v6998_v47 = vld [vmem:[%s9285_s3 + $0x18] sm:$0xff]  }
  0xe5   : > { %v2379_v53 = vrot.slane %v2276_v52, 1  ;;  %1011 = vrot.lane.b32.xlu0 %v6907_v40, %s7149_s15  ;;  %v6929_v52 = vld [vmem:[%s7253_s22 + $0x78] sm:$0xfe]   ;;  %6692 = vmatprep.subr.bf16.mxu1 %v6998_v47 }
  0xe6   : > { %v1290_v54 = vpop.permute.xlu1 %1289  ;;  %6693 = vmatpush3.bf16.msra.mxu1 %v6998_v47  ;;  %v6947_v47 = vld [vmem:[%s7253_s22 + $0x84] sm:$0xfe]  }
  0xe7   : > { %v1288_v55 = vpop.permute.xlu0 %1287  ;;  %v2381_v56 = vsel %vm2363_vm10, %v2379_v53, %v2380_v51  ;;  %v6928_v51 = vld [vmem:[%s7253_s22 + $0x80] ss:$0 sps:$4 sm:$0x11]  }
  0xe8   : > { %6246 = vmatprep.mubr.msk.bf16.mxu0 %vm2579_vm11, %v2381_v56  ;;  %1733 = vrot.lane.b32.xlu1 %v6908_v48, %s7150_s19  ;;  %v6932_v56 = vld [vmem:[%s7253_s22 + $0xbc] ss:$0 sps:$4 sm:$0x11]  }
  0xe9   : > { %1731 = vrot.lane.b32.xlu0 %v6909_v49, %s7150_s19  ;;  %2672 = vmatmul.mubr.bf16.gmra.mxu0 %v2378_v57  ;;  %v6933_v57 = vld [vmem:[%s7253_s22 + $0xb4] sm:$0xfe]  }
  0xea   : > { %v1434_v60 = vpop.permute.xlu1 %1433 }
  0xeb   : > { %v1432_v61 = vpop.permute.xlu0 %1431  ;;  %v2135_v25 = vsel %vm2119_vm6, %v1290_v54, %v1434_v60 }
  0xec   : > { %1157 = vrot.lane.b32.xlu1 %v6910_v58, %s7151_s9  ;;  %v2133_v28 = vsel %vm2119_vm6, %v1288_v55, %v1432_v61  ;;  %v6934_v61 = vld [vmem:[%s7253_s22 + $0x98] ss:$0 sps:$4 sm:$0x11]  }
  0xed   : > { %1155 = vrot.lane.b32.xlu0 %v6911_v59, %s7151_s9  ;;  %v7006_v59 = vld [vmem:[%s9285_s3 + $0x8] sm:$0xff]  }
  0xee   : > { %v858_v0 = vpop.permute.xlu1 %857 }
  0xef   : > { %v856_v1 = vpop.permute.xlu0 %855  ;;  %v1923_v17 = vsel %vm1899_vm2, %v6912_v11, %v858_v0  ;;  %v7009_v0 = vld [vmem:[%s9285_s3] sm:$0xff]  }
  0xf0   : > { %1877 = vrot.lane.b32.xlu1 %v6914_v62, %s7152_s11  ;;  %v1920_v19 = vsel %vm1899_vm2, %v6913_v13, %v856_v1  ;;  %v6935_v62 = vld [vmem:[%s7253_s22 + $0x90] sm:$0xfe]  }
  0xf1   : > { %1875 = vrot.lane.b32.xlu0 %v6915_v63, %s7152_s11 }
  0xf2   : > { %v1578_v4 = vpop.permute.xlu1 %1577 }
  0xf3   : > { %v1576_v5 = vpop.permute.xlu0 %1575  ;;  %v2184_v29 = vsel %vm2168_vm7, %v2135_v25, %v1578_v4 }
  0xf4   : > { %1305 = vrot.lane.b32.xlu1 %v6916_v2, %s7146_s13  ;;  %v2182_v33 = vsel %vm2168_vm7, %v2133_v28, %v1576_v5  ;;  %v6936_v2 = vld [vmem:[%s7253_s22 + $0xa4] ss:$0 sps:$4 sm:$0x11]   ;;  %v6943_v28 = vld [vmem:[%s7253_s22 + $0x78] sm:$0xfe]  }
  0xf5   : > { %1303 = vrot.lane.b32.xlu0 %v6917_v3, %s7146_s13  ;;  %v6937_v3 = vld [vmem:[%s7253_s22 + $0x9c] sm:$0xfe]  }
  0xf6   : > { %v1002_v8 = vpop.permute.xlu1 %1001 }
  0xf7   : > { %v1000_v9 = vpop.permute.xlu0 %999  ;;  %v1988_v20 = vsel %vm1972_vm3, %v1923_v17, %v1002_v8  ;;  %v6939_v8 = vld [vmem:[%s7253_s22 + $0x6c] sm:$0xfe]  }
  0xf8   : > { %1449 = vrot.lane.b32.xlu1 %v6918_v6, %s7145_s12  ;;  %v1986_v22 = vsel %vm1972_vm3, %v1920_v19, %v1000_v9  ;;  %v6938_v6 = vld [vmem:[%s7253_s22 + $0x74] ss:$0 sps:$4 sm:$0x11]  }
  0xf9   : > { %1447 = vrot.lane.b32.xlu0 %v6919_v7, %s7145_s12  ;;  %v6930_v7 = vld [vmem:[%s7253_s22 + $0x38] ss:$0 sps:$4 sm:$0x11]   ;;  %v6931_v9 = vld [vmem:[%s7253_s22 + $0x30] sm:$0xfe]  }
  0xfa   : > { %v1722_v14 = vpop.permute.xlu1 %1721 }
  0xfb   : > { %v1720_v15 = vpop.permute.xlu0 %1719  ;;  %v2233_v34 = vsel %vm2217_vm8, %v2184_v29, %v1722_v14  ;;  %v6941_v14 = vld [vmem:[%s7253_s22 + $0xa8] sm:$0xfe]  }
  0xfc   : > { %873 = vrot.lane.b32.xlu1 %v6920_v10, %s7147_s23  ;;  %v2231_v36 = vsel %vm2217_vm8, %v2182_v33, %v1720_v15 }
  0xfd   : > { %871 = vrot.lane.b32.xlu0 %v6921_v12, %s7147_s23  ;;  %v6940_v12 = vld [vmem:[%s7253_s22 + $0xb0] ss:$0 sps:$4 sm:$0x11]  }
  0xfe   : > { %v1146_v21 = vpop.permute.xlu1 %1145 }
  0xff   : > { %v2037_v23 = vsel %vm2021_vm4, %v1988_v20, %v1146_v21  ;;  %v1144_v24 = vpop.permute.xlu0 %1143 }
 0x100   : > { %v2035_v26 = vsel %vm2021_vm4, %v1986_v22, %v1144_v24  ;;  %1593 = vrot.lane.b32.xlu1 %v6922_v16, %s7148_s10  ;;  %v2086_v30 = vsel %vm2070_vm5, %v2037_v23, %v1290_v54  ;;  %v7001_v54 = vld [vmem:[%s9285_s3 + $0x10] sm:$0xff]   ;;  %v6942_v23 = vld [vmem:[%s7253_s22 + $0x80] ss:$0 sps:$4 sm:$0x11]  }
 0x101   : > { %v2084_v31 = vsel %vm2070_vm5, %v2035_v26, %v1288_v55  ;;  %1591 = vrot.lane.b32.xlu0 %v6923_v18, %s7148_s10  ;;  %v2383_v39 = vrot.slane %v2086_v30, 1  ;;  %6694 = vmatprep.subr.bf16.mxu1 %v7001_v54 }
 0x102   : > { %v1866_v35 = vpop.permute.xlu1 %1865  ;;  %v2382_v40 = vrot.slane %v2084_v31, 1  ;;  %6695 = vmatpush3.bf16.msra.mxu1 %v7001_v54  ;;  %v6952_v54 = vld [vmem:[%s7253_s22 + $0xa4] ss:$0 sps:$4 sm:$0x11]  }
 0x103   : > { %v2282_v37 = vsel %vm2266_vm9, %v2233_v34, %v1866_v35  ;;  %v1864_v38 = vpop.permute.xlu0 %1863  ;;  %6696 = vmatprep.subr.bf16.mxu1 %v7006_v59 }
 0x104   : > { %v2386_v41 = vrot.slane %v2282_v37, 1  ;;  %v2280_v42 = vsel %vm2266_vm9, %v2231_v36, %v1864_v38  ;;  %1017 = vrot.lane.b32.xlu1 %v6924_v27, %s7149_s15  ;;  %v2384_v50 = vsel %vm2363_vm10, %v2382_v40, %v2383_v39  ;;  %v6944_v39 = vld [vmem:[%s7253_s22 + $0xbc] ss:$0 sps:$4 sm:$0x11]  }
 0x105   : > { %v2385_v44 = vrot.slane %v2280_v42, 1  ;;  %1015 = vrot.lane.b32.xlu0 %v6925_v32, %s7149_s15 }
 0x106   : > { %v7630_v46 = vpop.permute.xlu1 %1293  ;;  %6697 = vmatpush3.bf16.msra.mxu1 %v7006_v59  ;;  %v6955_v59 = vld [vmem:[%s7253_s22 + $0xa8] sm:$0xfe]  }
 0x107   : > { %v7635_v48 = vpop.permute.xlu0 %1291  ;;  %v2387_v49 = vsel %vm2363_vm10, %v2385_v44, %v2386_v41  ;;  %6698 = vmatprep.subr.bf16.mxu1 %v7009_v0  ;;  %v6945_v41 = vld [vmem:[%s7253_s22 + $0xb4] sm:$0xfe]  }
 0x108   : > { %6247 = vmatprep.mubr.msk.bf16.mxu0 %vm2579_vm11, %v2387_v49  ;;  %1737 = vrot.lane.b32.xlu1 %v6926_v43, %s7150_s19 }
 0x109   : > { %1735 = vrot.lane.b32.xlu0 %v6927_v45, %s7150_s19  ;;  %2680 = vmatmul.mubr.bf16.gmra.mxu0 %v2384_v50  ;;  %v6950_v50 = vld [vmem:[%s7253_s22 + $0xc8] ss:$0 sps:$4 sm:$0x11]  }
 0x10a   : > { %v1438_v53 = vpop.permute.xlu1 %1437  ;;  %6699 = vmatpush3.bf16.msra.mxu1 %v7009_v0  ;;  %v6957_v0 = vld [vmem:[%s7253_s22 + $0x78] sm:$0xfe]  }
 0x10b   : > { %v1436_v55 = vpop.permute.xlu0 %1435  ;;  %v2139_v21 = vsel %vm2119_vm6, %v7630_v46, %v1438_v53 }
 0x10c   : > { %1161 = vrot.lane.b32.xlu1 %v6928_v51, %s7151_s9  ;;  %v2137_v24 = vsel %vm2119_vm6, %v7635_v48, %v1436_v55  ;;  %v6951_v51 = vld [vmem:[%s7253_s22 + $0xc0] sm:$0xfe]  }
 0x10d   : > { %1159 = vrot.lane.b32.xlu0 %v6929_v52, %s7151_s9  ;;  %v6953_v55 = vld [vmem:[%s7253_s22 + $0x9c] sm:$0xfe]  }
 0x10e   : > { %v862_v58 = vpop.permute.xlu1 %861 }
 0x10f   : > { %v860_v60 = vpop.permute.xlu0 %859  ;;  %v1929_v13 = vsel %vm1899_vm2, %v6930_v7, %v862_v58  ;;  %v6954_v58 = vld [vmem:[%s7253_s22 + $0xb0] ss:$0 sps:$4 sm:$0x11]  }
 0x110   : > { %1881 = vrot.lane.b32.xlu1 %v6932_v56, %s7152_s11  ;;  %v1926_v15 = vsel %vm1899_vm2, %v6931_v9, %v860_v60 }
 0x111   : > { %1879 = vrot.lane.b32.xlu0 %v6933_v57, %s7152_s11 }
 0x112   : > { %v1582_v63 = vpop.permute.xlu1 %1581 }
 0x113   : > { %v1580_v1 = vpop.permute.xlu0 %1579  ;;  %v2188_v25 = vsel %vm2168_vm7, %v2139_v21, %v1582_v63  ;;  %v6948_v63 = vld [vmem:[%s7253_s22 + $0x44] ss:$0 sps:$4 sm:$0x11]  }
 0x114   : > { %1309 = vrot.lane.b32.xlu1 %v6934_v61, %s7146_s13  ;;  %v2186_v29 = vsel %vm2168_vm7, %v2137_v24, %v1580_v1  ;;  %v6949_v1 = vld [vmem:[%s7253_s22 + $0x3c] sm:$0xfe]  }
 0x115   : > { %1307 = vrot.lane.b32.xlu0 %v6935_v62, %s7146_s13  ;;  %v6956_v62 = vld [vmem:[%s7253_s22 + $0x80] ss:$0 sps:$4 sm:$0x11]  }
 0x116   : > { %v1006_v4 = vpop.permute.xlu1 %1005 }
 0x117   : > { %v1004_v5 = vpop.permute.xlu0 %1003  ;;  %v1992_v16 = vsel %vm1972_vm3, %v1929_v13, %v1006_v4  ;;  %v6958_v4 = vld [vmem:[%s7253_s22 + $0xbc] ss:$0 sps:$4 sm:$0x11]  }
 0x118   : > { %1453 = vrot.lane.b32.xlu1 %v6936_v2, %s7145_s12  ;;  %v1990_v18 = vsel %vm1972_vm3, %v1926_v15, %v1004_v5  ;;  %v6960_v15 = vld [vmem:[%s7253_s22 + $0x8c] ss:$0 sps:$4 sm:$0x11]  }
 0x119   : > { %1451 = vrot.lane.b32.xlu0 %v6937_v3, %s7145_s12 }
 0x11a   : > { %v1726_v10 = vpop.permute.xlu1 %1725 }
 0x11b   : > { %v1724_v11 = vpop.permute.xlu0 %1723  ;;  %v2237_v30 = vsel %vm2217_vm8, %v2188_v25, %v1726_v10 }
 0x11c   : > { %877 = vrot.lane.b32.xlu1 %v6938_v6, %s7147_s23  ;;  %v2235_v32 = vsel %vm2217_vm8, %v2186_v29, %v1724_v11  ;;  %v6959_v6 = vld [vmem:[%s7253_s22 + $0xb4] sm:$0xfe]  }
 0x11d   : > { %875 = vrot.lane.b32.xlu0 %v6939_v8, %s7147_s23 }
 0x11e   : > { %v1150_v17 = vpop.permute.xlu1 %1149 }
 0x11f   : > { %v2041_v19 = vsel %vm2021_vm4, %v1992_v16, %v1150_v17  ;;  %v1148_v20 = vpop.permute.xlu0 %1147 }
 0x120   : > { %v2039_v22 = vsel %vm2021_vm4, %v1990_v18, %v1148_v20  ;;  %1597 = vrot.lane.b32.xlu1 %v6940_v12, %s7148_s10  ;;  %v2090_v26 = vsel %vm2070_vm5, %v2041_v19, %v7630_v46  ;;  %v6946_v46 = vld [vmem:[%s7253_s22 + $0x8c] ss:$0 sps:$4 sm:$0x11]   ;;  %v6961_v20 = vld [vmem:[%s7253_s22 + $0x84] sm:$0xfe]  }
 0x121   : > { %v2088_v27 = vsel %vm2070_vm5, %v2039_v22, %v7635_v48  ;;  %1595 = vrot.lane.b32.xlu0 %v6941_v14, %s7148_s10  ;;  %v2389_v35 = vrot.slane %v2090_v26, 1 }
 0x122   : > { %v1870_v31 = vpop.permute.xlu1 %1869  ;;  %v2388_v36 = vrot.slane %v2088_v27, 1 }
 0x123   : > { %v2286_v33 = vsel %vm2266_vm9, %v2237_v30, %v1870_v31  ;;  %v1868_v34 = vpop.permute.xlu0 %1867  ;;  %v6962_v31 = vld [vmem:[%s7253_s22 + $0xc8] ss:$0 sps:$4 sm:$0x11]  }
 0x124   : > { %v2392_v37 = vrot.slane %v2286_v33, 1  ;;  %v2284_v38 = vsel %vm2266_vm9, %v2235_v32, %v1868_v34  ;;  %1021 = vrot.lane.b32.xlu1 %v6942_v23, %s7149_s15  ;;  %v2390_v45 = vsel %vm2363_vm10, %v2388_v36, %v2389_v35  ;;  %v6963_v33 = vld [vmem:[%s7253_s22 + $0xc0] sm:$0xfe]  }
 0x125   : > { %v2391_v40 = vrot.slane %v2284_v38, 1  ;;  %1019 = vrot.lane.b32.xlu0 %v6943_v28, %s7149_s15  ;;  %v6964_v38 = vld [vmem:[%s7253_s22 + $0x98] ss:$0 sps:$4 sm:$0x11]  }
 0x126   : > { %v1298_v42 = vpop.permute.xlu1 %1297 }
 0x127   : > { %v1296_v43 = vpop.permute.xlu0 %1295  ;;  %v2393_v44 = vsel %vm2363_vm10, %v2391_v40, %v2392_v37 }
 0x128   : > { %6248 = vmatprep.mubr.msk.bf16.mxu0 %vm2579_vm11, %v2393_v44  ;;  %1741 = vrot.lane.b32.xlu1 %v6944_v39, %s7150_s19  ;;  %v6965_v39 = vld [vmem:[%s7253_s22 + $0x90] sm:$0xfe]  }
 0x129   : > { %1739 = vrot.lane.b32.xlu0 %v6945_v41, %s7150_s19  ;;  %2688 = vmatmul.mubr.bf16.gmra.mxu0 %v2390_v45 }
 0x12a   : > { %v1442_v48 = vpop.permute.xlu1 %1441 }
 0x12b   : > { %v1440_v49 = vpop.permute.xlu0 %1439  ;;  %v2143_v13 = vsel %vm2119_vm6, %v1298_v42, %v1442_v48 }
 0x12c   : > { %1165 = vrot.lane.b32.xlu1 %v6946_v46, %s7151_s9  ;;  %v2141_v16 = vsel %vm2119_vm6, %v1296_v43, %v1440_v49  ;;  %v6970_v46 = vld [vmem:[%s7253_s22 + $0xb0] ss:$0 sps:$4 sm:$0x11]  }
 0x12d   : > { %1163 = vrot.lane.b32.xlu0 %v6947_v47, %s7151_s9  ;;  %v6971_v47 = vld [vmem:[%s7253_s22 + $0xa8] sm:$0xfe]  }
 0x12e   : > { %v866_v52 = vpop.permute.xlu1 %865 }
 0x12f   : > { %v864_v53 = vpop.permute.xlu0 %863  ;;  %v1935_v5 = vsel %vm1899_vm2, %v6948_v63, %v866_v52 }
 0x130   : > { %1885 = vrot.lane.b32.xlu1 %v6950_v50, %s7152_s11  ;;  %v1932_v7 = vsel %vm1899_vm2, %v6949_v1, %v864_v53  ;;  %v6972_v50 = vld [vmem:[%s7253_s22 + $0xbc] ss:$0 sps:$4 sm:$0x11]  }
 0x131   : > { %1883 = vrot.lane.b32.xlu0 %v6951_v51, %s7152_s11  ;;  %v6973_v51 = vld [vmem:[%s7253_s22 + $0xb4] sm:$0xfe]  }
 0x132   : > { %v1586_v56 = vpop.permute.xlu1 %1585 }
 0x133   : > { %v1584_v57 = vpop.permute.xlu0 %1583  ;;  %v2192_v17 = vsel %vm2168_vm7, %v2143_v13, %v1586_v56  ;;  %v6975_v56 = vld [vmem:[%s7253_s22 + $0x84] sm:$0xfe]  }
 0x134   : > { %1313 = vrot.lane.b32.xlu1 %v6952_v54, %s7146_s13  ;;  %v2190_v21 = vsel %vm2168_vm7, %v2141_v16, %v1584_v57  ;;  %v6974_v54 = vld [vmem:[%s7253_s22 + $0x8c] ss:$0 sps:$4 sm:$0x11]  }
 0x135   : > { %1311 = vrot.lane.b32.xlu0 %v6953_v55, %s7146_s13  ;;  %v6966_v55 = vld [vmem:[%s7253_s22 + $0x50] ss:$0 sps:$4 sm:$0x11]   ;;  %v6967_v57 = vld [vmem:[%s7253_s22 + $0x48] sm:$0xfe]  }
 0x136   : > { %v1010_v60 = vpop.permute.xlu1 %1009 }
 0x137   : > { %v1008_v61 = vpop.permute.xlu0 %1007  ;;  %v1996_v8 = vsel %vm1972_vm3, %v1935_v5, %v1010_v60  ;;  %v6976_v60 = vld [vmem:[%s7253_s22 + $0xc8] ss:$0 sps:$4 sm:$0x11]  }
 0x138   : > { %1457 = vrot.lane.b32.xlu1 %v6954_v58, %s7145_s12  ;;  %v1994_v10 = vsel %vm1972_vm3, %v1932_v7, %v1008_v61  ;;  %v6978_v7 = vld [vmem:[%s7253_s22 + $0x98] ss:$0 sps:$4 sm:$0x11]  }
 0x139   : > { %1455 = vrot.lane.b32.xlu0 %v6955_v59, %s7145_s12 }
 0x13a   : > { %v1730_v2 = vpop.permute.xlu1 %1729 }
 0x13b   : > { %v1728_v3 = vpop.permute.xlu0 %1727  ;;  %v2241_v22 = vsel %vm2217_vm8, %v2192_v17, %v1730_v2 }
 0x13c   : > { %881 = vrot.lane.b32.xlu1 %v6956_v62, %s7147_s23  ;;  %v2239_v24 = vsel %vm2217_vm8, %v2190_v21, %v1728_v3  ;;  %v6977_v62 = vld [vmem:[%s7253_s22 + $0xc0] sm:$0xfe]  }
 0x13d   : > { %879 = vrot.lane.b32.xlu0 %v6957_v0, %s7147_s23 }
 0x13e   : > { %v1154_v9 = vpop.permute.xlu1 %1153 }
 0x13f   : > { %v2045_v11 = vsel %vm2021_vm4, %v1996_v8, %v1154_v9  ;;  %v1152_v12 = vpop.permute.xlu0 %1151 }
 0x140   : > { %v2043_v14 = vsel %vm2021_vm4, %v1994_v10, %v1152_v12  ;;  %1601 = vrot.lane.b32.xlu1 %v6958_v4, %s7148_s10  ;;  %v2094_v18 = vsel %vm2070_vm5, %v2045_v11, %v1298_v42  ;;  %v6968_v42 = vld [vmem:[%s7253_s22 + $0xd4] ss:$0 sps:$4 sm:$0x11]  }
 0x141   : > { %v2092_v19 = vsel %vm2070_vm5, %v2043_v14, %v1296_v43  ;;  %1599 = vrot.lane.b32.xlu0 %v6959_v6, %s7148_s10  ;;  %v2395_v27 = vrot.slane %v2094_v18, 1  ;;  %v6969_v43 = vld [vmem:[%s7253_s22 + $0xcc] sm:$0xfe]  }
 0x142   : > { %v1874_v23 = vpop.permute.xlu1 %1873  ;;  %v2394_v28 = vrot.slane %v2092_v19, 1  ;;  %v6979_v12 = vld [vmem:[%s7253_s22 + $0x90] sm:$0xfe]  }
 0x143   : > { %v2290_v25 = vsel %vm2266_vm9, %v2241_v22, %v1874_v23  ;;  %v1872_v26 = vpop.permute.xlu0 %1871  ;;  %v6980_v23 = vld [vmem:[%s7253_s22 + $0xd4] ss:$0 sps:$4 sm:$0x11]  }
 0x144   : > { %v2398_v29 = vrot.slane %v2290_v25, 1  ;;  %v2288_v30 = vsel %vm2266_vm9, %v2239_v24, %v1872_v26  ;;  %1025 = vrot.lane.b32.xlu1 %v6960_v15, %s7149_s15  ;;  %v2396_v37 = vsel %vm2363_vm10, %v2394_v28, %v2395_v27  ;;  %v6981_v25 = vld [vmem:[%s7253_s22 + $0xcc] sm:$0xfe]  }
 0x145   : > { %v2397_v32 = vrot.slane %v2288_v30, 1  ;;  %1023 = vrot.lane.b32.xlu0 %v6961_v20, %s7149_s15  ;;  %v6982_v30 = vld [vmem:[%s7253_s22 + $0xa4] ss:$0 sps:$4 sm:$0x11]  }
 0x146   : > { %v1302_v34 = vpop.permute.xlu1 %1301 }
 0x147   : > { %v1300_v35 = vpop.permute.xlu0 %1299  ;;  %v2399_v36 = vsel %vm2363_vm10, %v2397_v32, %v2398_v29  ;;  %v6983_v32 = vld [vmem:[%s7253_s22 + $0x9c] sm:$0xfe]  }
 0x148   : > { %6249 = vmatprep.mubr.msk.bf16.mxu0 %vm2579_vm11, %v2399_v36  ;;  %1745 = vrot.lane.b32.xlu1 %v6962_v31, %s7150_s19 }
 0x149   : > { %1743 = vrot.lane.b32.xlu0 %v6963_v33, %s7150_s19  ;;  %2696 = vmatmul.mubr.bf16.gmra.mxu0 %v2396_v37  ;;  %v6986_v37 = vld [vmem:[%s7253_s22 + $0xe0] ss:$0 sps:$4 sm:$0x11]  }
 0x14a   : > { %v1446_v40 = vpop.permute.xlu1 %1445 }
 0x14b   : > { %v1444_v41 = vpop.permute.xlu0 %1443  ;;  %v2147_v5 = vsel %vm2119_vm6, %v1302_v34, %v1446_v40  ;;  %v6987_v40 = vld [vmem:[%s7253_s22 + $0xd8] sm:$0xfe]  }
 0x14c   : > { %1169 = vrot.lane.b32.xlu1 %v6964_v38, %s7151_s9  ;;  %v2145_v8 = vsel %vm2119_vm6, %v1300_v35, %v1444_v41  ;;  %v7825_v38 = vld [vmem:[%s9284_s2] ss:$0 sm:$0xff] }
 0x14d   : > { %1167 = vrot.lane.b32.xlu0 %v6965_v39, %s7151_s9 }
 0x14e   : > { %v870_v44 = vpop.permute.xlu1 %869 }
 0x14f   : > { %v868_v45 = vpop.permute.xlu0 %867  ;;  %v1941_v61 = vsel %vm1899_vm2, %v6966_v55, %v870_v44 }
 0x150   : > { %1889 = vrot.lane.b32.xlu1 %v6968_v42, %s7152_s11  ;;  %v1938_v63 = vsel %vm1899_vm2, %v6967_v57, %v868_v45 }
 0x151   : > { %1887 = vrot.lane.b32.xlu0 %v6969_v43, %s7152_s11 }
 0x152   : > { %v1590_v48 = vpop.permute.xlu1 %1589 }
 0x153   : > { %v1588_v49 = vpop.permute.xlu0 %1587  ;;  %v2196_v9 = vsel %vm2168_vm7, %v2147_v5, %v1590_v48 }
 0x154   : > { %1317 = vrot.lane.b32.xlu1 %v6970_v46, %s7146_s13  ;;  %v2194_v13 = vsel %vm2168_vm7, %v2145_v8, %v1588_v49  ;;  %v6988_v46 = vld [vmem:[%s7253_s22 + $0xbc] ss:$0 sps:$4 sm:$0x11]  }
 0x155   : > { %1315 = vrot.lane.b32.xlu0 %v6971_v47, %s7146_s13  ;;  %v6989_v47 = vld [vmem:[%s7253_s22 + $0xb4] sm:$0xfe]  }
 0x156   : > { %v1014_v52 = vpop.permute.xlu1 %1013 }
 0x157   : > { %v1012_v53 = vpop.permute.xlu0 %1011  ;;  %v2000_v0 = vsel %vm1972_vm3, %v1941_v61, %v1014_v52  ;;  %v6985_v61 = vld [vmem:[%s7253_s22 + $0x54] sm:$0xfe]  }
 0x158   : > { %1461 = vrot.lane.b32.xlu1 %v6972_v50, %s7145_s12  ;;  %v1998_v2 = vsel %vm1972_vm3, %v1938_v63, %v1012_v53  ;;  %v6990_v53 = vld [vmem:[%s7253_s22 + $0xc8] ss:$0 sps:$4 sm:$0x11]  }
 0x159   : > { %1459 = vrot.lane.b32.xlu0 %v6973_v51, %s7145_s12 }
 0x15a   : > { %v1734_v58 = vpop.permute.xlu1 %1733 }
 0x15b   : > { %v1732_v59 = vpop.permute.xlu0 %1731  ;;  %v2245_v14 = vsel %vm2217_vm8, %v2196_v9, %v1734_v58  ;;  %v6992_v58 = vld [vmem:[%s7253_s22 + $0x98] ss:$0 sps:$4 sm:$0x11]  }
 0x15c   : > { %885 = vrot.lane.b32.xlu1 %v6974_v54, %s7147_s23  ;;  %v2243_v16 = vsel %vm2217_vm8, %v2194_v13, %v1732_v59  ;;  %v6991_v54 = vld [vmem:[%s7253_s22 + $0xc0] sm:$0xfe]   ;;  %v6984_v59 = vld [vmem:[%s7253_s22 + $0x5c] ss:$0 sps:$4 sm:$0x11]  }
 0x15d   : > { %883 = vrot.lane.b32.xlu0 %v6975_v56, %s7147_s23 }
 0x15e   : > { %v1158_v1 = vpop.permute.xlu1 %1157 }
 0x15f   : > { %v2049_v3 = vsel %vm2021_vm4, %v2000_v0, %v1158_v1  ;;  %v1156_v4 = vpop.permute.xlu0 %1155  ;;  %v6994_v0 = vld [vmem:[%s7253_s22 + $0xd4] ss:$0 sps:$4 sm:$0x11]  }
 0x160   : > { %v2047_v6 = vsel %vm2021_vm4, %v1998_v2, %v1156_v4  ;;  %1605 = vrot.lane.b32.xlu1 %v6976_v60, %s7148_s10  ;;  %v2098_v10 = vsel %vm2070_vm5, %v2049_v3, %v1302_v34  ;;  %v6993_v60 = vld [vmem:[%s7253_s22 + $0x90] sm:$0xfe]  }
 0x161   : > { %v2096_v11 = vsel %vm2070_vm5, %v2047_v6, %v1300_v35  ;;  %1603 = vrot.lane.b32.xlu0 %v6977_v62, %s7148_s10  ;;  %v2401_v19 = vrot.slane %v2098_v10, 1  ;;  %v6995_v2 = vld [vmem:[%s7253_s22 + $0xcc] sm:$0xfe]  }
 0x162   : > { %v1878_v15 = vpop.permute.xlu1 %1877  ;;  %v2400_v20 = vrot.slane %v2096_v11, 1  ;;  %v6996_v11 = vld [vmem:[%s7253_s22 + $0xa4] ss:$0 sps:$4 sm:$0x11]  }
 0x163   : > { %v2294_v17 = vsel %vm2266_vm9, %v2245_v14, %v1878_v15  ;;  %v1876_v18 = vpop.permute.xlu0 %1875 }
 0x164   : > { %v2404_v21 = vrot.slane %v2294_v17, 1  ;;  %v2292_v22 = vsel %vm2266_vm9, %v2243_v16, %v1876_v18  ;;  %1029 = vrot.lane.b32.xlu1 %v6978_v7, %s7149_s15  ;;  %v2402_v29 = vsel %vm2363_vm10, %v2400_v20, %v2401_v19  ;;  %v6997_v16 = vld [vmem:[%s7253_s22 + $0x9c] sm:$0xfe]  }
 0x165   : > { %v2403_v24 = vrot.slane %v2292_v22, 1  ;;  %1027 = vrot.lane.b32.xlu0 %v6979_v12, %s7149_s15 }
 0x166   : > { %v7809_v26 = vpop.permute.xlu1 %1305 }
 0x167   : > { %v7811_v27 = vpop.permute.xlu0 %1303  ;;  %v2405_v28 = vsel %vm2363_vm10, %v2403_v24, %v2404_v21 }
 0x168   : > { %6250 = vmatprep.mubr.msk.bf16.mxu0 %vm2579_vm11, %v2405_v28  ;;  %1749 = vrot.lane.b32.xlu1 %v6980_v23, %s7150_s19 }
 0x169   : > { %1747 = vrot.lane.b32.xlu0 %v6981_v25, %s7150_s19  ;;  %v6604_v31 = vpop.f32.mrf.mxu0  ;;  %2704 = vmatmul.mubr.bf16.gmra.mxu0 %v2402_v29  ;;  %v7000_v29 = vld [vmem:[%s7253_s22 + $0xd8] sm:$0xfe]  }
 0x16a   : > { %v1450_v33 = vpop.permute.xlu1 %1449 }
 0x16b   : > { %v1448_v34 = vpop.permute.xlu0 %1447  ;;  %v6605_v35 = vpop.f32.mrf.mxu0  ;;  %v2151_v9 = vsel %vm2119_vm6, %v7809_v26, %v1450_v33 }
 0x16c   : > { %v6606_v36 = vadd.f32 %v6605_v35, %v6604_v31  ;;  %1173 = vrot.lane.b32.xlu1 %v6982_v30, %s7151_s9  ;;  %v2149_v12 = vsel %vm2119_vm6, %v7811_v27, %v1448_v34  ;;  %v7002_v34 = vld [vmem:[%s7253_s22 + $0xb0] ss:$0 sps:$4 sm:$0x11]  }
 0x16d   : > { %1171 = vrot.lane.b32.xlu0 %v6983_v32, %s7151_s9  ;;  %v6607_v39 = vpop.f32.mrf.mxu0 }
 0x16e   : > { %v874_v41 = vpop.permute.xlu1 %873  ;;  %v2658_v44 = vadd.f32 %v6606_v36, %v7825_v38  ;;  %v7003_v36 = vld [vmem:[%s7253_s22 + $0xa8] sm:$0xfe]  }
 0x16f   : > { %v872_v42 = vpop.permute.xlu0 %871  ;;  %v6608_v43 = vpop.f32.mrf.mxu0  ;;  %v1947_v1 = vsel %vm1899_vm2, %v6984_v59, %v874_v41  ;;  %v7005_v59 = vld [vmem:[%s7253_s22 + $0x60] sm:$0xfe]  }
 0x170   : > { %v6609_v45 = vadd.f32 %v6608_v43, %v6607_v39  ;;  %1893 = vrot.lane.b32.xlu1 %v6986_v37, %s7152_s11  ;;  %v2752_v51 = vmax.f32 %v2658_v44, 0.0  ;;  %v1944_v3 = vsel %vm1899_vm2, %v6985_v61, %v872_v42  ;;  %v7007_v42 = vld [vmem:[%s7253_s22 + $0xec] ss:$0 sps:$4 sm:$0x11]   ;;  %v7008_v44 = vld [vmem:[%s7253_s22 + $0xe4] sm:$0xfe]  }
 0x171   : > { %1891 = vrot.lane.b32.xlu0 %v6987_v40, %s7152_s11 }
 0x172   : > { %v2661_v48 = vadd.f32 %v6609_v45, %v7825_v38  ;;  %v1594_v49 = vpop.permute.xlu1 %1593 }
 0x173   : > { %v1592_v50 = vpop.permute.xlu0 %1591  ;;  %v2200_v13 = vsel %vm2168_vm7, %v2151_v9, %v1594_v49 }
 0x174   : > { %v2753_v52 = vmax.f32 %v2661_v48, 0.0  ;;  %1321 = vrot.lane.b32.xlu1 %v6988_v46, %s7146_s13  ;;  %v2198_v17 = vsel %vm2168_vm7, %v2149_v12, %v1592_v50 }
 0x175   : > { %1319 = vrot.lane.b32.xlu0 %v6989_v47, %s7146_s13  ;;  %s7154_s13 = smov 64  }
 0x176   : > { %v1018_v55 = vpop.permute.xlu1 %1017  ;;  %v2776_v56 = vpack.c.bf16 %v2753_v52, %v2752_v51 }
 0x177   : > { %v1016_v57 = vpop.permute.xlu0 %1015  ;;  %v2004_v4 = vsel %vm1972_vm3, %v1947_v1, %v1018_v55 }
 0x178   : > { %6700 = vmatprep.mubr.msk.bf16.mxu1 %vm2827_vm12, %v2776_v56  ;;  %1465 = vrot.lane.b32.xlu1 %v6990_v53, %s7145_s12  ;;  %v2002_v6 = vsel %vm1972_vm3, %v1944_v3, %v1016_v57 }
 0x179   : > { %1463 = vrot.lane.b32.xlu0 %v6991_v54, %s7145_s12 }
 0x17a   : > { %v1738_v62 = vpop.permute.xlu1 %1737 }
 0x17b   : > { %v1736_v63 = vpop.permute.xlu0 %1735  ;;  %v2249_v18 = vsel %vm2217_vm8, %v2200_v13, %v1738_v62 }
 0x17c   : > { %889 = vrot.lane.b32.xlu1 %v6992_v58, %s7147_s23  ;;  %v2247_v20 = vsel %vm2217_vm8, %v2198_v17, %v1736_v63  ;;  %v7004_v58 = vld [vmem:[%s7253_s22 + $0x68] ss:$0 sps:$4 sm:$0x11]  }
 0x17d   : > { %887 = vrot.lane.b32.xlu0 %v6993_v60, %s7147_s23  ;;  %s7155_s23 = smov 32  }
 0x17e   : > { %v1162_v5 = vpop.permute.xlu1 %1161 }
 0x17f   : > { %v2053_v7 = vsel %vm2021_vm4, %v2004_v4, %v1162_v5  ;;  %v1160_v8 = vpop.permute.xlu0 %1159 }
 0x180   : > { %v2051_v10 = vsel %vm2021_vm4, %v2002_v6, %v1160_v8  ;;  %1609 = vrot.lane.b32.xlu1 %v6994_v0, %s7148_s10  ;;  %v2102_v14 = vsel %vm2070_vm5, %v2053_v7, %v7809_v26 }
 0x181   : > { %v2100_v15 = vsel %vm2070_vm5, %v2051_v10, %v7811_v27  ;;  %1607 = vrot.lane.b32.xlu0 %v6995_v2, %s7148_s10  ;;  %v2407_v23 = vrot.slane %v2102_v14, 1  ;;  %v6999_v27 = vld [vmem:[%s7253_s22 + $0xe0] ss:$0 sps:$4 sm:$0x11]   ;;  %s7156_s10 = smov 96  }
 0x182   : > { %v1882_v19 = vpop.permute.xlu1 %1881  ;;  %v2406_v24 = vrot.slane %v2100_v15, 1 }
 0x183   : > { %v2298_v21 = vsel %vm2266_vm9, %v2249_v18, %v1882_v19  ;;  %v1880_v22 = vpop.permute.xlu0 %1879 }
 0x184   : > { %v2410_v25 = vrot.slane %v2298_v21, 1  ;;  %v2296_v26 = vsel %vm2266_vm9, %v2247_v20, %v1880_v22  ;;  %1033 = vrot.lane.b32.xlu1 %v6996_v11, %s7149_s15  ;;  %v2408_v33 = vsel %vm2363_vm10, %v2406_v24, %v2407_v23 }
 0x185   : > { %v2409_v28 = vrot.slane %v2296_v26, 1  ;;  %1031 = vrot.lane.b32.xlu0 %v6997_v16, %s7149_s15 }
 0x186   : > { %v1310_v30 = vpop.permute.xlu1 %1309 }
 0x187   : > { %v1308_v31 = vpop.permute.xlu0 %1307  ;;  %v2411_v32 = vsel %vm2363_vm10, %v2409_v28, %v2410_v25 }
 0x188   : > { %6251 = vmatprep.mubr.msk.bf16.mxu0 %vm2579_vm11, %v2411_v32  ;;  %1753 = vrot.lane.b32.xlu1 %v6999_v27, %s7150_s19 }
 0x189   : > { %1751 = vrot.lane.b32.xlu0 %v7000_v29, %s7150_s19  ;;  %v6610_v35 = vpop.f32.mrf.mxu0  ;;  %2712 = vmatmul.mubr.bf16.gmra.mxu0 %v2408_v33 }
 0x18a   : > { %v1454_v37 = vpop.permute.xlu1 %1453 }
 0x18b   : > { %v1452_v39 = vpop.permute.xlu0 %1451  ;;  %v6611_v40 = vpop.f32.mrf.mxu0  ;;  %v2155_v5 = vsel %vm2119_vm6, %v1310_v30, %v1454_v37 }
 0x18c   : > { %v6612_v41 = vadd.f32 %v6611_v40, %v6610_v35  ;;  %1177 = vrot.lane.b32.xlu1 %v7002_v34, %s7151_s9  ;;  %v2153_v7 = vsel %vm2119_vm6, %v1308_v31, %v1452_v39 }
 0x18d   : > { %1175 = vrot.lane.b32.xlu0 %v7003_v36, %s7151_s9  ;;  %v6613_v43 = vpop.f32.mrf.mxu0 }
 0x18e   : > { %v878_v45 = vpop.permute.xlu1 %877  ;;  %v2666_v48 = vadd.f32 %v6612_v41, %v7825_v38 }
 0x18f   : > { %v876_v46 = vpop.permute.xlu0 %875  ;;  %v6614_v47 = vpop.f32.mrf.mxu0  ;;  %v1953_v62 = vsel %vm1899_vm2, %v7004_v58, %v878_v45 }
 0x190   : > { %v6615_v49 = vadd.f32 %v6614_v47, %v6613_v43  ;;  %1897 = vrot.lane.b32.xlu1 %v7007_v42, %s7152_s11  ;;  %v2754_v53 = vmax.f32 %v2666_v48, 0.0  ;;  %v1950_v63 = vsel %vm1899_vm2, %v7005_v59, %v876_v46  ;;  %v7010_v46 = vld [vmem:[%s7253_s22 + $0x74] ss:$0 sps:$4 sm:$0x11]   ;;  %v7011_v47 = vld [vmem:[%s7253_s22 + $0x6c] sm:$0xfe]  }
 0x191   : > { %1895 = vrot.lane.b32.xlu0 %v7008_v44, %s7152_s11 }
 0x192   : > { %v2669_v50 = vadd.f32 %v6615_v49, %v7825_v38  ;;  %v1598_v51 = vpop.permute.xlu1 %1597 }
 0x193   : > { %v1596_v52 = vpop.permute.xlu0 %1595  ;;  %v2204_v8 = vsel %vm2168_vm7, %v2155_v5, %v1598_v51 }
 0x194   : > { %v2755_v54 = vmax.f32 %v2669_v50, 0.0  ;;  %v2202_v11 = vsel %vm2168_vm7, %v2153_v7, %v1596_v52 }
 0x196   : > { %v2777_v55 = vpack.c.bf16 %v2755_v54, %v2754_v53  ;;  %v1022_v56 = vpop.permute.xlu1 %1021 }
 0x197   : > { %v1020_v57 = vpop.permute.xlu0 %1019  ;;  %v2008_v0 = vsel %vm1972_vm3, %v1953_v62, %v1022_v56 }
 0x198   : > { %6701 = vmatmul.mubr.msk.bf16.vlgmr.msra.gmra.mxu1 %vm2827_vm12, %v2777_v55  ;;  %v2006_v2 = vsel %vm1972_vm3, %v1950_v63, %v1020_v57 }
 0x19a   : > { %v1742_v60 = vpop.permute.xlu1 %1741 }
 0x19b   : > { %v1740_v61 = vpop.permute.xlu0 %1739  ;;  %v2253_v12 = vsel %vm2217_vm8, %v2204_v8, %v1742_v60 }
 0x19c   : > { %v2251_v14 = vsel %vm2217_vm8, %v2202_v11, %v1740_v61 }
 0x19e   : > { %v1166_v1 = vpop.permute.xlu1 %1165 }
 0x19f   : > { %v2057_v3 = vsel %vm2021_vm4, %v2008_v0, %v1166_v1  ;;  %v1164_v4 = vpop.permute.xlu0 %1163 }
 0x1a0   : > { %v2055_v6 = vsel %vm2021_vm4, %v2006_v2, %v1164_v4  ;;  %v2106_v9 = vsel %vm2070_vm5, %v2057_v3, %v1310_v30 }
 0x1a1   : > { %v2104_v10 = vsel %vm2070_vm5, %v2055_v6, %v1308_v31  ;;  %v2413_v17 = vrot.slane %v2106_v9, 1 }
 0x1a2   : > { %v1886_v13 = vpop.permute.xlu1 %1885  ;;  %v2412_v18 = vrot.slane %v2104_v10, 1 }
 0x1a3   : > { %v2302_v15 = vsel %vm2266_vm9, %v2253_v12, %v1886_v13  ;;  %v1884_v16 = vpop.permute.xlu0 %1883 }
 0x1a4   : > { %v2416_v19 = vrot.slane %v2302_v15, 1  ;;  %v2300_v20 = vsel %vm2266_vm9, %v2251_v14, %v1884_v16  ;;  %v2414_v25 = vsel %vm2363_vm10, %v2412_v18, %v2413_v17 }
 0x1a5   : > { %v2415_v21 = vrot.slane %v2300_v20, 1 }
 0x1a6   : > { %v1314_v22 = vpop.permute.xlu1 %1313 }
 0x1a7   : > { %v1312_v23 = vpop.permute.xlu0 %1311  ;;  %v2417_v24 = vsel %vm2363_vm10, %v2415_v21, %v2416_v19 }
 0x1a8   : > { %6252 = vmatprep.mubr.msk.bf16.mxu0 %vm2579_vm11, %v2417_v24 }
 0x1a9   : > { %v6616_v26 = vpop.f32.mrf.mxu0  ;;  %2720 = vmatmul.mubr.bf16.gmra.mxu0 %v2414_v25 }
 0x1aa   : > { %v1458_v27 = vpop.permute.xlu1 %1457 }
 0x1ab   : > { %v1456_v28 = vpop.permute.xlu0 %1455  ;;  %v6617_v29 = vpop.f32.mrf.mxu0  ;;  %v2159_v57 = vsel %vm2119_vm6, %v1314_v22, %v1458_v27 }
 0x1ac   : > { %v6618_v30 = vadd.f32 %v6617_v29, %v6616_v26  ;;  %v2157_v59 = vsel %vm2119_vm6, %v1312_v23, %v1456_v28 }
 0x1ad   : > { %v6619_v31 = vpop.f32.mrf.mxu0 }
 0x1ae   : > { %v882_v32 = vpop.permute.xlu1 %881  ;;  %v2674_v35 = vadd.f32 %v6618_v30, %v7825_v38 }
 0x1af   : > { %v880_v33 = vpop.permute.xlu0 %879  ;;  %v6620_v34 = vpop.f32.mrf.mxu0  ;;  %v1959_v50 = vsel %vm1899_vm2, %v7010_v46, %v882_v32 }
 0x1b0   : > { %v6621_v36 = vadd.f32 %v6620_v34, %v6619_v31  ;;  %v2756_v41 = vmax.f32 %v2674_v35, 0.0  ;;  %v1956_v51 = vsel %vm1899_vm2, %v7011_v47, %v880_v33  ;;  %v7012_v33 = vld [vmem:[%s7253_s22 + $0x80] ss:$0 sps:$4 sm:$0x11]   ;;  %v7013_v34 = vld [vmem:[%s7253_s22 + $0x78] sm:$0xfe]  }
 0x1b2   : > { %v2677_v37 = vadd.f32 %v6621_v36, %v7825_v38  ;;  %v1602_v39 = vpop.permute.xlu1 %1601 }
 0x1b3   : > { %v1600_v40 = vpop.permute.xlu0 %1599  ;;  %v2208_v60 = vsel %vm2168_vm7, %v2159_v57, %v1602_v39 }
 0x1b4   : > { %v2757_v42 = vmax.f32 %v2677_v37, 0.0  ;;  %v2206_v63 = vsel %vm2168_vm7, %v2157_v59, %v1600_v40 }
 0x1b6   : > { %v2778_v43 = vpack.c.bf16 %v2757_v42, %v2756_v41  ;;  %v1026_v44 = vpop.permute.xlu1 %1025 }
 0x1b7   : > { %v1024_v45 = vpop.permute.xlu0 %1023  ;;  %v2012_v52 = vsel %vm1972_vm3, %v1959_v50, %v1026_v44 }
 0x1b8   : > { %6704 = vmatprep.mubr.msk.bf16.mxu1 %vm2827_vm12, %v2778_v43  ;;  %v2010_v54 = vsel %vm1972_vm3, %v1956_v51, %v1024_v45 }
 0x1ba   : > { %v1746_v48 = vpop.permute.xlu1 %1745 }
 0x1bb   : > { %v1744_v49 = vpop.permute.xlu0 %1743  ;;  %v2257_v0 = vsel %vm2217_vm8, %v2208_v60, %v1746_v48 }
 0x1bc   : > { %v2255_v2 = vsel %vm2217_vm8, %v2206_v63, %v1744_v49  ;;  %v7153_v63 = vmov 0  }
 0x1bd   : > { %3192 = vst.msk [vmem:[#allocation2 + $0x10] sm:$0x1] %vm3190_vm13, %v7153_v63  ;;  %3191 = vst.msk [vmem:[#allocation2] sm:$0x1] %vm3190_vm13, %v7153_v63 }
 0x1be   : > { %v1170_v53 = vpop.permute.xlu1 %1169  ;;  %3193 = vst.msk [vmem:[#allocation2 + $0x20] sm:$0x1] %vm3190_vm13, %v7153_v63  ;;  %3194 = vst.msk [vmem:[#allocation2 + $0x30] sm:$0x1] %vm3190_vm13, %v7153_v63 }
 0x1bf   : > { %v2061_v55 = vsel %vm2021_vm4, %v2012_v52, %v1170_v53  ;;  %v1168_v56 = vpop.permute.xlu0 %1167  ;;  %3195 = vst.msk [vmem:[#allocation2 + $0x40] sm:$0x1] %vm3190_vm13, %v7153_v63  ;;  %3196 = vst.msk [vmem:[#allocation2 + $0x50] sm:$0x1] %vm3190_vm13, %v7153_v63 }
 0x1c0   : > { %v2059_v58 = vsel %vm2021_vm4, %v2010_v54, %v1168_v56  ;;  %v2110_v61 = vsel %vm2070_vm5, %v2061_v55, %v1314_v22  ;;  %3197 = vst.msk [vmem:[#allocation2 + $0x60] sm:$0x1] %vm3190_vm13, %v7153_v63  ;;  %3198 = vst.msk [vmem:[#allocation2 + $0x70] sm:$0x1] %vm3190_vm13, %v7153_v63 }
 0x1c1   : > { %v2108_v62 = vsel %vm2070_vm5, %v2059_v58, %v1312_v23  ;;  %v2419_v5 = vrot.slane %v2110_v61, 1  ;;  %3199 = vst.msk [vmem:[#allocation2 + $0x80] sm:$0x1] %vm3190_vm13, %v7153_v63  ;;  %3200 = vst.msk [vmem:[#allocation2 + $0x90] sm:$0x1] %vm3190_vm13, %v7153_v63 }
 0x1c2   : > { %v1890_v1 = vpop.permute.xlu1 %1889  ;;  %v2418_v6 = vrot.slane %v2108_v62, 1  ;;  %3201 = vst.msk [vmem:[#allocation2 + $0xa0] sm:$0x1] %vm3190_vm13, %v7153_v63  ;;  %3202 = vst.msk [vmem:[#allocation2 + $0xb0] sm:$0x1] %vm3190_vm13, %v7153_v63 }
 0x1c3   : > { %v2306_v3 = vsel %vm2266_vm9, %v2257_v0, %v1890_v1  ;;  %v1888_v4 = vpop.permute.xlu0 %1887 }
 0x1c4   : > { %v2422_v7 = vrot.slane %v2306_v3, 1  ;;  %v2304_v8 = vsel %vm2266_vm9, %v2255_v2, %v1888_v4  ;;  %v2420_v13 = vsel %vm2363_vm10, %v2418_v6, %v2419_v5 }
 0x1c5   : > { %v2421_v9 = vrot.slane %v2304_v8, 1 }
 0x1c6   : > { %v1318_v10 = vpop.permute.xlu1 %1317 }
 0x1c7   : > { %v1316_v11 = vpop.permute.xlu0 %1315  ;;  %v2423_v12 = vsel %vm2363_vm10, %v2421_v9, %v2422_v7 }
 0x1c8   : > { %6253 = vmatprep.mubr.msk.bf16.mxu0 %vm2579_vm11, %v2423_v12 }
 0x1c9   : > { %v6622_v14 = vpop.f32.mrf.mxu0  ;;  %2728 = vmatmul.mubr.bf16.gmra.mxu0 %v2420_v13 }
 0x1ca   : > { %v1462_v15 = vpop.permute.xlu1 %1461 }
 0x1cb   : > { %v1460_v16 = vpop.permute.xlu0 %1459  ;;  %v6623_v17 = vpop.f32.mrf.mxu0  ;;  %v2163_v45 = vsel %vm2119_vm6, %v1318_v10, %v1462_v15 }
 0x1cc   : > { %v6624_v18 = vadd.f32 %v6623_v17, %v6622_v14  ;;  %v2161_v47 = vsel %vm2119_vm6, %v1316_v11, %v1460_v16 }
 0x1cd   : > { %v6625_v19 = vpop.f32.mrf.mxu0 }
 0x1ce   : > { %v886_v20 = vpop.permute.xlu1 %885  ;;  %v2682_v23 = vadd.f32 %v6624_v18, %v7825_v38 }
 0x1cf   : > { %v884_v21 = vpop.permute.xlu0 %883  ;;  %v6626_v22 = vpop.f32.mrf.mxu0  ;;  %v1965_v37 = vsel %vm1899_vm2, %v7012_v33, %v886_v20 }
 0x1d0   : > { %v6627_v24 = vadd.f32 %v6626_v22, %v6625_v19  ;;  %v2758_v28 = vmax.f32 %v2682_v23, 0.0  ;;  %v1962_v39 = vsel %vm1899_vm2, %v7013_v34, %v884_v21  ;;  %v7014_v22 = vld [vmem:[%s7253_s22 + $0x8c] ss:$0 sps:$4 sm:$0x11]   ;;  %v7015_v23 = vld [vmem:[%s7253_s22 + $0x84] sm:$0xfe]  }
 0x1d2   : > { %v2685_v25 = vadd.f32 %v6627_v24, %v7825_v38  ;;  %v1606_v26 = vpop.permute.xlu1 %1605 }
 0x1d3   : > { %v1604_v27 = vpop.permute.xlu0 %1603  ;;  %v2212_v48 = vsel %vm2168_vm7, %v2163_v45, %v1606_v26 }
 0x1d4   : > { %v2759_v29 = vmax.f32 %v2685_v25, 0.0  ;;  %v2210_v51 = vsel %vm2168_vm7, %v2161_v47, %v1604_v27 }
 0x1d6   : > { %v2779_v30 = vpack.c.bf16 %v2759_v29, %v2758_v28  ;;  %v1030_v31 = vpop.permute.xlu1 %1029 }
 0x1d7   : > { %v1028_v32 = vpop.permute.xlu0 %1027  ;;  %v2016_v40 = vsel %vm1972_vm3, %v1965_v37, %v1030_v31 }
 0x1d8   : > { %6705 = vmatmul.mubr.msk.bf16.gmra.mxu1 %vm2827_vm12, %v2779_v30  ;;  %v2014_v42 = vsel %vm1972_vm3, %v1962_v39, %v1028_v32 }
 0x1da   : > { %v1750_v35 = vpop.permute.xlu1 %1749 }
 0x1db   : > { %v1748_v36 = vpop.permute.xlu0 %1747  ;;  %v2261_v52 = vsel %vm2217_vm8, %v2212_v48, %v1750_v35 }
 0x1dc   : > { %v2259_v54 = vsel %vm2217_vm8, %v2210_v51, %v1748_v36 }
 0x1de   : > { %v1174_v41 = vpop.permute.xlu1 %1173 }
 0x1df   : > { %v2065_v43 = vsel %vm2021_vm4, %v2016_v40, %v1174_v41  ;;  %v1172_v44 = vpop.permute.xlu0 %1171 }
 0x1e0   : > { %v2063_v46 = vsel %vm2021_vm4, %v2014_v42, %v1172_v44  ;;  %v2114_v49 = vsel %vm2070_vm5, %v2065_v43, %v1318_v10 }
 0x1e1   : > { %v2112_v50 = vsel %vm2070_vm5, %v2063_v46, %v1316_v11  ;;  %v2425_v57 = vrot.slane %v2114_v49, 1 }
 0x1e2   : > { %v1894_v53 = vpop.permute.xlu1 %1893  ;;  %v2424_v58 = vrot.slane %v2112_v50, 1 }
 0x1e3   : > { %v2310_v55 = vsel %vm2266_vm9, %v2261_v52, %v1894_v53  ;;  %v1892_v56 = vpop.permute.xlu0 %1891 }
 0x1e4   : > { %v2428_v59 = vrot.slane %v2310_v55, 1  ;;  %v2308_v60 = vsel %vm2266_vm9, %v2259_v54, %v1892_v56  ;;  %v2426_v2 = vsel %vm2363_vm10, %v2424_v58, %v2425_v57 }
 0x1e5   : > { %v2427_v61 = vrot.slane %v2308_v60, 1 }
 0x1e6   : > { %v1322_v62 = vpop.permute.xlu1 %1321 }
 0x1e7   : > { %v1320_v0 = vpop.permute.xlu0 %1319  ;;  %v2429_v1 = vsel %vm2363_vm10, %v2427_v61, %v2428_v59 }
 0x1e8   : > { %6254 = vmatprep.mubr.msk.bf16.mxu0 %vm2579_vm11, %v2429_v1 }
 0x1e9   : > { %v6628_v3 = vpop.f32.mrf.mxu0  ;;  %2736 = vmatmul.mubr.bf16.gmra.mxu0 %v2426_v2 }
 0x1ea   : > { %v1466_v4 = vpop.permute.xlu1 %1465 }
 0x1eb   : > { %v1464_v5 = vpop.permute.xlu0 %1463  ;;  %v6629_v6 = vpop.f32.mrf.mxu0  ;;  %v2167_v33 = vsel %vm2119_vm6, %v1322_v62, %v1466_v4 }
 0x1ec   : > { %v6630_v7 = vadd.f32 %v6629_v6, %v6628_v3  ;;  %v2165_v35 = vsel %vm2119_vm6, %v1320_v0, %v1464_v5  ;;  %vm3203_vm6 = vsmask.f32 256 }
 0x1ed   : > { %v6631_v8 = vpop.f32.mrf.mxu0 }
 0x1ee   : > { %v890_v9 = vpop.permute.xlu1 %889  ;;  %v2690_v12 = vadd.f32 %v6630_v7, %v7825_v38 }
 0x1ef   : > { %v888_v10 = vpop.permute.xlu0 %887  ;;  %v6632_v11 = vpop.f32.mrf.mxu0  ;;  %v1971_v26 = vsel %vm1899_vm2, %v7014_v22, %v890_v9 }
 0x1f0   : > { %v6633_v13 = vadd.f32 %v6632_v11, %v6631_v8  ;;  %v2760_v17 = vmax.f32 %v2690_v12, 0.0  ;;  %v1968_v27 = vsel %vm1899_vm2, %v7015_v23, %v888_v10  ;;  %v8010_v23 = vld [vmem:[%s9286_s4] ss:$0 sm:$0xff]  ;;  %vm4018_vm2 = vcmask 256000  }
 0x1f2   : > { %v2693_v14 = vadd.f32 %v6633_v13, %v7825_v38  ;;  %v1610_v15 = vpop.permute.xlu1 %1609 }
 0x1f3   : > { %v1608_v16 = vpop.permute.xlu0 %1607  ;;  %v2216_v36 = vsel %vm2168_vm7, %v2167_v33, %v1610_v15 }
 0x1f4   : > { %v2761_v18 = vmax.f32 %v2693_v14, 0.0  ;;  %v2214_v40 = vsel %vm2168_vm7, %v2165_v35, %v1608_v16  ;;  %vm4042_vm7 = vcmask 257027  }
 0x1f5   : > { %4043 = vst.msk [vmem:[#allocation2 + $0xc] sm:$0x8] %vm4042_vm7, %v7153_v63  ;;  %4044 = vst.msk [vmem:[#allocation2 + $0x1c] sm:$0x8] %vm4042_vm7, %v7153_v63 }
 0x1f6   : > { %v2780_v19 = vpack.c.bf16 %v2761_v18, %v2760_v17  ;;  %v1034_v20 = vpop.permute.xlu1 %1033  ;;  %4045 = vst.msk [vmem:[#allocation2 + $0x2c] sm:$0x8] %vm4042_vm7, %v7153_v63  ;;  %4046 = vst.msk [vmem:[#allocation2 + $0x3c] sm:$0x8] %vm4042_vm7, %v7153_v63 }
 0x1f7   : > { %v1032_v21 = vpop.permute.xlu0 %1031  ;;  %v2020_v28 = vsel %vm1972_vm3, %v1971_v26, %v1034_v20  ;;  %4047 = vst.msk [vmem:[#allocation2 + $0x4c] sm:$0x8] %vm4042_vm7, %v7153_v63  ;;  %4048 = vst.msk [vmem:[#allocation2 + $0x5c] sm:$0x8] %vm4042_vm7, %v7153_v63 }
 0x1f8   : > { %6708 = vmatprep.mubr.msk.bf16.mxu1 %vm2827_vm12, %v2780_v19  ;;  %v2018_v30 = vsel %vm1972_vm3, %v1968_v27, %v1032_v21  ;;  %vm3657_vm3 = vsmask.f32 3328  ;;  %4049 = vst.msk [vmem:[#allocation2 + $0x6c] sm:$0x8] %vm4042_vm7, %v7153_v63  ;;  %4050 = vst.msk [vmem:[#allocation2 + $0x7c] sm:$0x8] %vm4042_vm7, %v7153_v63 }
 0x1f9   : > { %4051 = vst.msk [vmem:[#allocation2 + $0x8c] sm:$0x8] %vm4042_vm7, %v7153_v63  ;;  %4052 = vst.msk [vmem:[#allocation2 + $0x9c] sm:$0x8] %vm4042_vm7, %v7153_v63 }
 0x1fa   : > { %v1754_v24 = vpop.permute.xlu1 %1753  ;;  %4053 = vst.msk [vmem:[#allocation2 + $0xac] sm:$0x8] %vm4042_vm7, %v7153_v63  ;;  %4054 = vst.msk [vmem:[#allocation2 + $0xbc] sm:$0x8] %vm4042_vm7, %v7153_v63  ;;  %vm3522_vm7 = vcmask 516352  }
 0x1fb   : > { %v1752_v25 = vpop.permute.xlu0 %1751  ;;  %v2265_v41 = vsel %vm2217_vm8, %v2216_v36, %v1754_v24 }
 0x1fc   : > { %v2263_v43 = vsel %vm2217_vm8, %v2214_v40, %v1752_v25  ;;  %vm3204_vm8 = vsmask.f32 4368 }
 0x1fd   : > { %vm8101_vm13 = vmor %vm3203_vm6, %vm3204_vm8  ;;  %vm3632_vm8 = vcmask 781824  }
 0x1fe   : > { %v1178_v29 = vpop.permute.xlu1 %1177 }
 0x1ff   : > { %v2069_v31 = vsel %vm2021_vm4, %v2020_v28, %v1178_v29  ;;  %v1176_v32 = vpop.permute.xlu0 %1175 }
 0x200   : > { %v2067_v34 = vsel %vm2021_vm4, %v2018_v30, %v1176_v32  ;;  %v2118_v37 = vsel %vm2070_vm5, %v2069_v31, %v1322_v62  ;;  %vm3658_vm4 = vsmask.f32 7440 }
 0x201   : > { %v2116_v39 = vsel %vm2070_vm5, %v2067_v34, %v1320_v0  ;;  %v2431_v46 = vrot.slane %v2118_v37, 1  ;;  %vm3164_vm5 = vcmask 257025  }
 0x202   : > { %v1898_v42 = vpop.permute.xlu1 %1897  ;;  %v2430_v47 = vrot.slane %v2116_v39, 1 }
 0x203   : > { %v2314_v44 = vsel %vm2266_vm9, %v2265_v41, %v1898_v42  ;;  %v1896_v45 = vpop.permute.xlu0 %1895 }
 0x204   : > { %v2434_v48 = vrot.slane %v2314_v44, 1  ;;  %v2312_v49 = vsel %vm2266_vm9, %v2263_v43, %v1896_v45  ;;  %v2432_v52 = vsel %vm2363_vm10, %v2430_v47, %v2431_v46  ;;  %vm8056_vm9 = vmor %vm3930_vm15, %vm3931_vm1  ;;  %vm3471_vm1 = vsmask.f32 7938 }
 0x205   : > { %v2433_v50 = vrot.slane %v2312_v49, 1 }
 0x207   : > { %v2435_v51 = vsel %vm2363_vm10, %v2433_v50, %v2434_v48  ;;  %vm8089_vm10 = vmor %vm3657_vm3, %vm3658_vm4 }
 0x208   : > { %6255 = vmatprep.mubr.msk.bf16.mxu0 %vm2579_vm11, %v2435_v51  ;;  %vm3090_vm11 = vcmask 1044484  }
 0x209   : > { %v6634_v53 = vpop.f32.mrf.mxu0  ;;  %2744 = vmatmul.mubr.bf16.gmra.mxu0 %v2432_v52  ;;  %vm8107_vm15 = vmor %vm2616_vm0, %vm3090_vm11  ;;  %vm3470_vm0 = vcmask 519424   ;;  %vm3840_vm11 = vcmask 1044224  }
 0x20a   : > { %vm8198_vm4 = vmand %vm3470_vm0, %vm3471_vm1  ;;  %vm3892_vm1 = vsmask.f32 7950 }
 0x20b   : > { %v6635_v54 = vpop.f32.mrf.mxu0 }
 0x20c   : > { %v6636_v55 = vadd.f32 %v6635_v54, %v6634_v53 }
 0x20d   : > { %v6637_v56 = vpop.f32.mrf.mxu0 }
 0x20e   : > { %v2698_v58 = vadd.f32 %v6636_v55, %v7825_v38 }
 0x20f   : > { %v6638_v57 = vpop.f32.mrf.mxu0 }
 0x210   : > { %v6639_v59 = vadd.f32 %v6638_v57, %v6637_v56  ;;  %v2762_v61 = vmax.f32 %v2698_v58, 0.0 }
 0x212   : > { %v2701_v60 = vadd.f32 %v6639_v59, %v7825_v38 }
 0x214   : > { %v2763_v62 = vmax.f32 %v2701_v60, 0.0 }
 0x216   : > { %v2781_v0 = vpack.c.bf16 %v2763_v62, %v2762_v61 }
 0x218   : > { %6709 = vmatmul.mubr.msk.bf16.gmra.mxu1 %vm2827_vm12, %v2781_v0 }
 0x229   : > { %v6640_v1 = vpop.f32.mrf.mxu0 }
 0x22b   : > { %v6641_v2 = vpop.f32.mrf.mxu0 }
 0x22c   : > { %v6642_v3 = vadd.f32 %v6641_v2, %v6640_v1 }
 0x22d   : > { %v6643_v4 = vpop.f32.mrf.mxu0 }
 0x22e   : > { %v2706_v6 = vadd.f32 %v6642_v3, %v7825_v38 }
 0x22f   : > { %v6644_v5 = vpop.f32.mrf.mxu0 }
 0x230   : > { %v6645_v7 = vadd.f32 %v6644_v5, %v6643_v4  ;;  %v2764_v9 = vmax.f32 %v2706_v6, 0.0 }
 0x232   : > { %v2709_v8 = vadd.f32 %v6645_v7, %v7825_v38 }
 0x234   : > { %v2765_v10 = vmax.f32 %v2709_v8, 0.0 }
 0x236   : > { %v2782_v11 = vpack.c.bf16 %v2765_v10, %v2764_v9 }
 0x238   : > { %6712 = vmatprep.mubr.msk.bf16.mxu1 %vm2827_vm12, %v2782_v11 }
 0x249   : > { %v6646_v12 = vpop.f32.mrf.mxu0 }
 0x24b   : > { %v6647_v13 = vpop.f32.mrf.mxu0 }
 0x24c   : > { %v6648_v14 = vadd.f32 %v6647_v13, %v6646_v12 }
 0x24d   : > { %v6649_v15 = vpop.f32.mrf.mxu0 }
 0x24e   : > { %v2714_v17 = vadd.f32 %v6648_v14, %v7825_v38 }
 0x24f   : > { %v6650_v16 = vpop.f32.mrf.mxu0 }
 0x250   : > { %v6651_v18 = vadd.f32 %v6650_v16, %v6649_v15  ;;  %v2766_v20 = vmax.f32 %v2714_v17, 0.0 }
 0x252   : > { %v2717_v19 = vadd.f32 %v6651_v18, %v7825_v38 }
 0x254   : > { %v2767_v21 = vmax.f32 %v2717_v19, 0.0 }
 0x256   : > { %v2783_v22 = vpack.c.bf16 %v2767_v21, %v2766_v20 }
 0x258   : > { %v6702_v24 = vpop.f32.mrf.mxu1  ;;  %6713 = vmatmul.mubr.msk.bf16.gmra.mxu1 %vm2827_vm12, %v2783_v22 }
 0x259   : > { %v2907_v25 = vadd.f32 %v6702_v24, %v8010_v23 }
 0x25a   : > { %v2898_v26 = vpop.f32.mrf.mxu1 }
 0x25b   : > { %v2995_v27 = vmax.f32 %v2907_v25, 0.0  ;;  %v2899_v28 = vadd.f32 %v8010_v23, %v2898_v26 }
 0x25c   : > { %v6703_v29 = vpop.f32.mrf.mxu1 }
 0x25d   : > { %v8015_v30 = vpack.c.bf16 %v2995_v27, %v2995_v27  ;;  %v2993_v31 = vmax.f32 %v2899_v28, 0.0  ;;  %v2910_v32 = vadd.f32 %v6703_v29, %v8010_v23 }
 0x25e   : > { %v2901_v33 = vpop.f32.mrf.mxu1 }
 0x25f   : > { %v8018_v34 = vpack.c.bf16 %v2993_v31, %v2993_v31  ;;  %v2996_v35 = vmax.f32 %v2910_v32, 0.0  ;;  %v2902_v36 = vadd.f32 %v8010_v23, %v2901_v33  ;;  %3564 = vrot.lane.b32.xlu0 %v8015_v30, %s7154_s13  ;;  %v3223_v37 = vshrl.u32 %v8015_v30, 16 }
 0x260   : > { %v3226_v39 = vshll.u32 %v8015_v30, 16  ;;  %v3096_v40 = vrot.slane %v8015_v30, 7  ;;  %v6298_v44 = vrot.slane %v8015_v30, 9 }
 0x261   : > { %v8026_v41 = vpack.c.bf16 %v2996_v35, %v2996_v35  ;;  %v2994_v42 = vmax.f32 %v2902_v36, 0.0  ;;  %v3207_v43 = vshrl.u32 %v8018_v34, 16  ;;  %v3225_v46 = vrot.slane %v3223_v37, 7 }
 0x262   : > { %v3669_v47 = vrot.slane %v3223_v37, 4  ;;  %v3670_v48 = vrot.slane %v3226_v39, 5  ;;  %3168 = vst.msk [vmem:[#allocation2 + $0x10] sm:$0xe] %vm3164_vm5, %v3096_v40  ;;  %v3210_v52 = vshll.u32 %v8018_v34, 16  ;;  %v6297_v53 = vrot.slane %v8018_v34, 9 }
 0x263   : > { %v3940_v49 = vrot.slane %v8026_v41, 5  ;;  %v8064_v50 = vpack.c.bf16 %v2994_v42, %v2994_v42  ;;  %3566 = vrot.lane.b32.xlu1 %v8026_v41, %s7154_s13  ;;  %3560 = vrot.lane.b32.xlu0 %v8018_v34, %s7154_s13  ;;  %v3234_v51 = vshll.u32 %v8026_v41, 16  ;;  %v8073_v55 = vrot.slane %v3207_v43, 7 }
 0x264   : > { %v3671_v54 = vor.u32 %v3670_v48, %v3669_v47  ;;  %v3231_v56 = vshrl.u32 %v8026_v41, 16  ;;  %v3228_v60 = vor.u32 %v3226_v39, %v3225_v46  ;;  %v3660_v5 = vrot.slane %v3207_v43, 4 }
 0x265   : > { %v3941_v57 = vsel %vm8056_vm9, %v6298_v44, %v3940_v49  ;;  %v3942_v58 = vrot.slane %v3940_v49, 4  ;;  %v3935_v59 = vrot.slane %v8064_v50, 5  ;;  %v3673_v62 = vrot.slane %v3234_v51, 5 }
 0x266   : > { %4020 = vst.msk [vmem:[#allocation2 + $0x14] sm:$0xf] %vm3166_vm14, %v3941_v57  ;;  %v3672_v61 = vrot.slane %v3671_v54, 4  ;;  %v3233_v0 = vrot.slane %v3231_v56, 7  ;;  %v3218_v1 = vshll.u32 %v8064_v50, 16  ;;  %v3661_v6 = vrot.slane %v3210_v52, 5 }
 0x267   : > { %4021 = vst.msk [vmem:[#allocation2 + $0x1c] sm:$0x7] %vm4018_vm2, %v3942_v58  ;;  %v3936_v2 = vsel %vm8056_vm9, %v6297_v53, %v3935_v59  ;;  %v3937_v3 = vrot.slane %v3935_v59, 4  ;;  %3562 = vrot.lane.b32.xlu1 %v8064_v50, %s7154_s13  ;;  %3402 = vrot.lane.b32.xlu0 %v3228_v60, %s7155_s23  ;;  %v3212_v7 = vor.u32 %v3210_v52, %v8073_v55  ;;  %v3215_v11 = vshrl.u32 %v8064_v50, 16 }
 0x268   : > { %4017 = vst.msk [vmem:[#allocation2 + $0x4] sm:$0xf] %vm3166_vm14, %v3936_v2  ;;  %v3236_v9 = vor.u32 %v3234_v51, %v3233_v0  ;;  %v3662_v10 = vor.u32 %v3661_v6, %v3660_v5  ;;  %v3675_v12 = vrot.slane %v3231_v56, 4  ;;  %v3674_v13 = vsel %vm8089_vm10, %v3672_v61, %v3673_v62 }
 0x269   : > { %4019 = vst.msk [vmem:[#allocation2 + $0xc] sm:$0x7] %vm4018_vm2, %v3937_v3  ;;  %v6652_v8 = vpop.f32.mrf.mxu0  ;;  %v3664_v15 = vrot.slane %v3218_v1, 5  ;;  %v3092_v16 = vrot.slane %v8018_v34, 7  ;;  %v3229_v19 = vrot.slane %v3225_v46, 4  ;;  %v3217_v21 = vrot.slane %v3215_v11, 7 }
 0x26a   : > { %v3663_v20 = vrot.slane %v3662_v10, 4  ;;  %v3097_v22 = vrot.slane %v3096_v40, 4  ;;  %v3098_v25 = vrot.slane %v8026_v41, 7  ;;  %v3094_v26 = vrot.slane %v8064_v50, 7 }
 0x26b   : > { %v6653_v18 = vpop.f32.mrf.mxu0  ;;  %3772 = vrot.lane.b32.xlu1 %v3674_v13, %s7156_s10  ;;  %3398 = vrot.lane.b32.xlu0 %v3212_v7, %s7155_s23  ;;  %3165 = vst.msk [vmem:[#allocation2] sm:$0xe] %vm3164_vm5, %v3092_v16  ;;  %v3093_v27 = vrot.slane %v3092_v16, 4  ;;  %v3237_v29 = vsel %vm8101_vm13, %v3229_v19, %v3236_v9  ;;  %v3676_v31 = vor.u32 %v3675_v12, %v3673_v62  ;;  %v3666_v32 = vrot.slane %v3215_v11, 4 }
 0x26c   : > { %v6654_v24 = vadd.f32 %v6653_v18, %v6652_v8  ;;  %v3665_v33 = vsel %vm8089_vm10, %v3663_v20, %v3664_v15  ;;  %v3220_v34 = vor.u32 %v3218_v1, %v3217_v21  ;;  %v3099_v30 = vsel %vm8107_vm15, %v3097_v22, %v3098_v25 }
 0x26d   : > { %v6655_v28 = vpop.f32.mrf.mxu0  ;;  %v3095_v35 = vsel %vm8107_vm15, %v3093_v27, %v3094_v26  ;;  %3169 = vst.msk [vmem:[#allocation2 + $0x18] sm:$0xf] %vm3166_vm14, %v3099_v30  ;;  %v3213_v40 = vrot.slane %v8073_v55, 4  ;;  %v3677_v41 = vrot.slane %v3676_v31, 4  ;;  %v3667_v42 = vor.u32 %v3666_v32, %v3664_v15 }
 0x26e   : > { %3167 = vst.msk [vmem:[#allocation2 + $0x8] sm:$0xf] %vm3166_vm14, %v3095_v35  ;;  %v2722_v37 = vadd.f32 %v6654_v24, %v7825_v38 }
 0x26f   : > { %v6656_v36 = vpop.f32.mrf.mxu0  ;;  %3404 = vrot.lane.b32.xlu1 %v3237_v29, %s7155_s23  ;;  %3768 = vrot.lane.b32.xlu0 %v3665_v33, %s7156_s10  ;;  %v3221_v44 = vsel %vm8101_vm13, %v3213_v40, %v3220_v34  ;;  %v3668_v48 = vrot.slane %v3667_v42, 4 }
 0x270   : > { %v6657_v39 = vadd.f32 %v6656_v36, %v6655_v28  ;;  %v2768_v46 = vmax.f32 %v2722_v37, 0.0 }
 0x272   : > { %v2725_v43 = vadd.f32 %v6657_v39, %v7825_v38 }
 0x273   : > { %3400 = vrot.lane.b32.xlu1 %v3221_v44, %s7155_s23  ;;  %3774 = vrot.lane.b32.xlu0 %v3677_v41, %s7156_s10 }
 0x274   : > { %v2769_v47 = vmax.f32 %v2725_v43, 0.0 }
 0x276   : > { %v2784_v49 = vpack.c.bf16 %v2769_v47, %v2768_v46 }
 0x277   : > { %3770 = vrot.lane.b32.xlu1 %v3668_v48, %s7156_s10 }
 0x278   : > { %6716 = vmatprep.mubr.msk.bf16.mxu1 %vm2827_vm12, %v2784_v49 }
 0x289   : > { %v6658_v50 = vpop.f32.mrf.mxu0 }
 0x28b   : > { %v6659_v51 = vpop.f32.mrf.mxu0 }
 0x28c   : > { %v6660_v52 = vadd.f32 %v6659_v51, %v6658_v50 }
 0x28d   : > { %v6661_v53 = vpop.f32.mrf.mxu0 }
 0x28e   : > { %v2730_v55 = vadd.f32 %v6660_v52, %v7825_v38 }
 0x28f   : > { %v6662_v54 = vpop.f32.mrf.mxu0 }
 0x290   : > { %v6663_v56 = vadd.f32 %v6662_v54, %v6661_v53  ;;  %v2770_v58 = vmax.f32 %v2730_v55, 0.0 }
 0x292   : > { %v2733_v57 = vadd.f32 %v6663_v56, %v7825_v38 }
 0x294   : > { %v2771_v59 = vmax.f32 %v2733_v57, 0.0 }
 0x296   : > { %v2785_v60 = vpack.c.bf16 %v2771_v59, %v2770_v58 }
 0x298   : > { %v6706_v61 = vpop.f32.mrf.mxu1  ;;  %6717 = vmatmul.mubr.msk.bf16.gmra.mxu1 %vm2827_vm12, %v2785_v60 }
 0x299   : > { %v2923_v62 = vadd.f32 %v6706_v61, %v8010_v23 }
 0x29a   : > { %v2914_v0 = vpop.f32.mrf.mxu1 }
 0x29b   : > { %v2999_v1 = vmax.f32 %v2923_v62, 0.0  ;;  %v2915_v2 = vadd.f32 %v8010_v23, %v2914_v0 }
 0x29c   : > { %v6707_v3 = vpop.f32.mrf.mxu1 }
 0x29d   : > { %v6570_v5 = vpack.c.bf16 %v2999_v1, %v2999_v1  ;;  %v2997_v6 = vmax.f32 %v2915_v2, 0.0  ;;  %v2926_v7 = vadd.f32 %v6707_v3, %v8010_v23 }
 0x29e   : > { %v2917_v8 = vpop.f32.mrf.mxu1 }
 0x29f   : > { %v8145_v9 = vpack.c.bf16 %v2997_v6, %v2997_v6  ;;  %v3000_v38 = vmax.f32 %v2926_v7, 0.0  ;;  %v2918_v10 = vadd.f32 %v8010_v23, %v2917_v8  ;;  %3572 = vrot.lane.b32.xlu0 %v6570_v5, %s7154_s13  ;;  %v3255_v11 = vshrl.u32 %v6570_v5, 16 }
 0x2a0   : > { %v3258_v12 = vshll.u32 %v6570_v5, 16  ;;  %v3104_v13 = vrot.slane %v6570_v5, 7  ;;  %v6300_v15 = vrot.slane %v6570_v5, 9 }
 0x2a1   : > { %v6571_v16 = vpack.c.bf16 %v3000_v38, %v3000_v38  ;;  %v2998_v18 = vmax.f32 %v2918_v10, 0.0  ;;  %v3239_v19 = vshrl.u32 %v8145_v9, 16  ;;  %v6299_v20 = vrot.slane %v8145_v9, 9  ;;  %v7016_v10 = vld [vmem:[%s9284_s2] ss:$0 sm:$0xff] }
 0x2a2   : > { %v3257_v21 = vrot.slane %v3255_v11, 7  ;;  %v3687_v22 = vrot.slane %v3255_v11, 4  ;;  %v3688_v24 = vrot.slane %v3258_v12, 5  ;;  %3172 = vst.msk [vmem:[#allocation2 + $0x30] sm:$0xe] %vm3164_vm5, %v3104_v13  ;;  %v3242_v28 = vshll.u32 %v8145_v9, 16 }
 0x2a3   : > { %v3950_v25 = vrot.slane %v6571_v16, 5  ;;  %v6569_v26 = vpack.c.bf16 %v2998_v18, %v2998_v18  ;;  %3574 = vrot.lane.b32.xlu1 %v6571_v16, %s7154_s13  ;;  %3568 = vrot.lane.b32.xlu0 %v8145_v9, %s7154_s13  ;;  %v3266_v27 = vshll.u32 %v6571_v16, 16  ;;  %v3241_v32 = vrot.slane %v3239_v19, 7 }
 0x2a4   : > { %v3260_v29 = vor.u32 %v3258_v12, %v3257_v21  ;;  %v3689_v31 = vor.u32 %v3688_v24, %v3687_v22  ;;  %v3263_v33 = vshrl.u32 %v6571_v16, 16  ;;  %v3678_v43 = vrot.slane %v3239_v19, 4 }
 0x2a5   : > { %v3951_v34 = vsel %vm8056_vm9, %v6300_v15, %v3950_v25  ;;  %v3952_v30 = vrot.slane %v3950_v25, 4  ;;  %v3945_v35 = vrot.slane %v6569_v26, 5  ;;  %v3691_v36 = vrot.slane %v3266_v27, 5 }
 0x2a6   : > { %4024 = vst.msk [vmem:[#allocation2 + $0x34] sm:$0xf] %vm3166_vm14, %v3951_v34  ;;  %v3690_v37 = vrot.slane %v3689_v31, 4  ;;  %v3265_v39 = vrot.slane %v3263_v33, 7  ;;  %v3250_v40 = vshll.u32 %v6569_v26, 16  ;;  %v3679_v44 = vrot.slane %v3242_v28, 5 }
 0x2a7   : > { %4025 = vst.msk [vmem:[#allocation2 + $0x3c] sm:$0x7] %vm4018_vm2, %v3952_v30  ;;  %v3946_v41 = vsel %vm8056_vm9, %v6299_v20, %v3945_v35  ;;  %v3947_v42 = vrot.slane %v3945_v35, 4  ;;  %3570 = vrot.lane.b32.xlu1 %v6569_v26, %s7154_s13  ;;  %3410 = vrot.lane.b32.xlu0 %v3260_v29, %s7155_s23  ;;  %v3244_v47 = vor.u32 %v3242_v28, %v3241_v32  ;;  %v3247_v51 = vshrl.u32 %v6569_v26, 16 }
 0x2a8   : > { %4022 = vst.msk [vmem:[#allocation2 + $0x24] sm:$0xf] %vm3166_vm14, %v3946_v41  ;;  %v3692_v46 = vsel %vm8089_vm10, %v3690_v37, %v3691_v36  ;;  %v3268_v48 = vor.u32 %v3266_v27, %v3265_v39  ;;  %v3680_v50 = vor.u32 %v3679_v44, %v3678_v43  ;;  %v3693_v52 = vrot.slane %v3263_v33, 4  ;;  %v3478_v44 = vld [vmem:[#allocation2 + $0x10] sm:$0xf] }
 0x2a9   : > { %4023 = vst.msk [vmem:[#allocation2 + $0x2c] sm:$0x7] %vm4018_vm2, %v3947_v42  ;;  %v6664_v49 = vpop.f32.mrf.mxu0  ;;  %v3100_v53 = vrot.slane %v8145_v9, 7  ;;  %v3682_v54 = vrot.slane %v3250_v40, 5  ;;  %v3105_v55 = vrot.slane %v3104_v13, 4  ;;  %v3106_v56 = vrot.slane %v6571_v16, 7 }
 0x2aa   : > { %v3102_v57 = vrot.slane %v6569_v26, 7  ;;  %v3681_v59 = vrot.slane %v3680_v50, 4  ;;  %v3249_v60 = vrot.slane %v3247_v51, 7  ;;  %v3261_v62 = vrot.slane %v3257_v21, 4 }
 0x2ab   : > { %v6665_v58 = vpop.f32.mrf.mxu0  ;;  %3780 = vrot.lane.b32.xlu1 %v3692_v46, %s7156_s10  ;;  %3406 = vrot.lane.b32.xlu0 %v3244_v47, %s7155_s23  ;;  %3170 = vst.msk [vmem:[#allocation2 + $0x20] sm:$0xe] %vm3164_vm5, %v3100_v53  ;;  %v3107_v0 = vsel %vm8107_vm15, %v3105_v55, %v3106_v56  ;;  %v3101_v1 = vrot.slane %v3100_v53, 4  ;;  %v3694_v3 = vor.u32 %v3693_v52, %v3691_v36  ;;  %v3684_v5 = vrot.slane %v3247_v51, 4 }
 0x2ac   : > { %v6666_v61 = vadd.f32 %v6665_v58, %v6664_v49  ;;  %3173 = vst.msk [vmem:[#allocation2 + $0x38] sm:$0xf] %vm3166_vm14, %v3107_v0  ;;  %v3269_v6 = vsel %vm8101_vm13, %v3261_v62, %v3268_v48  ;;  %v3683_v7 = vsel %vm8089_vm10, %v3681_v59, %v3682_v54  ;;  %v3252_v8 = vor.u32 %v3250_v40, %v3249_v60 }
 0x2ad   : > { %v6667_v2 = vpop.f32.mrf.mxu0  ;;  %v3103_v9 = vsel %vm8107_vm15, %v3101_v1, %v3102_v57  ;;  %v3245_v13 = vrot.slane %v3241_v32, 4  ;;  %v3695_v15 = vrot.slane %v3694_v3, 4  ;;  %v3685_v16 = vor.u32 %v3684_v5, %v3682_v54  ;;  %v3473_v57 = vld [vmem:[#allocation2] sm:$0xf] }
 0x2ae   : > { %3171 = vst.msk [vmem:[#allocation2 + $0x28] sm:$0xf] %vm3166_vm14, %v3103_v9  ;;  %v2738_v11 = vadd.f32 %v7016_v10, %v6666_v61 }
 0x2af   : > { %v6668_v38 = vpop.f32.mrf.mxu0  ;;  %3412 = vrot.lane.b32.xlu1 %v3269_v6, %s7155_s23  ;;  %3776 = vrot.lane.b32.xlu0 %v3683_v7, %s7156_s10  ;;  %v3253_v19 = vsel %vm8101_vm13, %v3245_v13, %v3252_v8  ;;  %v3686_v22 = vrot.slane %v3685_v16, 4 }
 0x2b0   : > { %v6669_v12 = vadd.f32 %v6668_v38, %v6667_v2  ;;  %v2772_v20 = vmax.f32 %v2738_v11, 0.0 }
 0x2b2   : > { %v2741_v18 = vadd.f32 %v7016_v10, %v6669_v12 }
 0x2b3   : > { %3408 = vrot.lane.b32.xlu1 %v3253_v19, %s7155_s23  ;;  %3782 = vrot.lane.b32.xlu0 %v3695_v15, %s7156_s10 }
 0x2b4   : > { %v2773_v21 = vmax.f32 %v2741_v18, 0.0 }
 0x2b6   : > { %v2786_v24 = vpack.c.bf16 %v2773_v21, %v2772_v20 }
 0x2b7   : > { %3778 = vrot.lane.b32.xlu1 %v3686_v22, %s7156_s10 }
 0x2b8   : > { %6720 = vmatprep.mubr.msk.bf16.mxu1 %vm2827_vm12, %v2786_v24 }
 0x2c9   : > { %v6670_v25 = vpop.f32.mrf.mxu0 }
 0x2cb   : > { %v6671_v26 = vpop.f32.mrf.mxu0 }
 0x2cc   : > { %v6672_v27 = vadd.f32 %v6671_v26, %v6670_v25 }
 0x2cd   : > { %v6673_v28 = vpop.f32.mrf.mxu0 }
 0x2ce   : > { %v2746_v31 = vadd.f32 %v7016_v10, %v6672_v27 }
 0x2cf   : > { %v6674_v29 = vpop.f32.mrf.mxu0 }
 0x2d0   : > { %v6675_v32 = vadd.f32 %v6674_v29, %v6673_v28  ;;  %v2774_v30 = vmax.f32 %v2746_v31, 0.0 }
 0x2d1   : > { %v8193_v33 = vpop.permute.xlu0 %3564 }
 0x2d2   : > { %v2749_v34 = vadd.f32 %v7016_v10, %v6675_v32 }
 0x2d4   : > { %v2775_v35 = vmax.f32 %v2749_v34, 0.0 }
 0x2d5   : > { %v3567_v36 = vpop.permute.xlu1 %3566  ;;  %v8195_v37 = vpop.permute.xlu0 %3560 }
 0x2d6   : > { %v2787_v39 = vpack.c.bf16 %v2775_v35, %v2774_v30 }
 0x2d8   : > { %v6710_v41 = vpop.f32.mrf.mxu1  ;;  %6721 = vmatmul.mubr.msk.bf16.gmra.mxu1 %vm2827_vm12, %v2787_v39  ;;  %vm8220_vm12 = vmand %vm3522_vm7, %vm3203_vm6 }
 0x2d9   : > { %v2939_v42 = vadd.f32 %v6710_v41, %v8010_v23  ;;  %v8204_v43 = vpop.permute.xlu1 %3562  ;;  %v3403_v46 = vpop.permute.xlu0 %3402  ;;  %vm8275_vm6 = vmand %vm3840_vm11, %vm3657_vm3  ;;  %vm3891_vm3 = vcmask 1044227  }
 0x2da   : > { %v3479_v47 = vsel %vm8198_vm4, %v3403_v46, %v3478_v44  ;;  %v2930_v48 = vpop.f32.mrf.mxu1  ;;  %vm8312_vm7 = vmand %vm3891_vm3, %vm3892_vm1 }
 0x2db   : > { %v3003_v49 = vmax.f32 %v2939_v42, 0.0  ;;  %3480 = vst [vmem:[#allocation2 + $0x10] sm:$0xf] %v3479_v47  ;;  %v2931_v50 = vadd.f32 %v8010_v23, %v2930_v48 }
 0x2dc   : > { %v6711_v51 = vpop.f32.mrf.mxu1 }
 0x2dd   : > { %v8209_v52 = vpack.c.bf16 %v3003_v49, %v3003_v49  ;;  %v3001_v53 = vmax.f32 %v2931_v50, 0.0  ;;  %v2942_v54 = vadd.f32 %v6711_v51, %v8010_v23  ;;  %v3773_v55 = vpop.permute.xlu1 %3772  ;;  %v3399_v56 = vpop.permute.xlu0 %3398 }
 0x2de   : > { %v3474_v58 = vsel %vm8198_vm4, %v3399_v56, %v3473_v57  ;;  %v2933_v59 = vpop.f32.mrf.mxu1 }
 0x2df   : > { %v8214_v60 = vpack.c.bf16 %v3001_v53, %v3001_v53  ;;  %v3004_v61 = vmax.f32 %v2942_v54, 0.0  ;;  %3475 = vst [vmem:[#allocation2] sm:$0xf] %v3474_v58  ;;  %v2934_v62 = vadd.f32 %v8010_v23, %v2933_v59  ;;  %3580 = vrot.lane.b32.xlu1 %v8209_v52, %s7154_s13  ;;  %v3287_v1 = vshrl.u32 %v8209_v52, 16 }
 0x2e0   : > { %v3112_v2 = vrot.slane %v8209_v52, 7  ;;  %v6302_v3 = vrot.slane %v8209_v52, 9  ;;  %v3290_v11 = vshll.u32 %v8209_v52, 16 }
 0x2e1   : > { %v8227_v5 = vpack.c.bf16 %v3004_v61, %v3004_v61  ;;  %v3002_v6 = vmax.f32 %v2934_v62, 0.0  ;;  %v3405_v7 = vpop.permute.xlu1 %3404  ;;  %3576 = vrot.lane.b32.xlu0 %v8214_v60, %s7154_s13  ;;  %v3271_v8 = vshrl.u32 %v8214_v60, 16  ;;  %v6301_v38 = vrot.slane %v8214_v60, 9  ;;  %v3769_v19 = vpop.permute.xlu0 %3768 }
 0x2e2   : > { %v3527_v9 = vld [vmem:[#allocation2 + $0x10] sm:$0x1]  ;;  %3481 = vst.msk [vmem:[#allocation2 + $0x18] sm:$0xf] %vm3470_vm0, %v3405_v7  ;;  %v3289_v10 = vrot.slane %v3287_v1, 7  ;;  %v3108_v12 = vrot.slane %v8214_v60, 7 }
 0x2e3   : > { %3176 = vst.msk [vmem:[#allocation2 + $0x50] sm:$0xe] %vm3164_vm5, %v3112_v2  ;;  %v3528_v13 = vsel %vm8220_vm12, 0, %v3527_v9  ;;  %v3960_v15 = vrot.slane %v8227_v5, 5  ;;  %v8242_v16 = vpack.c.bf16 %v3002_v6, %v3002_v6  ;;  %v3295_v18 = vshrl.u32 %v8227_v5, 16 }
 0x2e4   : > { %3636 = vst.msk [vmem:[#allocation2 + $0x18] sm:$0xf] %vm3632_vm8, %v3567_v36  ;;  %3529 = vst [vmem:[#allocation2 + $0x10] sm:$0x1] %v3528_v13  ;;  %v3298_v20 = vshll.u32 %v8227_v5, 16  ;;  %v3273_v21 = vrot.slane %v3271_v8, 7  ;;  %v3292_v32 = vor.u32 %v3290_v11, %v3289_v10 }
 0x2e5   : > { %v3274_v22 = vshll.u32 %v8214_v60, 16  ;;  %v3113_v24 = vrot.slane %v3112_v2, 4  ;;  %3174 = vst.msk [vmem:[#allocation2 + $0x40] sm:$0xe] %vm3164_vm5, %v3108_v12  ;;  %v3961_v25 = vsel %vm8056_vm9, %v6302_v3, %v3960_v15  ;;  %v3962_v26 = vrot.slane %v3960_v15, 4  ;;  %3578 = vrot.lane.b32.xlu1 %v8242_v16, %s7154_s13  ;;  %v3401_v28 = vpop.permute.xlu1 %3400  ;;  %3582 = vrot.lane.b32.xlu0 %v8227_v5, %s7154_s13  ;;  %v3775_v54 = vpop.permute.xlu0 %3774 }
 0x2e6   : > { %3635 = vst.msk [vmem:[#allocation2 + $0x10] sm:$0xf] %vm3632_vm8, %v8193_v33  ;;  %v3955_v27 = vrot.slane %v8242_v16, 5  ;;  %v3297_v29 = vrot.slane %v3295_v18, 7  ;;  %v3524_v31 = vld [vmem:[#allocation2] sm:$0x1] }
 0x2e7   : > { %4028 = vst.msk [vmem:[#allocation2 + $0x54] sm:$0xf] %vm3166_vm14, %v3961_v25  ;;  %v3293_v33 = vrot.slane %v3289_v10, 4  ;;  %v3279_v34 = vshrl.u32 %v8242_v16, 16  ;;  %v3282_v30 = vshll.u32 %v8242_v16, 16  ;;  %v3525_v35 = vsel %vm8220_vm12, 0, %v3524_v31 }
 0x2e8   : > { %3847 = vst.msk [vmem:[#allocation2 + $0x10] sm:$0xf] %vm3840_vm11, %v3773_v55  ;;  %v3956_v36 = vsel %vm8056_vm9, %v6301_v38, %v3955_v27  ;;  %v3957_v39 = vrot.slane %v3955_v27, 4  ;;  %v3300_v41 = vor.u32 %v3298_v20, %v3297_v29  ;;  %3526 = vst [vmem:[#allocation2] sm:$0x1] %v3525_v35  ;;  %v3696_v46 = vrot.slane %v3271_v8, 4 }
 0x2e9   : > { %3477 = vst.msk [vmem:[#allocation2 + $0x8] sm:$0xf] %vm3470_vm0, %v3401_v28  ;;  %v3281_v44 = vrot.slane %v3279_v34, 7  ;;  %v3697_v47 = vrot.slane %v3274_v22, 5  ;;  %v3700_v48 = vrot.slane %v3282_v30, 5  ;;  %3418 = vrot.lane.b32.xlu0 %v3292_v32, %s7155_s23  ;;  %v3276_v49 = vor.u32 %v3274_v22, %v3273_v21  ;;  %v3771_v9 = vpop.permute.xlu1 %3770 }
 0x2ea   : > { %4029 = vst.msk [vmem:[#allocation2 + $0x5c] sm:$0x7] %vm4018_vm2, %v3962_v26  ;;  %4027 = vst.msk [vmem:[#allocation2 + $0x4c] sm:$0x7] %vm4018_vm2, %v3957_v39  ;;  %v3277_v50 = vrot.slane %v3273_v21, 4  ;;  %v3702_v51 = vrot.slane %v3279_v34, 4 }
 0x2eb   : > { %3634 = vst.msk [vmem:[#allocation2 + $0x8] sm:$0xf] %vm3632_vm8, %v8204_v43  ;;  %3633 = vst.msk [vmem:[#allocation2] sm:$0xf] %vm3632_vm8, %v8195_v37  ;;  %v3301_v43 = vsel %vm8101_vm13, %v3293_v33, %v3300_v41  ;;  %v3848_v53 = vld [vmem:[#allocation2 + $0x18] sm:$0xf]  ;;  %v3284_v55 = vor.u32 %v3282_v30, %v3281_v44  ;;  %v3698_v56 = vor.u32 %v3697_v47, %v3696_v46 }
 0x2ec   : > { %4026 = vst.msk [vmem:[#allocation2 + $0x44] sm:$0xf] %vm3166_vm14, %v3956_v36  ;;  %3420 = vrot.lane.b32.xlu1 %v3301_v43, %s7155_s23  ;;  %v8287_v57 = vrot.slane %v3298_v20, 5  ;;  %v3114_v37 = vrot.slane %v8227_v5, 7  ;;  %v3849_v58 = vsel %vm8275_vm6, %v3775_v54, %v3848_v53  ;;  %v3711_v59 = vrot.slane %v3295_v18, 4 }
 0x2ed   : > { %3841 = vst.msk [vmem:[#allocation2] sm:$0xf] %vm3840_vm11, %v3769_v19  ;;  %v3109_v60 = vrot.slane %v3108_v12, 4  ;;  %v3110_v61 = vrot.slane %v8242_v16, 7  ;;  %3850 = vst [vmem:[#allocation2 + $0x18] sm:$0xf] %v3849_v58  ;;  %v3703_v2 = vor.u32 %v3702_v51, %v3700_v48  ;;  %3414 = vrot.lane.b32.xlu0 %v3276_v49, %s7155_s23  ;;  %v3285_v5 = vsel %vm8101_vm13, %v3277_v50, %v3284_v55 }
 0x2ee   : > { %v3699_v62 = vrot.slane %v3698_v56, 4  ;;  %v3115_v3 = vsel %vm8107_vm15, %v3113_v24, %v3114_v37  ;;  %v3705_v6 = vrot.slane %v3287_v1, 4  ;;  %v3706_v8 = vrot.slane %v3290_v11, 5  ;;  %v3486_v31 = vld [vmem:[#allocation2 + $0x30] sm:$0xf] }
 0x2ef   : > { %3177 = vst.msk [vmem:[#allocation2 + $0x58] sm:$0xf] %vm3166_vm14, %v3115_v3  ;;  %v3111_v7 = vsel %vm8107_vm15, %v3109_v60, %v3110_v61  ;;  %v3712_v10 = vor.u32 %v3711_v59, %v8287_v57  ;;  %v3704_v52 = vrot.slane %v3703_v2, 4  ;;  %v3482_v47 = vld [vmem:[#allocation2 + $0x20] sm:$0xf] }
 0x2f0   : > { %3416 = vrot.lane.b32.xlu1 %v3285_v5, %s7155_s23  ;;  %3175 = vst.msk [vmem:[#allocation2 + $0x48] sm:$0xf] %vm3166_vm14, %v3111_v7  ;;  %v3707_v12 = vor.u32 %v3706_v8, %v3705_v6  ;;  %v3701_v13 = vsel %vm8089_vm10, %v3699_v62, %v3700_v48 }
 0x2f1   : > { %3784 = vrot.lane.b32.xlu0 %v3701_v13, %s7156_s10  ;;  %v3713_v18 = vrot.slane %v3712_v10, 4 }
 0x2f2   : > { %v3844_v38 = vld [vmem:[#allocation2 + $0x8] sm:$0xf]  ;;  %v8317_v15 = vrot.slane %v3707_v12, 4 }
 0x2f3   : > { %v3845_v1 = vsel %vm8275_vm6, %v3771_v9, %v3844_v38 }
 0x2f4   : > { %3846 = vst [vmem:[#allocation2 + $0x8] sm:$0xf] %v3845_v1  ;;  %3786 = vrot.lane.b32.xlu1 %v3704_v52, %s7156_s10  ;;  %v3897_v16 = vld [vmem:[#allocation2 + $0x18] sm:$0x8]  ;;  %v3710_v19 = vsel %vm8089_vm10, %v8317_v15, %v8287_v57 }
 0x2f5   : > { %v3898_v20 = vsel %vm8312_vm7, 0, %v3897_v16  ;;  %3790 = vrot.lane.b32.xlu0 %v3713_v18, %s7156_s10 }
 0x2f6   : > { %3899 = vst [vmem:[#allocation2 + $0x18] sm:$0x8] %v3898_v20 }
 0x2fb   : > { %v3894_v21 = vld [vmem:[#allocation2 + $0x8] sm:$0x8] }
 0x2fc   : > { %v3895_v22 = vsel %vm8312_vm7, 0, %v3894_v21 }
 0x2fd   : > { %3896 = vst [vmem:[#allocation2 + $0x8] sm:$0x8] %v3895_v22 }
 0x311   : > { %v3573_v24 = vpop.permute.xlu0 %3572 }
 0x315   : > { %v3575_v25 = vpop.permute.xlu1 %3574  ;;  %v8329_v26 = vpop.permute.xlu0 %3568 }
 0x318   : > { %v6714_v27 = vpop.f32.mrf.mxu1 }
 0x319   : > { %v2955_v28 = vadd.f32 %v6714_v27, %v8010_v23  ;;  %v8332_v29 = vpop.permute.xlu1 %3570  ;;  %v3411_v32 = vpop.permute.xlu0 %3410 }
 0x31a   : > { %v3487_v33 = vsel %vm8198_vm4, %v3411_v32, %v3486_v31  ;;  %v2946_v34 = vpop.f32.mrf.mxu1 }
 0x31b   : > { %v3007_v30 = vmax.f32 %v2955_v28, 0.0  ;;  %3488 = vst [vmem:[#allocation2 + $0x30] sm:$0xf] %v3487_v33  ;;  %v2947_v35 = vadd.f32 %v8010_v23, %v2946_v34 }
 0x31c   : > { %v6715_v36 = vpop.f32.mrf.mxu1 }
 0x31d   : > { %v8337_v39 = vpack.c.bf16 %v3007_v30, %v3007_v30  ;;  %v3005_v41 = vmax.f32 %v2947_v35, 0.0  ;;  %v2958_v44 = vadd.f32 %v6715_v36, %v8010_v23  ;;  %v3781_v46 = vpop.permute.xlu1 %3780  ;;  %v3407_v48 = vpop.permute.xlu0 %3406 }
 0x31e   : > { %v3483_v43 = vsel %vm8198_vm4, %v3407_v48, %v3482_v47  ;;  %v2949_v49 = vpop.f32.mrf.mxu1 }
 0x31f   : > { %v8342_v50 = vpack.c.bf16 %v3005_v41, %v3005_v41  ;;  %v3008_v51 = vmax.f32 %v2958_v44, 0.0  ;;  %3484 = vst [vmem:[#allocation2 + $0x20] sm:$0xf] %v3483_v43  ;;  %v2950_v53 = vadd.f32 %v8010_v23, %v2949_v49  ;;  %3588 = vrot.lane.b32.xlu1 %v8337_v39, %s7154_s13  ;;  %v6304_v54 = vrot.slane %v8337_v39, 9 }
 0x320   : > { %v3319_v55 = vshrl.u32 %v8337_v39, 16  ;;  %v3120_v56 = vrot.slane %v8337_v39, 7  ;;  %v3322_v60 = vshll.u32 %v8337_v39, 16 }
 0x321   : > { %v8350_v37 = vpack.c.bf16 %v3008_v51, %v3008_v51  ;;  %v3006_v58 = vmax.f32 %v2950_v53, 0.0  ;;  %v3413_v59 = vpop.permute.xlu1 %3412  ;;  %3584 = vrot.lane.b32.xlu0 %v8342_v50, %s7154_s13  ;;  %v3303_v23 = vshrl.u32 %v8342_v50, 16  ;;  %v6303_v62 = vrot.slane %v8342_v50, 9  ;;  %v3777_v38 = vpop.permute.xlu0 %3776 }
 0x322   : > { %v3533_v61 = vld [vmem:[#allocation2 + $0x30] sm:$0x1]  ;;  %3489 = vst.msk [vmem:[#allocation2 + $0x38] sm:$0xf] %vm3470_vm0, %v3413_v59  ;;  %v3321_v2 = vrot.slane %v3319_v55, 7  ;;  %v3306_v3 = vshll.u32 %v8342_v50, 16 }
 0x323   : > { %3180 = vst.msk [vmem:[#allocation2 + $0x70] sm:$0xe] %vm3164_vm5, %v3120_v56  ;;  %v3116_v6 = vrot.slane %v8342_v50, 7  ;;  %v3534_v5 = vsel %vm8220_vm12, 0, %v3533_v61  ;;  %v3970_v7 = vrot.slane %v8350_v37, 5  ;;  %v6577_v8 = vpack.c.bf16 %v3006_v58, %v3006_v58 }
 0x324   : > { %3640 = vst.msk [vmem:[#allocation2 + $0x38] sm:$0xf] %vm3632_vm8, %v3575_v25  ;;  %v3327_v9 = vshrl.u32 %v8350_v37, 16  ;;  %3535 = vst [vmem:[#allocation2 + $0x30] sm:$0x1] %v3534_v5  ;;  %v3324_v1 = vor.u32 %v3322_v60, %v3321_v2  ;;  %v3330_v10 = vshll.u32 %v8350_v37, 16 }
 0x325   : > { %v3305_v12 = vrot.slane %v3303_v23, 7  ;;  %v3121_v13 = vrot.slane %v3120_v56, 4  ;;  %3178 = vst.msk [vmem:[#allocation2 + $0x60] sm:$0xe] %vm3164_vm5, %v3116_v6  ;;  %v3971_v52 = vsel %vm8056_vm9, %v6304_v54, %v3970_v7  ;;  %v3972_v16 = vrot.slane %v3970_v7, 4  ;;  %3586 = vrot.lane.b32.xlu1 %v6577_v8, %s7154_s13  ;;  %v3409_v20 = vpop.permute.xlu1 %3408  ;;  %3590 = vrot.lane.b32.xlu0 %v8350_v37, %s7154_s13  ;;  %v3783_v43 = vpop.permute.xlu0 %3782 }
 0x326   : > { %3639 = vst.msk [vmem:[#allocation2 + $0x30] sm:$0xf] %vm3632_vm8, %v3573_v24  ;;  %v3965_v18 = vrot.slane %v6577_v8, 5  ;;  %v3329_v21 = vrot.slane %v3327_v9, 7  ;;  %v3530_v22 = vld [vmem:[#allocation2 + $0x20] sm:$0x1] }
 0x327   : > { %4032 = vst.msk [vmem:[#allocation2 + $0x74] sm:$0xf] %vm3166_vm14, %v3971_v52  ;;  %v3325_v24 = vrot.slane %v3321_v2, 4  ;;  %v3308_v25 = vor.u32 %v3306_v3, %v3305_v12  ;;  %v3311_v27 = vshrl.u32 %v6577_v8, 16  ;;  %v3314_v28 = vshll.u32 %v6577_v8, 16 }
 0x328   : > { %3855 = vst.msk [vmem:[#allocation2 + $0x30] sm:$0xf] %vm3840_vm11, %v3781_v46  ;;  %v3531_v31 = vsel %vm8220_vm12, 0, %v3530_v22  ;;  %v3966_v32 = vsel %vm8056_vm9, %v6303_v62, %v3965_v18  ;;  %v3967_v33 = vrot.slane %v3965_v18, 4  ;;  %v3332_v34 = vor.u32 %v3330_v10, %v3329_v21  ;;  %v8447_v22 = vld [vmem:[%s9286_s4] ss:$0 sm:$0xff] }
 0x329   : > { %3485 = vst.msk [vmem:[#allocation2 + $0x28] sm:$0xf] %vm3470_vm0, %v3409_v20  ;;  %3532 = vst [vmem:[#allocation2 + $0x20] sm:$0x1] %v3531_v31  ;;  %v3313_v30 = vrot.slane %v3311_v27, 7  ;;  %v8389_v35 = vrot.slane %v3330_v10, 5  ;;  %3426 = vrot.lane.b32.xlu0 %v3324_v1, %s7155_s23 }
 0x32a   : > { %4033 = vst.msk [vmem:[#allocation2 + $0x7c] sm:$0x7] %vm4018_vm2, %v3972_v16  ;;  %v3729_v36 = vrot.slane %v3327_v9, 4  ;;  %v8391_v41 = vrot.slane %v3314_v28, 5  ;;  %4031 = vst.msk [vmem:[#allocation2 + $0x6c] sm:$0x7] %vm4018_vm2, %v3967_v33 }
 0x32b   : > { %3638 = vst.msk [vmem:[#allocation2 + $0x28] sm:$0xf] %vm3632_vm8, %v8332_v29  ;;  %3637 = vst.msk [vmem:[#allocation2 + $0x20] sm:$0xf] %vm3632_vm8, %v8329_v26  ;;  %v3333_v29 = vsel %vm8101_vm13, %v3325_v24, %v3332_v34  ;;  %v3309_v44 = vrot.slane %v3305_v12, 4  ;;  %v3720_v46 = vrot.slane %v3311_v27, 4  ;;  %v3316_v49 = vor.u32 %v3314_v28, %v3313_v30 }
 0x32c   : > { %4030 = vst.msk [vmem:[#allocation2 + $0x64] sm:$0xf] %vm3166_vm14, %v3966_v32  ;;  %v3122_v47 = vrot.slane %v8350_v37, 7  ;;  %v3856_v48 = vld [vmem:[#allocation2 + $0x38] sm:$0xf]  ;;  %3428 = vrot.lane.b32.xlu1 %v3333_v29, %s7155_s23  ;;  %v3117_v50 = vrot.slane %v3116_v6, 4  ;;  %v3730_v54 = vor.u32 %v3729_v36, %v8389_v35  ;;  %v3779_v6 = vpop.permute.xlu1 %3778 }
 0x32d   : > { %3851 = vst.msk [vmem:[#allocation2 + $0x20] sm:$0xf] %vm3840_vm11, %v3777_v38  ;;  %v3118_v26 = vrot.slane %v6577_v8, 7  ;;  %v3714_v51 = vrot.slane %v3303_v23, 4  ;;  %v3857_v53 = vsel %vm8275_vm6, %v3783_v43, %v3856_v48  ;;  %v3715_v58 = vrot.slane %v3306_v3, 5  ;;  %3422 = vrot.lane.b32.xlu0 %v3308_v25, %s7155_s23 }
 0x32e   : > { %v3123_v56 = vsel %vm8107_vm15, %v3121_v13, %v3122_v47  ;;  %3858 = vst [vmem:[#allocation2 + $0x38] sm:$0xf] %v3857_v53  ;;  %v3721_v37 = vor.u32 %v3720_v46, %v8391_v41  ;;  %v3723_v23 = vrot.slane %v3319_v55, 4  ;;  %v3317_v61 = vsel %vm8101_vm13, %v3309_v44, %v3316_v49  ;;  %v3494_v31 = vld [vmem:[#allocation2 + $0x50] sm:$0xf] }
 0x32f   : > { %3181 = vst.msk [vmem:[#allocation2 + $0x78] sm:$0xf] %vm3166_vm14, %v3123_v56  ;;  %v3119_v59 = vsel %vm8107_vm15, %v3117_v50, %v3118_v26  ;;  %v3716_v62 = vor.u32 %v3715_v58, %v3714_v51  ;;  %v3724_v2 = vrot.slane %v3322_v60, 5  ;;  %v3731_v7 = vrot.slane %v3730_v54, 4  ;;  %v3490_v49 = vld [vmem:[#allocation2 + $0x40] sm:$0xf] }
 0x330   : > { %3179 = vst.msk [vmem:[#allocation2 + $0x68] sm:$0xf] %vm3166_vm14, %v3119_v59  ;;  %3424 = vrot.lane.b32.xlu1 %v3317_v61, %s7155_s23  ;;  %v3722_v9 = vrot.slane %v3721_v37, 4 }
 0x331   : > { %v8422_v55 = vrot.slane %v3716_v62, 4  ;;  %v3725_v8 = vor.u32 %v3724_v2, %v3723_v23  ;;  %3798 = vrot.lane.b32.xlu0 %v3731_v7, %s7156_s10 }
 0x332   : > { %v3852_v3 = vld [vmem:[#allocation2 + $0x28] sm:$0xf] }
 0x333   : > { %v3853_v5 = vsel %vm8275_vm6, %v3779_v6, %v3852_v3  ;;  %v3719_v39 = vsel %vm8089_vm10, %v8422_v55, %v8391_v41  ;;  %v8429_v60 = vrot.slane %v3725_v8, 4 }
 0x334   : > { %3854 = vst [vmem:[#allocation2 + $0x28] sm:$0xf] %v3853_v5  ;;  %3794 = vrot.lane.b32.xlu1 %v3722_v9, %s7156_s10 }
 0x335   : > { %v3903_v38 = vld [vmem:[#allocation2 + $0x38] sm:$0x8]  ;;  %v3728_v1 = vsel %vm8089_vm10, %v8429_v60, %v8389_v35 }
 0x336   : > { %v3904_v10 = vsel %vm8312_vm7, 0, %v3903_v38 }
 0x337   : > { %3905 = vst [vmem:[#allocation2 + $0x38] sm:$0x8] %v3904_v10 }
 0x33b   : > { %v3900_v12 = vld [vmem:[#allocation2 + $0x28] sm:$0x8] }
 0x33c   : > { %v3901_v13 = vsel %vm8312_vm7, 0, %v3900_v12 }
 0x33d   : > { %3902 = vst [vmem:[#allocation2 + $0x28] sm:$0x8] %v3901_v13 }
 0x351   : > { %v8440_v52 = vpop.permute.xlu1 %3580 }
 0x353   : > { %v8442_v16 = vpop.permute.xlu0 %3576 }
 0x357   : > { %v3579_v18 = vpop.permute.xlu1 %3578  ;;  %v3583_v20 = vpop.permute.xlu0 %3582 }
 0x358   : > { %v6718_v21 = vpop.f32.mrf.mxu1 }
 0x359   : > { %v2971_v24 = vadd.f32 %v8447_v22, %v6718_v21 }
 0x35a   : > { %v2962_v25 = vpop.f32.mrf.mxu1 }
 0x35b   : > { %v3011_v27 = vmax.f32 %v2971_v24, 0.0  ;;  %v2963_v28 = vadd.f32 %v8447_v22, %v2962_v25  ;;  %v3419_v32 = vpop.permute.xlu0 %3418 }
 0x35c   : > { %v3495_v33 = vsel %vm8198_vm4, %v3419_v32, %v3494_v31  ;;  %v6719_v34 = vpop.f32.mrf.mxu1 }
 0x35d   : > { %v8453_v36 = vpack.c.bf16 %v3011_v27, %v3011_v27  ;;  %v3009_v29 = vmax.f32 %v2963_v28, 0.0  ;;  %3496 = vst [vmem:[#allocation2 + $0x50] sm:$0xf] %v3495_v33  ;;  %v2974_v44 = vadd.f32 %v8447_v22, %v6719_v34 }
 0x35e   : > { %v3421_v30 = vpop.permute.xlu1 %3420  ;;  %v2965_v46 = vpop.f32.mrf.mxu1 }
 0x35f   : > { %3497 = vst.msk [vmem:[#allocation2 + $0x58] sm:$0xf] %vm3470_vm0, %v3421_v30  ;;  %v8458_v47 = vpack.c.bf16 %v3009_v29, %v3009_v29  ;;  %v3012_v48 = vmax.f32 %v2974_v44, 0.0  ;;  %v2966_v43 = vadd.f32 %v8447_v22, %v2965_v46  ;;  %3596 = vrot.lane.b32.xlu1 %v8453_v36, %s7154_s13  ;;  %v3415_v50 = vpop.permute.xlu0 %3414  ;;  %v3351_v53 = vshrl.u32 %v8453_v36, 16 }
 0x360   : > { %3644 = vst.msk [vmem:[#allocation2 + $0x58] sm:$0xf] %vm3632_vm8, %v3583_v20  ;;  %v3491_v26 = vsel %vm8198_vm4, %v3415_v50, %v3490_v49  ;;  %v3354_v54 = vshll.u32 %v8453_v36, 16  ;;  %v3128_v56 = vrot.slane %v8453_v36, 7  ;;  %v6306_v58 = vrot.slane %v8453_v36, 9 }
 0x361   : > { %v8469_v37 = vpack.c.bf16 %v3012_v48, %v3012_v48  ;;  %v3010_v59 = vmax.f32 %v2966_v43, 0.0  ;;  %3492 = vst [vmem:[#allocation2 + $0x40] sm:$0xf] %v3491_v26  ;;  %3592 = vrot.lane.b32.xlu0 %v8458_v47, %s7154_s13  ;;  %v6305_v23 = vrot.slane %v8458_v47, 9  ;;  %v3353_v61 = vrot.slane %v3351_v53, 7 }
 0x362   : > { %v3417_v51 = vpop.permute.xlu1 %3416  ;;  %v3335_v62 = vshrl.u32 %v8458_v47, 16  ;;  %v3338_v2 = vshll.u32 %v8458_v47, 16  ;;  %3184 = vst.msk [vmem:[#allocation2 + $0x90] sm:$0xe] %vm3164_vm5, %v3128_v56  ;;  %v3741_v12 = vrot.slane %v3351_v53, 4  ;;  %v3742_v13 = vrot.slane %v3354_v54, 5 }
 0x363   : > { %3493 = vst.msk [vmem:[#allocation2 + $0x48] sm:$0xf] %vm3470_vm0, %v3417_v51  ;;  %v3980_v3 = vrot.slane %v8469_v37, 5  ;;  %v8482_v6 = vpack.c.bf16 %v3010_v59, %v3010_v59  ;;  %v3785_v5 = vpop.permute.xlu0 %3784  ;;  %v3359_v7 = vshrl.u32 %v8469_v37, 16  ;;  %v3362_v8 = vshll.u32 %v8469_v37, 16 }
 0x364   : > { %3642 = vst.msk [vmem:[#allocation2 + $0x48] sm:$0xf] %vm3632_vm8, %v3579_v18  ;;  %v3539_v9 = vld [vmem:[#allocation2 + $0x50] sm:$0x1]  ;;  %v3356_v38 = vor.u32 %v3354_v54, %v3353_v61  ;;  %v3357_v10 = vrot.slane %v3353_v61, 4  ;;  %v3337_v27 = vrot.slane %v3335_v62, 7 }
 0x365   : > { %v3540_v18 = vsel %vm8220_vm12, 0, %v3539_v9  ;;  %v3981_v20 = vsel %vm8056_vm9, %v6306_v58, %v3980_v3  ;;  %v3982_v21 = vrot.slane %v3980_v3, 4  ;;  %v3975_v24 = vrot.slane %v8482_v6, 5  ;;  %3594 = vrot.lane.b32.xlu1 %v8482_v6, %s7154_s13  ;;  %3598 = vrot.lane.b32.xlu0 %v8469_v37, %s7154_s13 }
 0x366   : > { %3541 = vst [vmem:[#allocation2 + $0x50] sm:$0x1] %v3540_v18  ;;  %4036 = vst.msk [vmem:[#allocation2 + $0x94] sm:$0xf] %vm3166_vm14, %v3981_v20  ;;  %v3361_v25 = vrot.slane %v3359_v7, 7  ;;  %v3343_v28 = vshrl.u32 %v8482_v6, 16  ;;  %v3787_v51 = vpop.permute.xlu1 %3786 }
 0x367   : > { %v3732_v31 = vrot.slane %v3335_v62, 4  ;;  %3643 = vst.msk [vmem:[#allocation2 + $0x50] sm:$0xf] %vm3632_vm8, %v8440_v52  ;;  %v3976_v32 = vsel %vm8056_vm9, %v6305_v23, %v3975_v24  ;;  %v3977_v33 = vrot.slane %v3975_v24, 4  ;;  %v3864_v34 = vld [vmem:[#allocation2 + $0x58] sm:$0xf]  ;;  %v3791_v30 = vpop.permute.xlu0 %3790  ;;  %v3340_v62 = vor.u32 %v3338_v2, %v3337_v27 }
 0x368   : > { %4037 = vst.msk [vmem:[#allocation2 + $0x9c] sm:$0x7] %vm4018_vm2, %v3982_v21  ;;  %v3346_v29 = vshll.u32 %v8482_v6, 16  ;;  %v8503_v44 = vrot.slane %v3362_v8, 5  ;;  %v3536_v46 = vld [vmem:[#allocation2 + $0x40] sm:$0x1]  ;;  %v3865_v48 = vsel %vm8275_vm6, %v3791_v30, %v3864_v34  ;;  %v3364_v43 = vor.u32 %v3362_v8, %v3361_v25 }
 0x369   : > { %4034 = vst.msk [vmem:[#allocation2 + $0x84] sm:$0xf] %vm3166_vm14, %v3976_v32  ;;  %v3345_v52 = vrot.slane %v3343_v28, 7  ;;  %v3747_v49 = vrot.slane %v3359_v7, 4  ;;  %v3537_v50 = vsel %vm8220_vm12, 0, %v3536_v46  ;;  %3434 = vrot.lane.b32.xlu0 %v3356_v38, %s7155_s23  ;;  %v3738_v54 = vrot.slane %v3343_v28, 4 }
 0x36a   : > { %4035 = vst.msk [vmem:[#allocation2 + $0x8c] sm:$0x7] %vm4018_vm2, %v3977_v33  ;;  %3866 = vst [vmem:[#allocation2 + $0x58] sm:$0xf] %v3865_v48  ;;  %v8512_v53 = vrot.slane %v3346_v29, 5  ;;  %v3733_v58 = vrot.slane %v3338_v2, 5  ;;  %v3365_v23 = vsel %vm8101_vm13, %v3357_v10, %v3364_v43  ;;  %v3743_v8 = vor.u32 %v3742_v13, %v3741_v12 }
 0x36b   : > { %v3860_v26 = vld [vmem:[#allocation2 + $0x48] sm:$0xf]  ;;  %3538 = vst [vmem:[#allocation2 + $0x40] sm:$0x1] %v3537_v50  ;;  %v3348_v61 = vor.u32 %v3346_v29, %v3345_v52  ;;  %3436 = vrot.lane.b32.xlu1 %v3365_v23, %s7155_s23  ;;  %v3748_v3 = vor.u32 %v3747_v49, %v8503_v44  ;;  %v3341_v9 = vrot.slane %v3337_v27, 4  ;;  %v3129_v38 = vrot.slane %v3128_v56, 4 }
 0x36c   : > { %v3861_v59 = vsel %vm8275_vm6, %v3787_v51, %v3860_v26  ;;  %3641 = vst.msk [vmem:[#allocation2 + $0x40] sm:$0xf] %vm3632_vm8, %v8442_v16  ;;  %v3734_v7 = vor.u32 %v3733_v58, %v3732_v31  ;;  %v3130_v10 = vrot.slane %v8469_v37, 7  ;;  %v3124_v18 = vrot.slane %v8458_v47, 7  ;;  %v3502_v52 = vld [vmem:[#allocation2 + $0x70] sm:$0xf] }
 0x36d   : > { %3862 = vst [vmem:[#allocation2 + $0x48] sm:$0xf] %v3861_v59  ;;  %3859 = vst.msk [vmem:[#allocation2 + $0x40] sm:$0xf] %vm3840_vm11, %v3785_v5  ;;  %3430 = vrot.lane.b32.xlu0 %v3340_v62, %s7155_s23  ;;  %v3739_v16 = vor.u32 %v3738_v54, %v8512_v53  ;;  %v8531_v2 = vrot.slane %v3743_v8, 4  ;;  %v3126_v12 = vrot.slane %v8482_v6, 7  ;;  %v3349_v5 = vsel %vm8101_vm13, %v3341_v9, %v3348_v61 }
 0x36e   : > { %v8529_v20 = vrot.slane %v3734_v7, 4  ;;  %v3131_v36 = vsel %vm8107_vm15, %v3129_v38, %v3130_v10  ;;  %3182 = vst.msk [vmem:[#allocation2 + $0x80] sm:$0xe] %vm3164_vm5, %v3124_v18  ;;  %v3125_v56 = vrot.slane %v3124_v18, 4  ;;  %v3749_v47 = vrot.slane %v3748_v3, 4 }
 0x36f   : > { %3432 = vrot.lane.b32.xlu1 %v3349_v5, %s7155_s23  ;;  %v3746_v6 = vsel %vm8089_vm10, %v8531_v2, %v8503_v44  ;;  %3185 = vst.msk [vmem:[#allocation2 + $0x98] sm:$0xf] %vm3166_vm14, %v3131_v36  ;;  %v3740_v25 = vrot.slane %v3739_v16, 4  ;;  %v3498_v7 = vld [vmem:[#allocation2 + $0x60] sm:$0xf] }
 0x370   : > { %v3737_v37 = vsel %vm8089_vm10, %v8529_v20, %v8512_v53  ;;  %v3127_v21 = vsel %vm8107_vm15, %v3125_v56, %v3126_v12  ;;  %v3510_v53 = vld [vmem:[#allocation2 + $0x90] sm:$0xf] }
 0x371   : > { %v3909_v13 = vld [vmem:[#allocation2 + $0x58] sm:$0x8]  ;;  %3806 = vrot.lane.b32.xlu0 %v3749_v47, %s7156_s10  ;;  %3183 = vst.msk [vmem:[#allocation2 + $0x88] sm:$0xf] %vm3166_vm14, %v3127_v21 }
 0x372   : > { %v3910_v24 = vsel %vm8312_vm7, 0, %v3909_v13 }
 0x373   : > { %3911 = vst [vmem:[#allocation2 + $0x58] sm:$0x8] %v3910_v24  ;;  %3802 = vrot.lane.b32.xlu1 %v3740_v25, %s7156_s10 }
 0x374   : > { %v3906_v27 = vld [vmem:[#allocation2 + $0x48] sm:$0x8] }
 0x375   : > { %v3907_v28 = vsel %vm8312_vm7, 0, %v3906_v27  ;;  %v3506_v44 = vld [vmem:[#allocation2 + $0x80] sm:$0xf] }
 0x376   : > { %3908 = vst [vmem:[#allocation2 + $0x48] sm:$0x8] %v3907_v28 }
 0x391   : > { %v3589_v31 = vpop.permute.xlu1 %3588 }
 0x393   : > { %v8558_v32 = vpop.permute.xlu0 %3584 }
 0x397   : > { %v3587_v33 = vpop.permute.xlu1 %3586  ;;  %v3591_v34 = vpop.permute.xlu0 %3590 }
 0x398   : > { %v6722_v30 = vpop.f32.mrf.mxu1 }
 0x399   : > { %v2987_v29 = vadd.f32 %v8447_v22, %v6722_v30 }
 0x39a   : > { %v2978_v46 = vpop.f32.mrf.mxu1 }
 0x39b   : > { %v3015_v48 = vmax.f32 %v2987_v29, 0.0  ;;  %v2979_v43 = vadd.f32 %v8447_v22, %v2978_v46  ;;  %v3427_v49 = vpop.permute.xlu0 %3426 }
 0x39c   : > { %v3503_v50 = vsel %vm8198_vm4, %v3427_v49, %v3502_v52  ;;  %v6723_v26 = vpop.f32.mrf.mxu1 }
 0x39d   : > { %v8564_v54 = vpack.c.bf16 %v3015_v48, %v3015_v48  ;;  %v3013_v58 = vmax.f32 %v2979_v43, 0.0  ;;  %3504 = vst [vmem:[#allocation2 + $0x70] sm:$0xf] %v3503_v50  ;;  %v2990_v59 = vadd.f32 %v8447_v22, %v6723_v26 }
 0x39e   : > { %v3429_v51 = vpop.permute.xlu1 %3428  ;;  %v2981_v23 = vpop.f32.mrf.mxu1 }
 0x39f   : > { %3505 = vst.msk [vmem:[#allocation2 + $0x78] sm:$0xf] %vm3470_vm0, %v3429_v51  ;;  %v8569_v61 = vpack.c.bf16 %v3013_v58, %v3013_v58  ;;  %v3016_v62 = vmax.f32 %v2990_v59, 0.0  ;;  %v2982_v3 = vadd.f32 %v8447_v22, %v2981_v23  ;;  %3604 = vrot.lane.b32.xlu1 %v8564_v54, %s7154_s13  ;;  %v3423_v8 = vpop.permute.xlu0 %3422  ;;  %v3383_v10 = vshrl.u32 %v8564_v54, 16 }
 0x3a0   : > { %3648 = vst.msk [vmem:[#allocation2 + $0x78] sm:$0xf] %vm3632_vm8, %v3591_v34  ;;  %v3499_v9 = vsel %vm8198_vm4, %v3423_v8, %v3498_v7  ;;  %v3136_v18 = vrot.slane %v8564_v54, 7  ;;  %v6308_v22 = vrot.slane %v8564_v54, 9  ;;  %v3386_v25 = vshll.u32 %v8564_v54, 16 }
 0x3a1   : > { %v8578_v16 = vpack.c.bf16 %v3016_v62, %v3016_v62  ;;  %v3014_v12 = vmax.f32 %v2982_v3, 0.0  ;;  %3500 = vst [vmem:[#allocation2 + $0x60] sm:$0xf] %v3499_v9  ;;  %3600 = vrot.lane.b32.xlu0 %v8569_v61, %s7154_s13  ;;  %v3385_v5 = vrot.slane %v3383_v10, 7  ;;  %v3367_v13 = vshrl.u32 %v8569_v61, 16 }
 0x3a2   : > { %v3425_v38 = vpop.permute.xlu1 %3424  ;;  %3188 = vst.msk [vmem:[#allocation2 + $0xb0] sm:$0xe] %vm3164_vm5, %v3136_v18  ;;  %v6307_v21 = vrot.slane %v8569_v61, 9  ;;  %v3370_v8 = vshll.u32 %v8569_v61, 16 }
 0x3a3   : > { %3501 = vst.msk [vmem:[#allocation2 + $0x68] sm:$0xf] %vm3470_vm0, %v3425_v38  ;;  %v3990_v36 = vrot.slane %v8578_v16, 5  ;;  %v8589_v56 = vpack.c.bf16 %v3014_v12, %v3014_v12  ;;  %v3391_v47 = vshrl.u32 %v8578_v16, 16  ;;  %v3394_v27 = vshll.u32 %v8578_v16, 16  ;;  %v3799_v46 = vpop.permute.xlu0 %3798 }
 0x3a4   : > { %3646 = vst.msk [vmem:[#allocation2 + $0x68] sm:$0xf] %vm3632_vm8, %v3587_v33  ;;  %v3545_v24 = vld [vmem:[#allocation2 + $0x70] sm:$0x1]  ;;  %v3388_v43 = vor.u32 %v3386_v25, %v3385_v5  ;;  %v3369_v26 = vrot.slane %v3367_v13, 7  ;;  %v3389_v59 = vrot.slane %v3385_v5, 4 }
 0x3a5   : > { %v3546_v28 = vsel %vm8220_vm12, 0, %v3545_v24  ;;  %v3991_v33 = vsel %vm8056_vm9, %v6308_v22, %v3990_v36  ;;  %v3992_v34 = vrot.slane %v3990_v36, 4  ;;  %v3985_v30 = vrot.slane %v8589_v56, 5  ;;  %3602 = vrot.lane.b32.xlu1 %v8589_v56, %s7154_s13  ;;  %3606 = vrot.lane.b32.xlu0 %v8578_v16, %s7154_s13 }
 0x3a6   : > { %3547 = vst [vmem:[#allocation2 + $0x70] sm:$0x1] %v3546_v28  ;;  %4040 = vst.msk [vmem:[#allocation2 + $0xb4] sm:$0xf] %vm3166_vm14, %v3991_v33  ;;  %v3393_v52 = vrot.slane %v3391_v47, 7  ;;  %v3375_v51 = vshrl.u32 %v8589_v56, 16  ;;  %v3795_v7 = vpop.permute.xlu1 %3794  ;;  %v3372_v5 = vor.u32 %v3370_v8, %v3369_v26 }
 0x3a7   : > { %v3872_v29 = vld [vmem:[#allocation2 + $0x78] sm:$0xf]  ;;  %3647 = vst.msk [vmem:[#allocation2 + $0x70] sm:$0xf] %vm3632_vm8, %v3589_v31  ;;  %v3986_v49 = vsel %vm8056_vm9, %v6307_v21, %v3985_v30  ;;  %v3987_v50 = vrot.slane %v3985_v30, 4  ;;  %v3763_v62 = vrot.slane %v3394_v27, 5 }
 0x3a8   : > { %v3873_v48 = vsel %vm8275_vm6, %v3799_v46, %v3872_v29  ;;  %4041 = vst.msk [vmem:[#allocation2 + $0xbc] sm:$0x7] %vm4018_vm2, %v3992_v34  ;;  %v3542_v58 = vld [vmem:[#allocation2 + $0x60] sm:$0x1]  ;;  %v3396_v23 = vor.u32 %v3394_v27, %v3393_v52  ;;  %v3765_v3 = vrot.slane %v3391_v47, 4  ;;  %v3377_v9 = vrot.slane %v3375_v51, 7 }
 0x3a9   : > { %3874 = vst [vmem:[#allocation2 + $0x78] sm:$0xf] %v3873_v48  ;;  %4038 = vst.msk [vmem:[#allocation2 + $0xa4] sm:$0xf] %vm3166_vm14, %v3986_v49  ;;  %v3543_v45 = vsel %vm8220_vm12, 0, %v3542_v58  ;;  %3442 = vrot.lane.b32.xlu0 %v3388_v43, %s7155_s23  ;;  %v3378_v38 = vshll.u32 %v8589_v56, 16 }
 0x3aa   : > { %4039 = vst.msk [vmem:[#allocation2 + $0xac] sm:$0x7] %vm4018_vm2, %v3987_v50  ;;  %3544 = vst [vmem:[#allocation2 + $0x60] sm:$0x1] %v3543_v45  ;;  %v3397_v22 = vsel %vm8101_vm13, %v3389_v59, %v3396_v23  ;;  %v3766_v47 = vor.u32 %v3765_v3, %v3763_v62  ;;  %v3373_v21 = vrot.slane %v3369_v26, 4  ;;  %v3137_v24 = vrot.slane %v3136_v18, 4 }
 0x3ab   : > { %v3868_v31 = vld [vmem:[#allocation2 + $0x68] sm:$0xf]  ;;  %3645 = vst.msk [vmem:[#allocation2 + $0x60] sm:$0xf] %vm3632_vm8, %v8558_v32  ;;  %3444 = vrot.lane.b32.xlu1 %v3397_v22, %s7155_s23  ;;  %v3380_v36 = vor.u32 %v3378_v38, %v3377_v9  ;;  %v3138_v27 = vrot.slane %v8578_v16, 7  ;;  %v3132_v28 = vrot.slane %v8569_v61, 7 }
 0x3ac   : > { %v3869_v12 = vsel %vm8275_vm6, %v3795_v7, %v3868_v31  ;;  %v3754_v33 = vrot.slane %v3378_v38, 5  ;;  %v3756_v34 = vrot.slane %v3375_v51, 4  ;;  %v3134_v30 = vrot.slane %v8589_v56, 7 }
 0x3ad   : > { %3870 = vst [vmem:[#allocation2 + $0x68] sm:$0xf] %v3869_v12  ;;  %3438 = vrot.lane.b32.xlu0 %v3372_v5, %s7155_s23  ;;  %v3381_v32 = vsel %vm8101_vm13, %v3373_v21, %v3380_v36  ;;  %v3139_v46 = vsel %vm8107_vm15, %v3137_v24, %v3138_v27  ;;  %3186 = vst.msk [vmem:[#allocation2 + $0xa0] sm:$0xe] %vm3164_vm5, %v3132_v28  ;;  %v3133_v18 = vrot.slane %v3132_v28, 4  ;;  %v3767_v48 = vrot.slane %v3766_v47, 4 }
 0x3ae   : > { %3189 = vst.msk [vmem:[#allocation2 + $0xb8] sm:$0xf] %vm3166_vm14, %v3139_v46  ;;  %v3750_v56 = vrot.slane %v3367_v13, 4  ;;  %v3751_v14 = vrot.slane %v3370_v8, 5  ;;  %v3757_v52 = vor.u32 %v3756_v34, %v3754_v33  ;;  %v3759_v13 = vrot.slane %v3383_v10, 4 }
 0x3af   : > { %3440 = vrot.lane.b32.xlu1 %v3381_v32, %s7155_s23  ;;  %v3135_v43 = vsel %vm8107_vm15, %v3133_v18, %v3134_v30  ;;  %v3760_v26 = vrot.slane %v3386_v25, 5  ;;  %v3518_v47 = vld [vmem:[#allocation2 + $0xb0] sm:$0xf] }
 0x3b0   : > { %v3915_v29 = vld [vmem:[#allocation2 + $0x78] sm:$0x8]  ;;  %3187 = vst.msk [vmem:[#allocation2 + $0xa8] sm:$0xf] %vm3166_vm14, %v3135_v43  ;;  %v3752_v61 = vor.u32 %v3751_v14, %v3750_v56  ;;  %v3758_v17 = vrot.slane %v3757_v52, 4 }
 0x3b1   : > { %v3916_v16 = vsel %vm8312_vm7, 0, %v3915_v29  ;;  %3814 = vrot.lane.b32.xlu0 %v3767_v48, %s7156_s10  ;;  %v3761_v15 = vor.u32 %v3760_v26, %v3759_v13 }
 0x3b2   : > { %3917 = vst [vmem:[#allocation2 + $0x78] sm:$0x8] %v3916_v16  ;;  %v3753_v57 = vrot.slane %v3752_v61, 4 }
 0x3b3   : > { %3788 = vrot.lane.b32.xlu1 %v3710_v19, %s7156_s10  ;;  %v3762_v41 = vrot.slane %v3761_v15, 4 }
 0x3b4   : > { %v3912_v49 = vld [vmem:[#allocation2 + $0x68] sm:$0x8]  ;;  %v3755_v19 = vsel %vm8089_vm10, %v3753_v57, %v3754_v33  ;;  %v3514_v28 = vld [vmem:[#allocation2 + $0xa0] sm:$0xf] }
 0x3b5   : > { %v3913_v50 = vsel %vm8312_vm7, 0, %v3912_v49  ;;  %3792 = vrot.lane.b32.xlu0 %v3719_v39, %s7156_s10  ;;  %v3764_v55 = vsel %vm8089_vm10, %v3762_v41, %v3763_v62 }
 0x3b6   : > { %3914 = vst [vmem:[#allocation2 + $0x68] sm:$0x8] %v3913_v50 }
 0x3b7   : > { %3810 = vrot.lane.b32.xlu1 %v3758_v17, %s7156_s10 }
 0x3b9   : > { %3800 = vrot.lane.b32.xlu0 %v3737_v37, %s7156_s10 }
 0x3bb   : > { %3796 = vrot.lane.b32.xlu1 %v3728_v1, %s7156_s10 }
 0x3bd   : > { %3808 = vrot.lane.b32.xlu0 %v3755_v19, %s7156_s10 }
 0x3bf   : > { %3804 = vrot.lane.b32.xlu1 %v3746_v6, %s7156_s10 }
 0x3c3   : > { %3812 = vrot.lane.b32.xlu1 %v3764_v55, %s7156_s10 }
 0x3d1   : > { %v3597_v35 = vpop.permute.xlu1 %3596 }
 0x3d3   : > { %v3593_v39 = vpop.permute.xlu0 %3592 }
 0x3d7   : > { %v3595_v60 = vpop.permute.xlu1 %3594  ;;  %v3599_v1 = vpop.permute.xlu0 %3598 }
 0x3db   : > { %v3435_v20 = vpop.permute.xlu0 %3434 }
 0x3dc   : > { %v3511_v37 = vsel %vm8198_vm4, %v3435_v20, %v3510_v53 }
 0x3dd   : > { %3512 = vst [vmem:[#allocation2 + $0x90] sm:$0xf] %v3511_v37  ;;  %v3437_v54 = vpop.permute.xlu1 %3436 }
 0x3de   : > { %3513 = vst.msk [vmem:[#allocation2 + $0x98] sm:$0xf] %vm3470_vm0, %v3437_v54 }
 0x3df   : > { %3652 = vst.msk [vmem:[#allocation2 + $0x98] sm:$0xf] %vm3632_vm8, %v3599_v1  ;;  %v3431_v4 = vpop.permute.xlu0 %3430 }
 0x3e0   : > { %v3507_v2 = vsel %vm8198_vm4, %v3431_v4, %v3506_v44 }
 0x3e1   : > { %3508 = vst [vmem:[#allocation2 + $0x80] sm:$0xf] %v3507_v2  ;;  %v3433_v6 = vpop.permute.xlu1 %3432 }
 0x3e2   : > { %3509 = vst.msk [vmem:[#allocation2 + $0x88] sm:$0xf] %vm3470_vm0, %v3433_v6 }
 0x3e3   : > { %3650 = vst.msk [vmem:[#allocation2 + $0x88] sm:$0xf] %vm3632_vm8, %v3595_v60  ;;  %v3807_v58 = vpop.permute.xlu0 %3806 }
 0x3e4   : > { %v3551_v10 = vld [vmem:[#allocation2 + $0x90] sm:$0x1] }
 0x3e5   : > { %v3552_v25 = vsel %vm8220_vm12, 0, %v3551_v10  ;;  %v3803_v45 = vpop.permute.xlu1 %3802 }
 0x3e6   : > { %3553 = vst [vmem:[#allocation2 + $0x90] sm:$0x1] %v3552_v25  ;;  %v3880_v51 = vld [vmem:[#allocation2 + $0x98] sm:$0xf] }
 0x3e7   : > { %3651 = vst.msk [vmem:[#allocation2 + $0x90] sm:$0xf] %vm3632_vm8, %v3597_v35  ;;  %v3881_v59 = vsel %vm8275_vm6, %v3807_v58, %v3880_v51 }
 0x3e8   : > { %v3548_v23 = vld [vmem:[#allocation2 + $0x80] sm:$0x1]  ;;  %3882 = vst [vmem:[#allocation2 + $0x98] sm:$0xf] %v3881_v59 }
 0x3e9   : > { %v3549_v62 = vsel %vm8220_vm12, 0, %v3548_v23 }
 0x3ea   : > { %3550 = vst [vmem:[#allocation2 + $0x80] sm:$0x1] %v3549_v62  ;;  %v3876_v3 = vld [vmem:[#allocation2 + $0x88] sm:$0xf] }
 0x3eb   : > { %3649 = vst.msk [vmem:[#allocation2 + $0x80] sm:$0xf] %vm3632_vm8, %v3593_v39  ;;  %v3877_v31 = vsel %vm8275_vm6, %v3803_v45, %v3876_v3 }
 0x3ec   : > { %3878 = vst [vmem:[#allocation2 + $0x88] sm:$0xf] %v3877_v31 }
 0x3ef   : > { %v3921_v7 = vld [vmem:[#allocation2 + $0x98] sm:$0x8] }
 0x3f0   : > { %v3922_v8 = vsel %vm8312_vm7, 0, %v3921_v7 }
 0x3f1   : > { %3923 = vst [vmem:[#allocation2 + $0x98] sm:$0x8] %v3922_v8 }
 0x3f3   : > { %v3918_v9 = vld [vmem:[#allocation2 + $0x88] sm:$0x8] }
 0x3f4   : > { %v3919_v38 = vsel %vm8312_vm7, 0, %v3918_v9 }
 0x3f5   : > { %3920 = vst [vmem:[#allocation2 + $0x88] sm:$0x8] %v3919_v38 }
 0x411   : > { %v3605_v12 = vpop.permute.xlu1 %3604 }
 0x413   : > { %v3601_v22 = vpop.permute.xlu0 %3600 }
 0x417   : > { %v3603_v5 = vpop.permute.xlu1 %3602  ;;  %v3607_v36 = vpop.permute.xlu0 %3606 }
 0x41b   : > { %v3443_v21 = vpop.permute.xlu0 %3442 }
 0x41c   : > { %v3519_v24 = vsel %vm8198_vm4, %v3443_v21, %v3518_v47 }
 0x41d   : > { %3520 = vst [vmem:[#allocation2 + $0xb0] sm:$0xf] %v3519_v24  ;;  %v3445_v27 = vpop.permute.xlu1 %3444 }
 0x41e   : > { %3521 = vst.msk [vmem:[#allocation2 + $0xb8] sm:$0xf] %vm3470_vm0, %v3445_v27 }
 0x41f   : > { %3656 = vst.msk [vmem:[#allocation2 + $0xb8] sm:$0xf] %vm3632_vm8, %v3607_v36  ;;  %v3439_v33 = vpop.permute.xlu0 %3438 }
 0x420   : > { %v3515_v34 = vsel %vm8198_vm4, %v3439_v33, %v3514_v28 }
 0x421   : > { %3516 = vst [vmem:[#allocation2 + $0xa0] sm:$0xf] %v3515_v34  ;;  %v3441_v30 = vpop.permute.xlu1 %3440 }
 0x422   : > { %3517 = vst.msk [vmem:[#allocation2 + $0xa8] sm:$0xf] %vm3470_vm0, %v3441_v30 }
 0x423   : > { %3654 = vst.msk [vmem:[#allocation2 + $0xa8] sm:$0xf] %vm3632_vm8, %v3603_v5  ;;  %v3815_v29 = vpop.permute.xlu0 %3814 }
 0x424   : > { %v3557_v32 = vld [vmem:[#allocation2 + $0xb0] sm:$0x1] }
 0x425   : > { %v3558_v46 = vsel %vm8220_vm12, 0, %v3557_v32  ;;  %v3789_v18 = vpop.permute.xlu1 %3788 }
 0x426   : > { %3559 = vst [vmem:[#allocation2 + $0xb0] sm:$0x1] %v3558_v46  ;;  %v3888_v16 = vld [vmem:[#allocation2 + $0xb8] sm:$0xf]  ;;  %3863 = vst.msk [vmem:[#allocation2 + $0x50] sm:$0xf] %vm3840_vm11, %v3789_v18 }
 0x427   : > { %3655 = vst.msk [vmem:[#allocation2 + $0xb0] sm:$0xf] %vm3632_vm8, %v3605_v12  ;;  %v3889_v40 = vsel %vm8275_vm6, %v3815_v29, %v3888_v16  ;;  %v3793_v48 = vpop.permute.xlu0 %3792 }
 0x428   : > { %v3554_v56 = vld [vmem:[#allocation2 + $0xa0] sm:$0x1]  ;;  %3890 = vst [vmem:[#allocation2 + $0xb8] sm:$0xf] %v3889_v40  ;;  %3867 = vst.msk [vmem:[#allocation2 + $0x60] sm:$0xf] %vm3840_vm11, %v3793_v48 }
 0x429   : > { %v3555_v14 = vsel %vm8220_vm12, 0, %v3554_v56  ;;  %v3811_v43 = vpop.permute.xlu1 %3810 }
 0x42a   : > { %3556 = vst [vmem:[#allocation2 + $0xa0] sm:$0x1] %v3555_v14  ;;  %v3884_v52 = vld [vmem:[#allocation2 + $0xa8] sm:$0xf] }
 0x42b   : > { %3653 = vst.msk [vmem:[#allocation2 + $0xa0] sm:$0xf] %vm3632_vm8, %v3601_v22  ;;  %v3885_v49 = vsel %vm8275_vm6, %v3811_v43, %v3884_v52  ;;  %v3801_v50 = vpop.permute.xlu0 %3800 }
 0x42c   : > { %3886 = vst [vmem:[#allocation2 + $0xa8] sm:$0xf] %v3885_v49  ;;  %3875 = vst.msk [vmem:[#allocation2 + $0x80] sm:$0xf] %vm3840_vm11, %v3801_v50 }
 0x42d   : > { %v3797_v61 = vpop.permute.xlu1 %3796 }
 0x42e   : > { %3871 = vst.msk [vmem:[#allocation2 + $0x70] sm:$0xf] %vm3840_vm11, %v3797_v61 }
 0x42f   : > { %v3927_v17 = vld [vmem:[#allocation2 + $0xb8] sm:$0x8]  ;;  %v3809_v13 = vpop.permute.xlu0 %3808 }
 0x430   : > { %v3928_v0 = vsel %vm8312_vm7, 0, %v3927_v17  ;;  %3883 = vst.msk [vmem:[#allocation2 + $0xa0] sm:$0xf] %vm3840_vm11, %v3809_v13 }
 0x431   : > { %3929 = vst [vmem:[#allocation2 + $0xb8] sm:$0x8] %v3928_v0  ;;  %v3805_v26 = vpop.permute.xlu1 %3804 }
 0x432   : > { %3879 = vst.msk [vmem:[#allocation2 + $0x90] sm:$0xf] %vm3840_vm11, %v3805_v26  ;;  %4058 = sbr.rel (%p6309_p8) target bundleno = 1083 (0x43b), region = 52 }
 0x433   : > { %v3924_v42 = vld [vmem:[#allocation2 + $0xa8] sm:$0x8] }
 0x434   : > { %v3925_v57 = vsel %vm8312_vm7, 0, %v3924_v42 }
 0x435   : > { %3926 = vst [vmem:[#allocation2 + $0xa8] sm:$0x8] %v3925_v57  ;;  %v3813_v15 = vpop.permute.xlu1 %3812 }
 0x436   : > { %3887 = vst.msk [vmem:[#allocation2 + $0xb0] sm:$0xf] %vm3840_vm11, %v3813_v15 }
 0x437   : > { %vm4059_vm14 = vcmask 1043456   ;;  %vm4060_vm2 = vcmask 261124   ;;  %v7157_v19 = vmov 0  }
 0x438   : > { %vm4061_vm5 = vmor %vm4060_vm2, %vm4059_vm14 }
 0x439   : > { %4062 = vst.msk [vmem:[#allocation2] sm:$0xff] %vm4061_vm5, %v7157_v19  ;;  %4063 = vst.msk [vmem:[#allocation2 + $0x8] sm:$0xff] %vm4061_vm5, %v7157_v19 }
 0x43a   : > { %4064 = vst.msk [vmem:[#allocation2 + $0x10] sm:$0xff] %vm4061_vm5, %v7157_v19  ;;  %4065 = vst.msk [vmem:[#allocation2 + $0x18] sm:$0xff] %vm4061_vm5, %v7157_v19 }
 0x43b PF: > { %p6310_p9 = scmp.ne.s32.totalorder %s7126_s24, 1 }
 0x43d   : > { %4069 = sbr.rel (%p6310_p9) target bundleno = 1094 (0x446), region = 56 }
 0x442   : > { %vm4071_vm9 = vcmask 1043456   ;;  %vm4072_vm10 = vcmask 261124   ;;  %v7158_v11 = vmov 0  }
 0x443   : > { %vm4073_vm13 = vmor %vm4072_vm10, %vm4071_vm9 }
 0x444   : > { %4074 = vst.msk [vmem:[#allocation2 + $0xa0] sm:$0xff] %vm4073_vm13, %v7158_v11  ;;  %4075 = vst.msk [vmem:[#allocation2 + $0xa8] sm:$0xff] %vm4073_vm13, %v7158_v11 }
 0x445   : > { %4076 = vst.msk [vmem:[#allocation2 + $0xb0] sm:$0xff] %vm4073_vm13, %v7158_v11  ;;  %4077 = vst.msk [vmem:[#allocation2 + $0xb8] sm:$0xff] %vm4073_vm13, %v7158_v11 }
 0x446 PF: > { %4309 = vmatprep.subr.bf16.mxu1 %v7153_v63  ;;  %4562 = vmatprep.subr.bf16.mxu0 %v7153_v63  ;;  %v7018_v41 = vld [vmem:[%s9287_s5 + $0x88] sm:$0xff]   ;;  %v7019_v55 = vld [vmem:[%s9287_s5 + $0x38] sm:$0xff]   ;;  %v7020_v35 = vld [vmem:[%s9287_s5 + $0x80] sm:$0xff]   ;;  %vm4284_vm15 = vcmask 261120   ;;  %vm5603_vm0 = vcmask 23552  }
 0x447   : > { %4310 = vmatpush1.bf16.msra.mxu1 %v7018_v41  ;;  %4563 = vmatpush1.bf16.msra.mxu0 %v7019_v55  ;;  %v7021_v39 = vld [vmem:[%s9287_s5 + $0x30] sm:$0xff]   ;;  %v7022_v60 = vld [vmem:[%s9287_s5 + $0x78] sm:$0xff]   ;;  %v7023_v1 = vld [vmem:[%s9287_s5 + $0x28] sm:$0xff]  }
 0x448   : > { %4311 = vmatprep.subr.bf16.mxu1 %v7153_v63  ;;  %4564 = vmatprep.subr.bf16.mxu0 %v7153_v63  ;;  %v7024_v53 = vld [vmem:[%s9287_s5 + $0x70] sm:$0xff]   ;;  %v7025_v20 = vld [vmem:[%s9287_s5 + $0x20] sm:$0xff]   ;;  %v7026_v37 = vld [vmem:[%s9287_s5 + $0x68] sm:$0xff]  }
 0x449   : > { %v7027_v54 = vld [vmem:[%s9287_s5 + $0x18] sm:$0xff]   ;;  %v7028_v44 = vld [vmem:[%s9287_s5 + $0x60] sm:$0xff]   ;;  %v7029_v4 = vld [vmem:[%s9287_s5 + $0x10] sm:$0xff]  }
 0x44a   : > { %v7040_v2 = vld [vmem:[#allocation2 + $0x14] ss:$8 sps:$4 sm:$0xff]   ;;  %v7043_v10 = vld [vmem:[#allocation2 + $0x4] ss:$8 sps:$4 sm:$0xff]   ;;  %v7038_v45 = vld [vmem:[#allocation2 + $0x10] ss:$8 sps:$4 sm:$0xff]  }
 0x44b   : > { %4312 = vmatpush1.bf16.msra.mxu1 %v7020_v35  ;;  %4565 = vmatpush1.bf16.msra.mxu0 %v7021_v39  ;;  %v7030_v6 = vld [vmem:[%s9287_s5 + $0x58] sm:$0xff]   ;;  %v7031_v25 = vld [vmem:[%s9287_s5 + $0x8] sm:$0xff]   ;;  %v7032_v51 = vld [vmem:[%s9287_s5 + $0x50] sm:$0xff]  }
 0x44c   : > { %4313 = vmatprep.subr.bf16.mxu1 %v7153_v63  ;;  %4566 = vmatprep.subr.bf16.mxu0 %v7153_v63  ;;  %v7033_v58 = vld [vmem:[%s9287_s5] sm:$0xff]   ;;  %v7034_v59 = vld [vmem:[%s9287_s5 + $0x98] sm:$0xff]   ;;  %v7035_v23 = vld [vmem:[%s9287_s5 + $0x48] sm:$0xff]  }
 0x44d   : > { %6357 = vmatprep.mubr.msk.bf16.mxu1 %vm4284_vm15, %v7040_v2  ;;  %6391 = vmatprep.mubr.msk.bf16.mxu0 %vm4284_vm15, %v7043_v10  ;;  %v7036_v62 = vld [vmem:[%s9287_s5 + $0x90] sm:$0xff]   ;;  %v7037_v3 = vld [vmem:[%s9287_s5 + $0x40] sm:$0xff]   ;;  %v7044_v7 = vld [vmem:[%s9287_s5 + $0xd8] sm:$0xff]  }
 0x44e   : > { %v7041_v31 = vld [vmem:[#allocation2] ss:$8 sps:$4 sm:$0xff]   ;;  %v8832_v8 = vld [vmem:[#allocation2 + $0x24] ss:$8 sps:$4 sm:$0xff]   ;;  %v7048_v38 = vld [vmem:[%s9287_s5 + $0xd0] sm:$0xff]  }
 0x44f   : > { %4314 = vmatpush1.bf16.msra.mxu1 %v7022_v60  ;;  %4567 = vmatpush1.bf16.msra.mxu0 %v7023_v1  ;;  %v7058_v9 = vld [vmem:[%s9287_s5 + $0x128] sm:$0xff]   ;;  %v7061_v12 = vld [vmem:[%s9287_s5 + $0x120] sm:$0xff]   ;;  %v8855_v36 = vld [vmem:[#allocation2 + $0x34] ss:$8 sps:$4 sm:$0xff]  }
 0x450   : > { %4315 = vmatprep.subr.bf16.mxu1 %v7153_v63  ;;  %4568 = vmatprep.subr.bf16.mxu0 %v7153_v63  ;;  %v8848_v22 = vld [vmem:[#allocation2 + $0x20] ss:$8 sps:$4 sm:$0xff]   ;;  %v7064_v47 = vld [vmem:[%s9287_s5 + $0x118] sm:$0xff]   ;;  %v7067_v24 = vld [vmem:[%s9287_s5 + $0x110] sm:$0xff]  }
 0x451   : > { %v7049_v5 = vld [vmem:[%s9287_s5 + $0xc8] sm:$0xff]   ;;  %v7053_v21 = vld [vmem:[%s9287_s5 + $0xc0] sm:$0xff]   ;;  %v8873_v27 = vld [vmem:[#allocation2 + $0x30] ss:$8 sps:$4 sm:$0xff]  }
 0x452   : > { %v8876_v28 = vld [vmem:[#allocation2 + $0x44] ss:$8 sps:$4 sm:$0xff]   ;;  %v7057_v33 = vld [vmem:[%s9287_s5 + $0xb8] sm:$0xff]   ;;  %v7063_v30 = vld [vmem:[%s9287_s5 + $0xb0] sm:$0xff]  }
 0x453   : > { %4316 = vmatpush1.bf16.msra.mxu1 %v7024_v53  ;;  %4569 = vmatpush1.bf16.msra.mxu0 %v7025_v20  ;;  %v7070_v34 = vld [vmem:[%s9287_s5 + $0x108] sm:$0xff]   ;;  %v7074_v29 = vld [vmem:[%s9287_s5 + $0x100] sm:$0xff]   ;;  %v8902_v46 = vld [vmem:[#allocation2 + $0x54] ss:$8 sps:$4 sm:$0xff]  }
 0x454   : > { %4317 = vmatprep.subr.bf16.mxu1 %v7153_v63  ;;  %4570 = vmatprep.subr.bf16.mxu0 %v7153_v63  ;;  %v8899_v32 = vld [vmem:[#allocation2 + $0x40] ss:$8 sps:$4 sm:$0xff]   ;;  %v7076_v16 = vld [vmem:[%s9287_s5 + $0xf8] sm:$0xff]   ;;  %v7080_v48 = vld [vmem:[%s9287_s5 + $0xf0] sm:$0xff]  }
 0x455   : > { %v7069_v18 = vld [vmem:[%s9287_s5 + $0xa8] sm:$0xff]   ;;  %v7071_v40 = vld [vmem:[%s9287_s5 + $0xa0] sm:$0xff]   ;;  %v8925_v56 = vld [vmem:[#allocation2 + $0x50] ss:$8 sps:$4 sm:$0xff]  }
 0x456   : > { %v8928_v14 = vld [vmem:[#allocation2 + $0x64] ss:$8 sps:$4 sm:$0xff]   ;;  %v7083_v52 = vld [vmem:[%s9287_s5 + $0x138] sm:$0xff]   ;;  %v7084_v50 = vld [vmem:[%s9287_s5 + $0x130] sm:$0xff]  }
 0x457   : > { %4318 = vmatpush1.bf16.msra.mxu1 %v7026_v37  ;;  %4571 = vmatpush1.bf16.msra.mxu0 %v7027_v54  ;;  %v7077_v43 = vld [vmem:[%s9287_s5 + $0xe8] sm:$0xff]   ;;  %v7082_v49 = vld [vmem:[%s9287_s5 + $0xe0] sm:$0xff]   ;;  %v8954_v17 = vld [vmem:[#allocation2 + $0x74] ss:$8 sps:$4 sm:$0xff]  }
 0x458   : > { %4319 = vmatprep.subr.bf16.mxu1 %v7153_v63  ;;  %4572 = vmatprep.subr.bf16.mxu0 %v7153_v63  ;;  %v8951_v61 = vld [vmem:[#allocation2 + $0x60] ss:$8 sps:$4 sm:$0xff]   ;;  %v8963_v13 = vld [vmem:[#allocation2 + $0x70] ss:$8 sps:$4 sm:$0xff]   ;;  %v8965_v0 = vld [vmem:[#allocation2 + $0x84] ss:$8 sps:$4 sm:$0xff]  }
 0x459   : > { %v8973_v26 = vld [vmem:[#allocation2 + $0x80] ss:$8 sps:$4 sm:$0xff]   ;;  %v7085_v42 = vld [vmem:[%s9287_s5 + $0x178] sm:$0xff]   ;;  %v7086_v57 = vld [vmem:[%s9287_s5 + $0x170] sm:$0xff]  }
 0x45a   : > { %v7087_v15 = vld [vmem:[%s9287_s5 + $0x168] sm:$0xff]   ;;  %v7088_v19 = vld [vmem:[%s9287_s5 + $0x160] sm:$0xff]   ;;  %v7089_v11 = vld [vmem:[%s9287_s5 + $0x158] sm:$0xff]  }
 0x45b   : > { %4320 = vmatpush1.bf16.msra.mxu1 %v7028_v44  ;;  %4573 = vmatpush1.bf16.msra.mxu0 %v7029_v4  ;;  %v7090_v41 = vld [vmem:[%s9287_s5 + $0x150] sm:$0xff]   ;;  %v7091_v55 = vld [vmem:[%s9287_s5 + $0x148] sm:$0xff]   ;;  %v7092_v35 = vld [vmem:[%s9287_s5 + $0x140] sm:$0xff]  }
 0x45c   : > { %4321 = vmatprep.subr.bf16.mxu1 %v7153_v63  ;;  %4574 = vmatprep.subr.bf16.mxu0 %v7153_v63  ;;  %v7096_v39 = vld [vmem:[%s9287_s5 + $0x188] sm:$0xff]   ;;  %v7100_v60 = vld [vmem:[%s9287_s5 + $0x180] sm:$0xff]   ;;  %v7093_v1 = vld [vmem:[#allocation2 + $0x94] ss:$8 sps:$4 sm:$0xff]  }
 0x45d   : > { %v7095_v53 = vld [vmem:[#allocation2 + $0x90] ss:$8 sps:$4 sm:$0xff]   ;;  %v7097_v20 = vld [vmem:[#allocation2 + $0xa4] ss:$8 sps:$4 sm:$0xff]   ;;  %v7101_v37 = vld [vmem:[#allocation2 + $0xb4] ss:$8 sps:$4 sm:$0xff]  }
 0x45e   : > { %v7103_v54 = vld [vmem:[#allocation2 + $0xb0] ss:$8 sps:$4 sm:$0xff]  }
 0x45f   : > { %4322 = vmatpush1.bf16.msra.mxu1 %v7030_v6  ;;  %4575 = vmatpush1.bf16.msra.mxu0 %v7031_v25 }
 0x460   : > { %4323 = vmatprep.subr.bf16.mxu1 %v7153_v63  ;;  %4576 = vmatprep.subr.bf16.mxu0 %v7153_v63 }
 0x463   : > { %4324 = vmatpush1.bf16.msra.mxu1 %v7032_v51  ;;  %4577 = vmatpush1.bf16.msra.mxu0 %v7033_v58 }
 0x464   : > { %4337 = vmatprep.subr.bf16.mxu1 %v7153_v63  ;;  %4590 = vmatprep.subr.bf16.mxu0 %v7153_v63 }
 0x467   : > { %4338 = vmatpush2.bf16.msra.mxu1 %v7034_v59  ;;  %4591 = vmatpush2.bf16.msra.mxu0 %v7035_v23 }
 0x468   : > { %4339 = vmatprep.subr.bf16.mxu1 %v7153_v63  ;;  %4592 = vmatprep.subr.bf16.mxu0 %v7153_v63 }
 0x46b   : > { %4340 = vmatpush2.bf16.msra.mxu1 %v7036_v62  ;;  %4593 = vmatpush2.bf16.msra.mxu0 %v7037_v3 }
 0x46c   : > { %4853 = vmatprep.subr.bf16.mxu1 %v7153_v63  ;;  %5160 = vmatprep.subr.bf16.mxu0 %v7153_v63 }
 0x46e   : > { %4342 = vmatmul.mubr.bf16.vlgmr.msra.gmra.mxu1 %v7038_v45  ;;  %4595 = vmatmul.mubr.bf16.vlgmr.msra.gmra.mxu0 %v7041_v31 }
 0x46f   : > { %4854 = vmatpush1.bf16.msra.mxu1 %v7044_v7  ;;  %6358 = vmatprep.mubr.msk.bf16.mxu1 %vm4284_vm15, %v8832_v8 }
 0x470   : > { %6392 = vmatprep.mubr.msk.bf16.mxu0 %vm4284_vm15, %v7040_v2  ;;  %4855 = vmatprep.subr.bf16.mxu1 %v7153_v63 }
 0x471   : > { %5161 = vmatpush1.bf16.msra.mxu0 %v7058_v9 }
 0x472   : > { %5162 = vmatprep.subr.bf16.mxu0 %v7153_v63 }
 0x473   : > { %4856 = vmatpush1.bf16.msra.mxu1 %v7048_v38 }
 0x474   : > { %4857 = vmatprep.subr.bf16.mxu1 %v7153_v63 }
 0x475   : > { %5163 = vmatpush1.bf16.msra.mxu0 %v7061_v12 }
 0x476   : > { %4350 = vmatmul.mubr.bf16.gmra.mxu1 %v8848_v22  ;;  %5164 = vmatprep.subr.bf16.mxu0 %v7153_v63 }
 0x477   : > { %4603 = vmatmul.mubr.bf16.gmra.mxu0 %v7038_v45  ;;  %4858 = vmatpush1.bf16.msra.mxu1 %v7049_v5 }
 0x478   : > { %6359 = vmatprep.mubr.msk.bf16.mxu1 %vm4284_vm15, %v8855_v36  ;;  %6393 = vmatprep.mubr.msk.bf16.mxu0 %vm4284_vm15, %v8832_v8 }
 0x479   : > { %4859 = vmatprep.subr.bf16.mxu1 %v7153_v63  ;;  %5165 = vmatpush1.bf16.msra.mxu0 %v7064_v47 }
 0x47a   : > { %5166 = vmatprep.subr.bf16.mxu0 %v7153_v63 }
 0x47b   : > { %4860 = vmatpush1.bf16.msra.mxu1 %v7053_v21 }
 0x47c   : > { %4861 = vmatprep.subr.bf16.mxu1 %v7153_v63 }
 0x47d   : > { %5167 = vmatpush1.bf16.msra.mxu0 %v7067_v24 }
 0x47e   : > { %4358 = vmatmul.mubr.bf16.gmra.mxu1 %v8873_v27  ;;  %5168 = vmatprep.subr.bf16.mxu0 %v7153_v63 }
 0x47f   : > { %4611 = vmatmul.mubr.bf16.gmra.mxu0 %v8848_v22  ;;  %6360 = vmatprep.mubr.msk.bf16.mxu1 %vm4284_vm15, %v8876_v28 }
 0x480   : > { %6394 = vmatprep.mubr.msk.bf16.mxu0 %vm4284_vm15, %v8855_v36  ;;  %4862 = vmatpush1.bf16.msra.mxu1 %v7057_v33 }
 0x481   : > { %4863 = vmatprep.subr.bf16.mxu1 %v7153_v63  ;;  %5169 = vmatpush1.bf16.msra.mxu0 %v7070_v34 }
 0x482   : > { %5170 = vmatprep.subr.bf16.mxu0 %v7153_v63 }
 0x484   : > { %4864 = vmatpush1.bf16.msra.mxu1 %v7063_v30 }
 0x485   : > { %4865 = vmatprep.subr.bf16.mxu1 %v7153_v63  ;;  %5171 = vmatpush1.bf16.msra.mxu0 %v7074_v29 }
 0x486   : > { %4366 = vmatmul.mubr.bf16.gmra.mxu1 %v8899_v32  ;;  %5172 = vmatprep.subr.bf16.mxu0 %v7153_v63 }
 0x487   : > { %4619 = vmatmul.mubr.bf16.gmra.mxu0 %v8873_v27  ;;  %6361 = vmatprep.mubr.msk.bf16.mxu1 %vm4284_vm15, %v8902_v46 }
 0x488   : > { %6395 = vmatprep.mubr.msk.bf16.mxu0 %vm4284_vm15, %v8876_v28  ;;  %4866 = vmatpush1.bf16.msra.mxu1 %v7069_v18 }
 0x489   : > { %4867 = vmatprep.subr.bf16.mxu1 %v7153_v63  ;;  %5173 = vmatpush1.bf16.msra.mxu0 %v7076_v16 }
 0x48a   : > { %5174 = vmatprep.subr.bf16.mxu0 %v7153_v63 }
 0x48c   : > { %4868 = vmatpush1.bf16.msra.mxu1 %v7071_v40 }
 0x48d   : > { %4881 = vmatprep.subr.bf16.mxu1 %v7153_v63  ;;  %5175 = vmatpush1.bf16.msra.mxu0 %v7080_v48 }
 0x48e   : > { %4374 = vmatmul.mubr.bf16.gmra.mxu1 %v8925_v56  ;;  %5188 = vmatprep.subr.bf16.mxu0 %v7153_v63 }
 0x48f   : > { %4627 = vmatmul.mubr.bf16.gmra.mxu0 %v8899_v32  ;;  %6362 = vmatprep.mubr.msk.bf16.mxu1 %vm4284_vm15, %v8928_v14 }
 0x490   : > { %6396 = vmatprep.mubr.msk.bf16.mxu0 %vm4284_vm15, %v8902_v46  ;;  %4882 = vmatpush2.bf16.msra.mxu1 %v7077_v43 }
 0x491   : > { %4883 = vmatprep.subr.bf16.mxu1 %v7153_v63  ;;  %5189 = vmatpush2.bf16.msra.mxu0 %v7083_v52 }
 0x492   : > { %5190 = vmatprep.subr.bf16.mxu0 %v7153_v63 }
 0x494   : > { %4884 = vmatpush2.bf16.msra.mxu1 %v7082_v49 }
 0x495   : > { %5191 = vmatpush2.bf16.msra.mxu0 %v7084_v50  ;;  %5467 = vmatprep.subr.bf16.mxu1 %v7153_v63 }
 0x496   : > { %4382 = vmatmul.mubr.bf16.gmra.mxu1 %v8951_v61 }
 0x497   : > { %4635 = vmatmul.mubr.bf16.gmra.mxu0 %v8925_v56  ;;  %6363 = vmatprep.mubr.msk.bf16.mxu1 %vm4284_vm15, %v8954_v17 }
 0x498   : > { %6397 = vmatprep.mubr.msk.bf16.mxu0 %vm4284_vm15, %v8928_v14 }
 0x49e   : > { %4390 = vmatmul.mubr.bf16.gmra.mxu1 %v8963_v13 }
 0x49f   : > { %4643 = vmatmul.mubr.bf16.gmra.mxu0 %v8951_v61  ;;  %6364 = vmatprep.mubr.msk.bf16.mxu1 %vm4284_vm15, %v8965_v0 }
 0x4a0   : > { %6398 = vmatprep.mubr.msk.bf16.mxu0 %vm4284_vm15, %v8954_v17 }
 0x4a6   : > { %4398 = vmatmul.mubr.bf16.gmra.mxu1 %v8973_v26 }
 0x4a7   : > { %4651 = vmatmul.mubr.bf16.gmra.mxu0 %v8963_v13  ;;  %6445 = vmatprep.mubr.msk.bf16.mxu1 %vm4284_vm15, %v8832_v8 }
 0x4a8   : > { %6499 = vmatprep.mubr.msk.bf16.mxu0 %vm4284_vm15, %v8855_v36 }
 0x4ae   : > { %4886 = vmatmul.mubr.bf16.vlgmr.msra.gmra.mxu1 %v8848_v22 }
 0x4af   : > { %5468 = vmatpush1.bf16.msra.mxu1 %v7085_v42  ;;  %5193 = vmatmul.mubr.bf16.vlgmr.msra.gmra.mxu0 %v8873_v27 }
 0x4b0   : > { %6446 = vmatprep.mubr.msk.bf16.mxu1 %vm4284_vm15, %v8855_v36  ;;  %5469 = vmatprep.subr.bf16.mxu1 %v7153_v63 }
 0x4b1   : > { %6500 = vmatprep.mubr.msk.bf16.mxu0 %vm4284_vm15, %v8876_v28 }
 0x4b3   : > { %5470 = vmatpush1.bf16.msra.mxu1 %v7086_v57 }
 0x4b4   : > { %5471 = vmatprep.subr.bf16.mxu1 %v7153_v63 }
 0x4b6   : > { %4894 = vmatmul.mubr.bf16.gmra.mxu1 %v8873_v27 }
 0x4b7   : > { %5201 = vmatmul.mubr.bf16.gmra.mxu0 %v8899_v32  ;;  %5472 = vmatpush1.bf16.msra.mxu1 %v7087_v15 }
 0x4b8   : > { %6447 = vmatprep.mubr.msk.bf16.mxu1 %vm4284_vm15, %v8876_v28  ;;  %6501 = vmatprep.mubr.msk.bf16.mxu0 %vm4284_vm15, %v8902_v46 }
 0x4b9   : > { %5473 = vmatprep.subr.bf16.mxu1 %v7153_v63 }
 0x4bb   : > { %5474 = vmatpush1.bf16.msra.mxu1 %v7088_v19 }
 0x4bc   : > { %5475 = vmatprep.subr.bf16.mxu1 %v7153_v63 }
 0x4be   : > { %4902 = vmatmul.mubr.bf16.gmra.mxu1 %v8899_v32 }
 0x4bf   : > { %5209 = vmatmul.mubr.bf16.gmra.mxu0 %v8925_v56  ;;  %6448 = vmatprep.mubr.msk.bf16.mxu1 %vm4284_vm15, %v8902_v46 }
 0x4c0   : > { %6502 = vmatprep.mubr.msk.bf16.mxu0 %vm4284_vm15, %v8928_v14  ;;  %5476 = vmatpush1.bf16.msra.mxu1 %v7089_v11 }
 0x4c1   : > { %5477 = vmatprep.subr.bf16.mxu1 %v7153_v63 }
 0x4c4   : > { %5478 = vmatpush1.bf16.msra.mxu1 %v7090_v41 }
 0x4c5   : > { %5479 = vmatprep.subr.bf16.mxu1 %v7153_v63 }
 0x4c6   : > { %4910 = vmatmul.mubr.bf16.gmra.mxu1 %v8925_v56 }
 0x4c7   : > { %5217 = vmatmul.mubr.bf16.gmra.mxu0 %v8951_v61  ;;  %6449 = vmatprep.mubr.msk.bf16.mxu1 %vm4284_vm15, %v8928_v14 }
 0x4c8   : > { %6503 = vmatprep.mubr.msk.bf16.mxu0 %vm4284_vm15, %v8954_v17  ;;  %5480 = vmatpush1.bf16.msra.mxu1 %v7091_v55 }
 0x4c9   : > { %5481 = vmatprep.subr.bf16.mxu1 %v7153_v63 }
 0x4cc   : > { %5482 = vmatpush1.bf16.msra.mxu1 %v7092_v35 }
 0x4cd   : > { %5495 = vmatprep.subr.bf16.mxu1 %v7153_v63 }
 0x4ce   : > { %4918 = vmatmul.mubr.bf16.gmra.mxu1 %v8951_v61 }
 0x4cf   : > { %5225 = vmatmul.mubr.bf16.gmra.mxu0 %v8963_v13  ;;  %6450 = vmatprep.mubr.msk.bf16.mxu1 %vm4284_vm15, %v8954_v17 }
 0x4d0   : > { %6504 = vmatprep.mubr.msk.bf16.mxu0 %vm4284_vm15, %v8965_v0  ;;  %5496 = vmatpush2.bf16.msra.mxu1 %v7096_v39 }
 0x4d1   : > { %5497 = vmatprep.subr.bf16.mxu1 %v7153_v63  ;;  %v7099_v63 = vld [vmem:[#allocation2 + $0xa0] ss:$8 sps:$4 sm:$0xff]  }
 0x4d4   : > { %5498 = vmatpush2.bf16.msra.mxu1 %v7100_v60 }
 0x4d6   : > { %4926 = vmatmul.mubr.bf16.gmra.mxu1 %v8963_v13 }
 0x4d7   : > { %5233 = vmatmul.mubr.bf16.gmra.mxu0 %v8973_v26  ;;  %6451 = vmatprep.mubr.msk.bf16.mxu1 %vm4284_vm15, %v8965_v0 }
 0x4d8   : > { %6505 = vmatprep.mubr.msk.bf16.mxu0 %vm4284_vm15, %v7093_v1 }
 0x4de   : > { %4934 = vmatmul.mubr.bf16.gmra.mxu1 %v8973_v26 }
 0x4df   : > { %5241 = vmatmul.mubr.bf16.gmra.mxu0 %v7095_v53  ;;  %6452 = vmatprep.mubr.msk.bf16.mxu1 %vm4284_vm15, %v7093_v1 }
 0x4e0   : > { %6506 = vmatprep.mubr.msk.bf16.mxu0 %vm4284_vm15, %v7097_v20 }
 0x4e6   : > { %4942 = vmatmul.mubr.bf16.gmra.mxu1 %v7095_v53 }
 0x4e7   : > { %5249 = vmatmul.mubr.bf16.gmra.mxu0 %v7099_v63  ;;  %6553 = vmatprep.mubr.msk.bf16.mxu1 %vm4284_vm15, %v8876_v28 }
 0x4ee   : > { %5500 = vmatmul.mubr.bf16.vlgmr.msra.gmra.mxu1 %v8899_v32 }
 0x4ef   : > { %6554 = vmatprep.mubr.msk.bf16.mxu1 %vm4284_vm15, %v8902_v46 }
 0x4f6   : > { %5508 = vmatmul.mubr.bf16.gmra.mxu1 %v8925_v56 }
 0x4f7   : > { %6555 = vmatprep.mubr.msk.bf16.mxu1 %vm4284_vm15, %v8928_v14 }
 0x4fe   : > { %5516 = vmatmul.mubr.bf16.gmra.mxu1 %v8951_v61 }
 0x4ff   : > { %6556 = vmatprep.mubr.msk.bf16.mxu1 %vm4284_vm15, %v8954_v17 }
 0x506   : > { %5524 = vmatmul.mubr.bf16.gmra.mxu1 %v8963_v13 }
 0x507   : > { %6557 = vmatprep.mubr.msk.bf16.mxu1 %vm4284_vm15, %v8965_v0 }
 0x50e   : > { %5532 = vmatmul.mubr.bf16.gmra.mxu1 %v8973_v26 }
 0x50f   : > { %6558 = vmatprep.mubr.msk.bf16.mxu1 %vm4284_vm15, %v7093_v1 }
 0x516   : > { %5540 = vmatmul.mubr.bf16.gmra.mxu1 %v7095_v53 }
 0x517   : > { %6559 = vmatprep.mubr.msk.bf16.mxu1 %vm4284_vm15, %v7097_v20 }
 0x51e   : > { %5548 = vmatmul.mubr.bf16.gmra.mxu1 %v7099_v63 }
 0x51f   : > { %6560 = vmatprep.mubr.msk.bf16.mxu1 %vm4284_vm15, %v7101_v37 }
 0x526   : > { %5556 = vmatmul.mubr.bf16.gmra.mxu1 %v7103_v54 }
 0x52e   : > { %v4343_v44 = vpop.f32.mrf.mxu1  ;;  %v4596_v4 = vpop.f32.mrf.mxu0 }
 0x52f   : > { %v9076_v2 = vadd.f32 %v4596_v4, %v4343_v44 }
 0x530   : > { %v4345_v6 = vpop.f32.mrf.mxu1  ;;  %v4598_v10 = vpop.f32.mrf.mxu0 }
 0x532   : > { %v4346_v25 = vpop.f32.mrf.mxu1  ;;  %v4599_v51 = vpop.f32.mrf.mxu0 }
 0x533   : > { %v9078_v58 = vadd.f32 %v4599_v51, %v4346_v25 }
 0x534   : > { %v4348_v59 = vpop.f32.mrf.mxu1  ;;  %v4601_v23 = vpop.f32.mrf.mxu0 }
 0x536   : > { %v4351_v62 = vpop.f32.mrf.mxu1 }
 0x537   : > { %v4604_v3 = vpop.f32.mrf.mxu0 }
 0x538   : > { %v9080_v45 = vadd.f32 %v4604_v3, %v4351_v62  ;;  %v4353_v31 = vpop.f32.mrf.mxu1 }
 0x539   : > { %v4606_v7 = vpop.f32.mrf.mxu0 }
 0x53a   : > { %v4354_v8 = vpop.f32.mrf.mxu1 }
 0x53b   : > { %v4607_v9 = vpop.f32.mrf.mxu0 }
 0x53c   : > { %v9082_v38 = vadd.f32 %v4607_v9, %v4354_v8  ;;  %v4356_v12 = vpop.f32.mrf.mxu1 }
 0x53d   : > { %v4609_v22 = vpop.f32.mrf.mxu0 }
 0x53e   : > { %v4359_v5 = vpop.f32.mrf.mxu1 }
 0x53f   : > { %v4612_v36 = vpop.f32.mrf.mxu0 }
 0x540   : > { %v9084_v47 = vadd.f32 %v4612_v36, %v4359_v5  ;;  %v4361_v21 = vpop.f32.mrf.mxu1 }
 0x541   : > { %v4614_v24 = vpop.f32.mrf.mxu0 }
 0x542   : > { %v4362_v27 = vpop.f32.mrf.mxu1 }
 0x543   : > { %v4615_v28 = vpop.f32.mrf.mxu0 }
 0x544   : > { %v9086_v33 = vadd.f32 %v4615_v28, %v4362_v27  ;;  %v4364_v34 = vpop.f32.mrf.mxu1 }
 0x545   : > { %v4617_v30 = vpop.f32.mrf.mxu0 }
 0x546   : > { %v4367_v29 = vpop.f32.mrf.mxu1 }
 0x547   : > { %v4620_v32 = vpop.f32.mrf.mxu0 }
 0x548   : > { %v9088_v46 = vadd.f32 %v4620_v32, %v4367_v29  ;;  %v4369_v18 = vpop.f32.mrf.mxu1 }
 0x549   : > { %v4622_v16 = vpop.f32.mrf.mxu0 }
 0x54a   : > { %v4370_v40 = vpop.f32.mrf.mxu1 }
 0x54b   : > { %v4623_v48 = vpop.f32.mrf.mxu0 }
 0x54c   : > { %v9090_v56 = vadd.f32 %v4623_v48, %v4370_v40  ;;  %v4372_v14 = vpop.f32.mrf.mxu1 }
 0x54d   : > { %v4625_v43 = vpop.f32.mrf.mxu0 }
 0x54e   : > { %v4375_v52 = vpop.f32.mrf.mxu1 }
 0x54f   : > { %v4628_v49 = vpop.f32.mrf.mxu0 }
 0x550   : > { %v9092_v50 = vadd.f32 %v4628_v49, %v4375_v52  ;;  %v4377_v61 = vpop.f32.mrf.mxu1 }
 0x551   : > { %v4630_v17 = vpop.f32.mrf.mxu0 }
 0x552   : > { %v4378_v13 = vpop.f32.mrf.mxu1 }
 0x553   : > { %v4631_v0 = vpop.f32.mrf.mxu0 }
 0x554   : > { %v9094_v26 = vadd.f32 %v4631_v0, %v4378_v13  ;;  %v4380_v42 = vpop.f32.mrf.mxu1 }
 0x555   : > { %v4633_v57 = vpop.f32.mrf.mxu0 }
 0x556   : > { %v4383_v15 = vpop.f32.mrf.mxu1 }
 0x557   : > { %v4636_v19 = vpop.f32.mrf.mxu0 }
 0x558   : > { %v9096_v11 = vadd.f32 %v4636_v19, %v4383_v15  ;;  %v4385_v41 = vpop.f32.mrf.mxu1 }
 0x559   : > { %v4638_v55 = vpop.f32.mrf.mxu0 }
 0x55a   : > { %v4386_v35 = vpop.f32.mrf.mxu1 }
 0x55b   : > { %v4639_v39 = vpop.f32.mrf.mxu0 }
 0x55c   : > { %v9098_v60 = vadd.f32 %v4639_v39, %v4386_v35  ;;  %v4388_v1 = vpop.f32.mrf.mxu1 }
 0x55d   : > { %v4641_v53 = vpop.f32.mrf.mxu0 }
 0x55e   : > { %v4391_v20 = vpop.f32.mrf.mxu1 }
 0x55f   : > { %v4644_v63 = vpop.f32.mrf.mxu0 }
 0x560   : > { %v9100_v37 = vadd.f32 %v4644_v63, %v4391_v20  ;;  %v4393_v54 = vpop.f32.mrf.mxu1 }
 0x561   : > { %v4646_v44 = vpop.f32.mrf.mxu0 }
 0x562   : > { %v4394_v4 = vpop.f32.mrf.mxu1 }
 0x563   : > { %v4647_v6 = vpop.f32.mrf.mxu0 }
 0x564   : > { %v9102_v10 = vadd.f32 %v4647_v6, %v4394_v4  ;;  %v4396_v25 = vpop.f32.mrf.mxu1 }
 0x565   : > { %v4649_v51 = vpop.f32.mrf.mxu0 }
 0x566   : > { %v4399_v59 = vpop.f32.mrf.mxu1 }
 0x567   : > { %v4652_v23 = vpop.f32.mrf.mxu0 }
 0x568   : > { %v9104_v62 = vadd.f32 %v4652_v23, %v4399_v59  ;;  %v4401_v3 = vpop.f32.mrf.mxu1 }
 0x569   : > { %v4654_v31 = vpop.f32.mrf.mxu0 }
 0x56a   : > { %v4402_v7 = vpop.f32.mrf.mxu1 }
 0x56b   : > { %v4655_v8 = vpop.f32.mrf.mxu0 }
 0x56c   : > { %v9106_v9 = vadd.f32 %v4655_v8, %v4402_v7  ;;  %v4404_v12 = vpop.f32.mrf.mxu1 }
 0x56d   : > { %v4657_v22 = vpop.f32.mrf.mxu0 }
 0x56e   : > { %v4887_v5 = vpop.f32.mrf.mxu1 }
 0x56f   : > { %v9108_v36 = vpop.f32.mrf.mxu0 }
 0x570   : > { %v4889_v21 = vpop.f32.mrf.mxu1 }
 0x571   : > { %v5196_v24 = vpop.f32.mrf.mxu0 }
 0x572   : > { %v4890_v27 = vpop.f32.mrf.mxu1 }
 0x573   : > { %v9110_v28 = vpop.f32.mrf.mxu0 }
 0x574   : > { %v4892_v34 = vpop.f32.mrf.mxu1 }
 0x575   : > { %v5199_v30 = vpop.f32.mrf.mxu0 }
 0x576   : > { %v9112_v29 = vpop.f32.mrf.mxu1 }
 0x577   : > { %v9114_v32 = vpop.f32.mrf.mxu0 }
 0x578   : > { %v4897_v18 = vpop.f32.mrf.mxu1 }
 0x579   : > { %v5204_v16 = vpop.f32.mrf.mxu0 }
 0x57a   : > { %v9116_v40 = vpop.f32.mrf.mxu1 }
 0x57b   : > { %v9118_v48 = vpop.f32.mrf.mxu0 }
 0x57c   : > { %v4900_v14 = vpop.f32.mrf.mxu1 }
 0x57d   : > { %v5207_v43 = vpop.f32.mrf.mxu0 }
 0x57e   : > { %v9120_v52 = vpop.f32.mrf.mxu1 }
 0x57f   : > { %v9122_v49 = vpop.f32.mrf.mxu0 }
 0x580   : > { %v4905_v61 = vpop.f32.mrf.mxu1 }
 0x581   : > { %v5212_v17 = vpop.f32.mrf.mxu0 }
 0x582   : > { %v9124_v13 = vpop.f32.mrf.mxu1 }
 0x583   : > { %v9126_v0 = vpop.f32.mrf.mxu0 }
 0x584   : > { %v4908_v42 = vpop.f32.mrf.mxu1 }
 0x585   : > { %v5215_v57 = vpop.f32.mrf.mxu0 }
 0x586   : > { %v9128_v15 = vpop.f32.mrf.mxu1  ;;  %v4950_v57 = vadd.f32 %v4887_v5, %v9076_v2 }
 0x587   : > { %v9130_v19 = vpop.f32.mrf.mxu0 }
 0x588   : > { %v4913_v41 = vpop.f32.mrf.mxu1 }
 0x589   : > { %v5220_v55 = vpop.f32.mrf.mxu0 }
 0x58a   : > { %v9132_v35 = vpop.f32.mrf.mxu1 }
 0x58b   : > { %v9134_v39 = vpop.f32.mrf.mxu0 }
 0x58c   : > { %v4916_v1 = vpop.f32.mrf.mxu1 }
 0x58d   : > { %v5223_v53 = vpop.f32.mrf.mxu0 }
 0x58e   : > { %v9136_v20 = vpop.f32.mrf.mxu1 }
 0x58f   : > { %v9138_v63 = vpop.f32.mrf.mxu0 }
 0x590   : > { %v4921_v54 = vpop.f32.mrf.mxu1 }
 0x591   : > { %v5228_v44 = vpop.f32.mrf.mxu0  ;;  %v5257_v54 = vadd.f32 %v9108_v36, %v4950_v57 }
 0x592   : > { %v9140_v4 = vpop.f32.mrf.mxu1  ;;  %v4951_v44 = vadd.f32 %v4890_v27, %v9078_v58 }
 0x593   : > { %v9142_v6 = vpop.f32.mrf.mxu0 }
 0x594   : > { %v4924_v25 = vpop.f32.mrf.mxu1 }
 0x595   : > { %v5231_v51 = vpop.f32.mrf.mxu0 }
 0x596   : > { %v9144_v59 = vpop.f32.mrf.mxu1 }
 0x597   : > { %v9146_v23 = vpop.f32.mrf.mxu0 }
 0x598   : > { %v4929_v3 = vpop.f32.mrf.mxu1 }
 0x599   : > { %v5236_v31 = vpop.f32.mrf.mxu0  ;;  %v9174_v3 = vld [vmem:[%s9288_s6] ss:$0 sm:$0xff] }
 0x59a   : > { %v9148_v7 = vpop.f32.mrf.mxu1  ;;  %v5258_v31 = vadd.f32 %v9110_v28, %v4951_v44 }
 0x59b   : > { %v9150_v8 = vpop.f32.mrf.mxu0 }
 0x59c   : > { %v4932_v12 = vpop.f32.mrf.mxu1 }
 0x59d   : > { %v5239_v22 = vpop.f32.mrf.mxu0  ;;  %v4952_v12 = vadd.f32 %v9112_v29, %v9080_v45 }
 0x59e   : > { %v9152_v21 = vpop.f32.mrf.mxu1 }
 0x59f   : > { %v9154_v24 = vpop.f32.mrf.mxu0 }
 0x5a0   : > { %v4937_v34 = vpop.f32.mrf.mxu1 }
 0x5a1   : > { %v5244_v30 = vpop.f32.mrf.mxu0  ;;  %v5259_v34 = vadd.f32 %v9114_v32, %v4952_v12 }
 0x5a2   : > { %v9156_v18 = vpop.f32.mrf.mxu1  ;;  %v4953_v30 = vadd.f32 %v9116_v40, %v9082_v38 }
 0x5a3   : > { %v9158_v16 = vpop.f32.mrf.mxu0 }
 0x5a4   : > { %v4940_v14 = vpop.f32.mrf.mxu1 }
 0x5a5   : > { %v5247_v43 = vpop.f32.mrf.mxu0 }
 0x5a6   : > { %v9160_v61 = vpop.f32.mrf.mxu1  ;;  %v5260_v43 = vadd.f32 %v9118_v48, %v4953_v30 }
 0x5a7   : > { %v9162_v17 = vpop.f32.mrf.mxu0 }
 0x5a8   : > { %v4945_v42 = vpop.f32.mrf.mxu1 }
 0x5a9   : > { %v5252_v41 = vpop.f32.mrf.mxu0  ;;  %v4954_v42 = vadd.f32 %v9120_v52, %v9084_v47 }
 0x5aa   : > { %v9165_v55 = vpop.f32.mrf.mxu1 }
 0x5ab   : > { %v9167_v1 = vpop.f32.mrf.mxu0  ;;  %v5261_v41 = vadd.f32 %v9122_v49, %v4954_v42 }
 0x5ac   : > { %v4948_v53 = vpop.f32.mrf.mxu1 }
 0x5ad   : > { %v5255_v25 = vpop.f32.mrf.mxu0  ;;  %v4955_v53 = vadd.f32 %v9124_v13, %v9086_v33 }
 0x5ae   : > { %v5501_v51 = vpop.f32.mrf.mxu1  ;;  %v4956_v25 = vadd.f32 %v9128_v15, %v9088_v46 }
 0x5af   : > { %v5564_v2 = vadd.f32 %v5501_v51, %v5257_v54  ;;  %v5262_v44 = vadd.f32 %v9126_v0, %v4955_v53 }
 0x5b0   : > { %v5503_v5 = vpop.f32.mrf.mxu1 }
 0x5b1   : > { %v5587_v36 = vadd.f32 %v9174_v3, %v5564_v2  ;;  %v5263_v2 = vadd.f32 %v9130_v19, %v4956_v25  ;;  %v4957_v5 = vadd.f32 %v9132_v35, %v9090_v56 }
 0x5b2   : > { %v5504_v58 = vpop.f32.mrf.mxu1 }
 0x5b3   : > { %5604 = vst.msk [vmem:[%s7281_s21] sm:$0xff] %vm5603_vm0, %v5587_v36  ;;  %v5565_v27 = vadd.f32 %v5504_v58, %v5258_v31  ;;  %v5264_v12 = vadd.f32 %v9134_v39, %v4957_v5  ;;  %v4958_v36 = vadd.f32 %v9136_v20, %v9092_v50 }
 0x5b4   : > { %v5506_v22 = vpop.f32.mrf.mxu1 }
 0x5b5   : > { %v5588_v14 = vadd.f32 %v9174_v3, %v5565_v27  ;;  %v5265_v27 = vadd.f32 %v9138_v63, %v4958_v36  ;;  %v4959_v22 = vadd.f32 %v9140_v4, %v9094_v26 }
 0x5b6   : > { %v5509_v28 = vpop.f32.mrf.mxu1 }
 0x5b7   : > { %5605 = vst.msk [vmem:[%s7281_s21 + $0x8] sm:$0xff] %vm5603_vm0, %v5588_v14  ;;  %v5566_v45 = vadd.f32 %v5509_v28, %v5259_v34  ;;  %v5266_v30 = vadd.f32 %v9142_v6, %v4959_v22  ;;  %v4960_v14 = vadd.f32 %v9144_v59, %v9096_v11 }
 0x5b8   : > { %v5511_v29 = vpop.f32.mrf.mxu1 }
 0x5b9   : > { %v5589_v57 = vadd.f32 %v9174_v3, %v5566_v45  ;;  %v5267_v45 = vadd.f32 %v9146_v23, %v4960_v14  ;;  %v4961_v29 = vadd.f32 %v9148_v7, %v9098_v60 }
 0x5ba   : > { %v5512_v32 = vpop.f32.mrf.mxu1 }
 0x5bb   : > { %5606 = vst.msk [vmem:[%s7281_s21 + $0x10] sm:$0xff] %vm5603_vm0, %v5589_v57  ;;  %v5567_v38 = vadd.f32 %v5512_v32, %v5260_v43  ;;  %v5268_v42 = vadd.f32 %v9150_v8, %v4961_v29  ;;  %v4962_v57 = vadd.f32 %v9152_v21, %v9100_v37 }
 0x5bc   : > { %v5514_v40 = vpop.f32.mrf.mxu1 }
 0x5bd   : > { %v5590_v54 = vadd.f32 %v9174_v3, %v5567_v38  ;;  %v5269_v38 = vadd.f32 %v9154_v24, %v4962_v57  ;;  %v4963_v40 = vadd.f32 %v9156_v18, %v9102_v10 }
 0x5be   : > { %v5517_v48 = vpop.f32.mrf.mxu1 }
 0x5bf   : > { %5607 = vst.msk [vmem:[%s7281_s21 + $0x18] sm:$0xff] %vm5603_vm0, %v5590_v54  ;;  %v5568_v47 = vadd.f32 %v5517_v48, %v5261_v41  ;;  %v5270_v53 = vadd.f32 %v9158_v16, %v4963_v40  ;;  %v4964_v54 = vadd.f32 %v9160_v61, %v9104_v62 }
 0x5c0   : > { %v5519_v52 = vpop.f32.mrf.mxu1 }
 0x5c1   : > { %v5591_v51 = vadd.f32 %v9174_v3, %v5568_v47  ;;  %v5271_v47 = vadd.f32 %v9162_v17, %v4964_v54  ;;  %v4965_v52 = vadd.f32 %v9165_v55, %v9106_v9 }
 0x5c2   : > { %v5520_v49 = vpop.f32.mrf.mxu1 }
 0x5c3   : > { %5608 = vst.msk [vmem:[%s7281_s21 + $0x20] sm:$0xff] %vm5603_vm0, %v5591_v51  ;;  %v5569_v33 = vadd.f32 %v5520_v49, %v5262_v44  ;;  %v5272_v25 = vadd.f32 %v9167_v1, %v4965_v52 }
 0x5c4   : > { %v5522_v13 = vpop.f32.mrf.mxu1 }
 0x5c5   : > { %v5592_v31 = vadd.f32 %v9174_v3, %v5569_v33 }
 0x5c6   : > { %v5525_v0 = vpop.f32.mrf.mxu1 }
 0x5c7   : > { %5609 = vst.msk [vmem:[%s7281_s21 + $0x28] sm:$0xff] %vm5603_vm0, %v5592_v31  ;;  %v5570_v46 = vadd.f32 %v5525_v0, %v5263_v2 }
 0x5c8   : > { %v5527_v15 = vpop.f32.mrf.mxu1 }
 0x5c9   : > { %v5593_v58 = vadd.f32 %v9174_v3, %v5570_v46 }
 0x5ca   : > { %v5528_v19 = vpop.f32.mrf.mxu1 }
 0x5cb   : > { %5610 = vst.msk [vmem:[%s7281_s21 + $0x30] sm:$0xff] %vm5603_vm0, %v5593_v58  ;;  %v5571_v56 = vadd.f32 %v5528_v19, %v5264_v12 }
 0x5cc   : > { %v5530_v35 = vpop.f32.mrf.mxu1 }
 0x5cd   : > { %v5594_v34 = vadd.f32 %v9174_v3, %v5571_v56 }
 0x5ce   : > { %v5533_v39 = vpop.f32.mrf.mxu1 }
 0x5cf   : > { %5611 = vst.msk [vmem:[%s7281_s21 + $0x38] sm:$0xff] %vm5603_vm0, %v5594_v34  ;;  %v5572_v50 = vadd.f32 %v5533_v39, %v5265_v27 }
 0x5d0   : > { %v5535_v20 = vpop.f32.mrf.mxu1 }
 0x5d1   : > { %v5595_v28 = vadd.f32 %v9174_v3, %v5572_v50 }
 0x5d2   : > { %v5536_v63 = vpop.f32.mrf.mxu1 }
 0x5d3   : > { %5612 = vst.msk [vmem:[%s7281_s21 + $0x40] sm:$0xff] %vm5603_vm0, %v5595_v28  ;;  %v5573_v26 = vadd.f32 %v5536_v63, %v5266_v30 }
 0x5d4   : > { %v5538_v4 = vpop.f32.mrf.mxu1 }
 0x5d5   : > { %v5596_v43 = vadd.f32 %v9174_v3, %v5573_v26 }
 0x5d6   : > { %v5541_v6 = vpop.f32.mrf.mxu1 }
 0x5d7   : > { %5613 = vst.msk [vmem:[%s7281_s21 + $0x48] sm:$0xff] %vm5603_vm0, %v5596_v43  ;;  %v5574_v11 = vadd.f32 %v5541_v6, %v5267_v45 }
 0x5d8   : > { %v5543_v59 = vpop.f32.mrf.mxu1 }
 0x5d9   : > { %v5597_v32 = vadd.f32 %v9174_v3, %v5574_v11 }
 0x5da   : > { %v5544_v23 = vpop.f32.mrf.mxu1 }
 0x5db   : > { %5614 = vst.msk [vmem:[%s7281_s21 + $0x50] sm:$0xff] %vm5603_vm0, %v5597_v32  ;;  %v5575_v60 = vadd.f32 %v5544_v23, %v5268_v42 }
 0x5dc   : > { %v5546_v7 = vpop.f32.mrf.mxu1 }
 0x5dd   : > { %v5598_v41 = vadd.f32 %v9174_v3, %v5575_v60 }
 0x5de   : > { %v5549_v8 = vpop.f32.mrf.mxu1 }
 0x5df   : > { %5615 = vst.msk [vmem:[%s7281_s21 + $0x58] sm:$0xff] %vm5603_vm0, %v5598_v41  ;;  %v5576_v37 = vadd.f32 %v5549_v8, %v5269_v38 }
 0x5e0   : > { %v5551_v21 = vpop.f32.mrf.mxu1 }
 0x5e1   : > { %v5599_v48 = vadd.f32 %v9174_v3, %v5576_v37 }
 0x5e2   : > { %v5552_v24 = vpop.f32.mrf.mxu1 }
 0x5e3   : > { %5616 = vst.msk [vmem:[%s7281_s21 + $0x60] sm:$0xff] %vm5603_vm0, %v5599_v48  ;;  %v5577_v10 = vadd.f32 %v5552_v24, %v5270_v53 }
 0x5e4   : > { %v5554_v18 = vpop.f32.mrf.mxu1 }
 0x5e5   : > { %v5600_v44 = vadd.f32 %v9174_v3, %v5577_v10 }
 0x5e6   : > { %v5557_v16 = vpop.f32.mrf.mxu1 }
 0x5e7   : > { %5617 = vst.msk [vmem:[%s7281_s21 + $0x68] sm:$0xff] %vm5603_vm0, %v5600_v44  ;;  %v5578_v62 = vadd.f32 %v5557_v16, %v5271_v47 }
 0x5e8   : > { %v5559_v61 = vpop.f32.mrf.mxu1 }
 0x5e9   : > { %v5601_v51 = vadd.f32 %v9174_v3, %v5578_v62 }
 0x5ea   : > { %v5560_v49 = vpop.f32.mrf.mxu1 }
 0x5eb   : > { %5618 = vst.msk [vmem:[%s7281_s21 + $0x70] sm:$0xff] %vm5603_vm0, %v5601_v51  ;;  %v5579_v33 = vadd.f32 %v5560_v49, %v5272_v25 }
 0x5ec   : > { %v5562_v13 = vpop.f32.mrf.mxu1 }
 0x5ed   : > { %v5602_v17 = vadd.f32 %v9174_v3, %v5579_v33 }
 0x5ef   : > { %5619 = vst.msk [vmem:[%s7281_s21 + $0x78] sm:$0xff] %vm5603_vm0, %v5602_v17 }
 0x5f0 PF: > { %s17_s28 = sadd.s32 1, %s7142_s28   ;;  %s9307_s24 = smov %s7134_s26 }
 0x5f1   : > { %p14_p10 = scmp.ge.s32.totalorder %s17_s28, 6   ;;  %s9308_s25 = smov %s7138_s27 }
 0x5f2   : > { %s9309_s26 = smov %s9312_s29  ;;  %s9310_s27 = smov %s9316_s30 }
 0x5f3   :  { %16 = sbr.rel (!%p14_p10) target bundleno = 3 (0x3), region = 103 }

</bundles_post_ra>
